<compile_context>
chip_gen: v5e
topology: v5e:2x2
jax: 0.10.0
libtpu: 0.0.40
codegen_flags: <defaults>
</compile_context>

<pallas_src>
import functools

import jax
import jax.numpy as jnp
from jax import lax
from jax.experimental import pallas as pl
from jax.experimental.pallas import tpu as pltpu

_EPS = 1e-5


def _conv3x3_strip(src_ref, w_folded, y0, y1, W, C):
    """3x3 VALID conv of padded source rows [y0, y1+2) -> output rows [y0, y1).

    src_ref:  (H+2, W+2, C) reflection-padded bf16 VMEM ref.
    w_folded: (3, 3*C, C) bf16 weights, taps folded into K (dx-major, cin-minor).
    The dx shift+concat is done ONCE per strip (hoisted out of the dy loop); each dy
    only takes a leading-axis slice feeding one bf16 MXU dot with f32 accumulation.
    Returns ((y1 - y0) * W, C) float32.
    """
    rows = y1 - y0
    src = src_ref[y0:y1 + 2, :, :]                                   # (rows+2, W+2, C) bf16
    cols = jnp.concatenate(
        [src[:, 0:W, :], src[:, 1:W + 1, :], src[:, 2:W + 2, :]],
        axis=-1)                                                     # (rows+2, W, 3C) bf16
    acc = jnp.zeros((rows * W, C), jnp.float32)
    # TODO(synk): on v6e consider folding all 9 taps into a single K=9C dot per strip
    #   (moves the dy accumulation into the MXU; trades VMEM for fewer result pops).
    for dy in range(3):
        patch = cols[dy:dy + rows, :, :].reshape(rows * W, 3 * C)    # bf16 MXU operand
        acc = acc + jnp.dot(patch, w_folded[dy],
                            preferred_element_type=jnp.float32)
    return acc


def _finalize_in_stats(shift, s1, s2, gamma, beta, inv_n):
    """Shifted single-pass InstanceNorm stats -> fused (scale, offset), all f32.

    mean = shift + E[y - shift];  var = E[(y-shift)^2] - E[y-shift]^2 (biased, like
    PyTorch).  Shifting by the first strip's channel mean removes the catastrophic
    cancellation of the raw E[y^2] - mean^2 form.
    """
    m = s1 * inv_n
    mean = shift + m
    var = jnp.maximum(s2 * inv_n - m * m, 0.0)
    inv = lax.rsqrt(var + _EPS)
    scale = gamma * inv                                              # (1, C)
    offset = beta - mean * scale                                     # (1, C)
    return scale, offset


def _resblock_kernel(x_ref, w1_ref, g1_ref, be1_ref, w2_ref, g2_ref, be2_ref,
                     out_ref, xpad_ref, hpad_ref, *, strip_rows):
    H, W, C = x_ref.shape
    Hp, Wp = H + 2, W + 2
    inv_n = 1.0 / float(H * W)
    strips = [(y0, min(y0 + strip_rows, H)) for y0 in range(0, H, strip_rows)]

    w1 = w1_ref[...]                      # (3, 3C, C) bf16, loaded once per image
    w2 = w2_ref[...]

    # --- reflection-pad the input into the bf16 xpad scratch (no wrapper jnp.pad) ---
    xb = x_ref[...].astype(xpad_ref.dtype)                   # (H, W, C)
    xpad_ref[1:H + 1, 1:W + 1, :] = xb
    xpad_ref[0:1, 1:W + 1, :] = xb[1:2]                      # pad row 0   = in row 1
    xpad_ref[H + 1:Hp, 1:W + 1, :] = xb[H - 2:H - 1]         # pad row H+1 = in row H-2
    left = xpad_ref[:, 2:3, :]                               # pad col 0   = in col 1
    xpad_ref[:, 0:1, :] = left
    right = xpad_ref[:, W - 1:W, :]                          # pad col W+1 = in col W-2
    xpad_ref[:, Wp - 1:Wp, :] = right

    # --- conv1, strip-wise: raw result -> hpad interior; IN1 stats in f32 -----------
    s1 = jnp.zeros((1, C), jnp.float32)
    s2 = jnp.zeros((1, C), jnp.float32)
    shift = None
    for (y0, y1) in strips:
        acc = _conv3x3_strip(xpad_ref, w1, y0, y1, W, C)     # (rows*W, C) f32
        if shift is None:
            shift = jnp.mean(acc, axis=0, keepdims=True)     # first strip's channel mean
        d = acc - shift
        s1 = s1 + jnp.sum(d, axis=0, keepdims=True)
        s2 = s2 + jnp.sum(d * d, axis=0, keepdims=True)
        hpad_ref[1 + y0:1 + y1, 1:W + 1, :] = (
            acc.reshape(y1 - y0, W, C).astype(hpad_ref.dtype))
    sc1, of1 = _finalize_in_stats(shift, s1, s2, g1_ref[...], be1_ref[...], inv_n)
    sc1 = sc1.reshape(1, 1, C)
    of1 = of1.reshape(1, 1, C)

    # --- IN1 scale/offset + ReLU sweep (in place, strip-wise), then reflect border --
    for (y0, y1) in strips:
        v = hpad_ref[1 + y0:1 + y1, 1:W + 1, :].astype(jnp.float32)
        v = jnp.maximum(v * sc1 + of1, 0.0)
        hpad_ref[1 + y0:1 + y1, 1:W + 1, :] = v.astype(hpad_ref.dtype)
    # Border fill AFTER normalization so the reflected rows/cols (and corners) copy
    # already-normalized interior values.
    top = hpad_ref[2:3, 1:W + 1, :]                          # pad row 0   = interior row 1
    hpad_ref[0:1, 1:W + 1, :] = top
    bot = hpad_ref[H - 1:H, 1:W + 1, :]                      # pad row H+1 = interior row H-2
    hpad_ref[Hp - 1:Hp, 1:W + 1, :] = bot
    left = hpad_ref[:, 2:3, :]                               # pad col 0   = interior col 1
    hpad_ref[:, 0:1, :] = left
    right = hpad_ref[:, W - 1:W, :]                          # pad col W+1 = interior col W-2
    hpad_ref[:, Wp - 1:Wp, :] = right

    # --- conv2, strip-wise: raw f32 result parked in out_ref; IN2 stats in f32 ------
    s1 = jnp.zeros((1, C), jnp.float32)
    s2 = jnp.zeros((1, C), jnp.float32)
    shift = None
    for (y0, y1) in strips:
        acc = _conv3x3_strip(hpad_ref, w2, y0, y1, W, C)
        if shift is None:
            shift = jnp.mean(acc, axis=0, keepdims=True)
        d = acc - shift
        s1 = s1 + jnp.sum(d, axis=0, keepdims=True)
        s2 = s2 + jnp.sum(d * d, axis=0, keepdims=True)
        out_ref[y0:y1, :, :] = acc.reshape(y1 - y0, W, C).astype(out_ref.dtype)
    sc2, of2 = _finalize_in_stats(shift, s1, s2, g2_ref[...], be2_ref[...], inv_n)
    sc2 = sc2.reshape(1, 1, C)
    of2 = of2.reshape(1, 1, C)

    # --- IN2 + residual sweep (strip-wise; residual is an aligned interior read) ----
    for (y0, y1) in strips:
        raw = out_ref[y0:y1, :, :].astype(jnp.float32)
        res = x_ref[y0:y1, :, :].astype(jnp.float32)
        out_ref[y0:y1, :, :] = (raw * sc2 + of2 + res).astype(out_ref.dtype)


def residual_multi_style_block(x_nhwc, params, style, *, strip_rows=None):
    """x_nhwc: (B, H, W, C) float32.  params: dict of weights.  style: python int."""
    B, H, W, C = x_nhwc.shape
    assert H >= 2 and W >= 2, "ReflectionPad2d(1) requires H >= 2 and W >= 2"
    Hp, Wp = H + 2, W + 2

    # Conv biases dropped: a per-channel constant before InstanceNorm is cancelled
    # exactly by the mean subtraction and leaves the variance unchanged.
    # Weights folded to (3, 3C, C) (dx/cin into K) and pre-cast to bf16 for the MXU.
    w1f = params["w1"].reshape(3, 3 * C, C).astype(jnp.bfloat16)
    w2f = params["w2"].reshape(3, 3 * C, C).astype(jnp.bfloat16)
    g1 = params["in1_gamma"][style].reshape(1, C).astype(jnp.float32)
    be1 = params["in1_beta"][style].reshape(1, C).astype(jnp.float32)
    g2 = params["in2_gamma"][style].reshape(1, C).astype(jnp.float32)
    be2 = params["in2_beta"][style].reshape(1, C).astype(jnp.float32)

    # Strip size: bound per-strip im2col/acc/sweep temporaries to ~4 MiB, >= 8 rows.
    if strip_rows is None:
        bytes_per_out_row = (6 + 6 + 4 + 12) * W * C   # cols+patch (bf16), acc+sweeps (f32)
        strip_rows = max(8, (4 * 1024 * 1024) // max(bytes_per_out_row, 1))
    strip_rows = int(max(1, min(strip_rows, H)))

    x_spec = pl.BlockSpec((None, H, W, C), lambda b: (b, 0, 0, 0))
    out_spec = pl.BlockSpec((None, H, W, C), lambda b: (b, 0, 0, 0))
    w_spec = pl.BlockSpec((3, 3 * C, C), lambda b: (0, 0, 0))
    v_spec = pl.BlockSpec((1, C), lambda b: (0, 0))
    # TODO(synk): weight/affine blocks are grid-invariant; single-buffer them
    #   (pipeline_mode=pl.Buffered(1)) once that path is verified for pallas_call.

    # VMEM budget: double-buffered x/out blocks + small weight blocks + two bf16
    # pad scratches + per-strip temporaries, 2x margin, capped with headroom below
    # the generation's physical VMEM (v5e/v6e 128 MiB, v7x 64 MiB).
    f32, bf16 = 4, 2
    per_step = (
        2 * 2 * H * W * C * f32                 # x and out blocks (double buffered)
        + 2 * Hp * Wp * C * bf16                # xpad + hpad scratches
        + 2 * 2 * 9 * C * C * bf16              # two folded weight blocks (double buffered)
        + 4 * 2 * C * f32                       # per-style gamma/beta blocks
        + (strip_rows + 2) * W * C * (6 + 6)    # cols + patch (bf16) per strip
        + strip_rows * W * C * (4 + 12)         # acc + normalize/residual sweep temps (f32)
    )
    try:
        vmem_cap = int(pltpu.get_tpu_info().vmem_capacity_bytes)
    except Exception:
        vmem_cap = 64 * 1024 * 1024             # conservative fallback (v7x-sized)
    vmem_limit = int(min(int(0.85 * vmem_cap), max(32 * 1024 * 1024, 2 * per_step)))

    # TODO(synk): images whose padded block exceeds this budget need a spatial grid
    #   axis with two-phase IN statistics (esp. under v7x's 64 MiB VMEM).
    # TODO(synk): for B == 1 on v7x add a second parallel grid axis splitting H with a
    #   1-row halo (two-phase IN stats) so both TensorCores are busy.
    # TODO(synk): production C < 128 wastes MXU/VPU lanes and produces masked stores
    #   (demo C=4 runs at ~3% lane utilization); pad C or fold W into lanes first.
    return pl.pallas_call(
        functools.partial(_resblock_kernel, strip_rows=strip_rows),
        out_shape=jax.ShapeDtypeStruct((B, H, W, C), x_nhwc.dtype),
        grid_spec=pltpu.PrefetchScalarGridSpec(
            num_scalar_prefetch=0,
            grid=(B,),
            in_specs=[x_spec, w_spec, v_spec, v_spec, w_spec, v_spec, v_spec],
            out_specs=out_spec,
            scratch_shapes=[pltpu.VMEM((Hp, Wp, C), jnp.bfloat16),    # padded input
                            pltpu.VMEM((Hp, Wp, C), jnp.bfloat16)],   # padded conv1 act
        ),
        compiler_params=pltpu.CompilerParams(
            dimension_semantics=("parallel",),
            vmem_limit_bytes=vmem_limit),
    )(x_nhwc, w1f, g1, be1, w2f, g2, be2)


def _reference(x_nhwc, params, style):
    """Plain-JAX f32 reference mirroring the PyTorch module (lax.conv WITH biases,
    two-pass instance norm)."""
    C = x_nhwc.shape[-1]

    def refl_pad(x):
        return jnp.pad(x, ((0, 0), (1, 1), (1, 1), (0, 0)), mode="reflect")

    def conv(x, w, b):
        y = lax.conv_general_dilated(
            refl_pad(x), w, window_strides=(1, 1), padding="VALID",
            dimension_numbers=("NHWC", "HWIO", "NHWC"))
        return y + b.reshape(1, 1, 1, C)

    def inorm(y, g, be, eps=_EPS):
        mean = jnp.mean(y, axis=(1, 2), keepdims=True)
        var = jnp.mean((y - mean) ** 2, axis=(1, 2), keepdims=True)
        return (y - mean) * lax.rsqrt(var + eps) * g.reshape(1, 1, 1, C) \
            + be.reshape(1, 1, 1, C)

    h = conv(x_nhwc, params["w1"], params["b1"])
    h = jnp.maximum(inorm(h, params["in1_gamma"][style], params["in1_beta"][style]), 0.0)
    h = conv(h, params["w2"], params["b2"])
    h = inorm(h, params["in2_gamma"][style], params["in2_beta"][style])
    return h + x_nhwc


if __name__ == "__main__":
    B, C, H, W = 2, 4, 16, 16
    style_number = 2
    style = 1

    key = jax.random.PRNGKey(0)
    k_x, k_w1, k_b1, k_w2, k_b2 = jax.random.split(key, 5)

    # PyTorch input is NCHW; build it, then transpose to the kernel layout NHWC.
    x_nchw = jax.random.normal(k_x, (B, C, H, W), dtype=jnp.float32)
    x_nhwc = jnp.transpose(x_nchw, (0, 2, 3, 1))

    fan_in = C * 3 * 3
    bound = 1.0 / (fan_in ** 0.5)
    params = {
        # Conv weights in (kh, kw, Cin, Cout); deterministic uniform init (~PyTorch range).
        "w1": jax.random.uniform(k_w1, (3, 3, C, C), jnp.float32, -bound, bound),
        "b1": jax.random.uniform(k_b1, (C,), jnp.float32, -bound, bound),
        "w2": jax.random.uniform(k_w2, (3, 3, C, C), jnp.float32, -bound, bound),
        "b2": jax.random.uniform(k_b2, (C,), jnp.float32, -bound, bound),
        # InstanceNorm2d(affine=True) default init: weight=1, bias=0, one set per style.
        "in1_gamma": jnp.ones((style_number, C), jnp.float32),
        "in1_beta": jnp.zeros((style_number, C), jnp.float32),
        "in2_gamma": jnp.ones((style_number, C), jnp.float32),
        "in2_beta": jnp.zeros((style_number, C), jnp.float32),
    }

    # strip_rows=8 -> two H-strips at this shape, exercising the multi-strip path.
    out = residual_multi_style_block(x_nhwc, params, style, strip_rows=8)
    out = jax.block_until_ready(out)

    ref = jax.block_until_ready(_reference(x_nhwc, params, style))
    # The kernel runs a bf16-MXU pipeline (bf16 conv operands + bf16 intermediate
    # scratch, f32 accumulation/statistics), so expect bf16-level deviation from the
    # pure-f32 reference (measured max abs err ~1e-2 at this shape).
    max_err = float(jnp.max(jnp.abs(out - ref)))
    assert jnp.allclose(out, ref, atol=5e-2, rtol=5e-2), \
        f"mismatch vs reference (max abs err {max_err:.4e})"

    print("KERNEL_OK")
</pallas_src>

<mosaic_0001>
module attributes {stable_mosaic.version = 11 : i64} {
  func.func @_resblock_kernel(%arg0: i32, %arg1: memref<1x16x16x4xf32, #tpu.memory_space<vmem>>, %arg2: memref<3x12x4xbf16, #tpu.memory_space<vmem>>, %arg3: memref<1x4xf32, #tpu.memory_space<vmem>>, %arg4: memref<1x4xf32, #tpu.memory_space<vmem>>, %arg5: memref<3x12x4xbf16, #tpu.memory_space<vmem>>, %arg6: memref<1x4xf32, #tpu.memory_space<vmem>>, %arg7: memref<1x4xf32, #tpu.memory_space<vmem>>, %arg8: memref<1x16x16x4xf32, #tpu.memory_space<vmem>>, %arg9: memref<18x18x4xbf16, #tpu.memory_space<vmem>>, %arg10: memref<18x18x4xbf16, #tpu.memory_space<vmem>>) attributes {dimension_semantics = [#tpu.dimension_semantics<parallel>], iteration_bounds = array<i64: 2>, scalar_prefetch = 0 : i64, scratch_operands = 2 : i64, tpu.core_type = #tpu.core_type<tc>, window_params = [{transform_indices = @transform_0, window_bounds = array<i64: 1, 16, 16, 4>}, {pipeline_mode = #tpu.pipeline_mode<synchronous>, transform_indices = @transform_1, window_bounds = array<i64: 3, 12, 4>}, {pipeline_mode = #tpu.pipeline_mode<synchronous>, transform_indices = @transform_2, window_bounds = array<i64: 1, 4>}, {pipeline_mode = #tpu.pipeline_mode<synchronous>, transform_indices = @transform_3, window_bounds = array<i64: 1, 4>}, {pipeline_mode = #tpu.pipeline_mode<synchronous>, transform_indices = @transform_4, window_bounds = array<i64: 3, 12, 4>}, {pipeline_mode = #tpu.pipeline_mode<synchronous>, transform_indices = @transform_5, window_bounds = array<i64: 1, 4>}, {pipeline_mode = #tpu.pipeline_mode<synchronous>, transform_indices = @transform_6, window_bounds = array<i64: 1, 4>}, {transform_indices = @transform_7, window_bounds = array<i64: 1, 16, 16, 4>}]} {
    %c0 = arith.constant 0 : index
    %c0_0 = arith.constant 0 : index
    %c0_1 = arith.constant 0 : index
    %0 = vector.load %arg2[%c0, %c0_0, %c0_1] : memref<3x12x4xbf16, #tpu.memory_space<vmem>>, vector<3x12x4xbf16>
    %c0_2 = arith.constant 0 : index
    %c0_3 = arith.constant 0 : index
    %c0_4 = arith.constant 0 : index
    %1 = vector.load %arg5[%c0_2, %c0_3, %c0_4] : memref<3x12x4xbf16, #tpu.memory_space<vmem>>, vector<3x12x4xbf16>
    %c0_5 = arith.constant 0 : index
    %c0_6 = arith.constant 0 : index
    %c0_7 = arith.constant 0 : index
    %c0_8 = arith.constant 0 : index
    %2 = vector.load %arg1[%c0_5, %c0_6, %c0_7, %c0_8] : memref<1x16x16x4xf32, #tpu.memory_space<vmem>>, vector<1x16x16x4xf32>
    %3 = vector.shape_cast %2 : vector<1x16x16x4xf32> to vector<16x16x4xf32>
    %4 = arith.truncf %3 : vector<16x16x4xf32> to vector<16x16x4xbf16>
    %c1 = arith.constant 1 : index
    %c1_9 = arith.constant 1 : index
    %c0_10 = arith.constant 0 : index
    %5 = vector.load %arg9[%c1, %c1_9, %c0_10] : memref<18x18x4xbf16, #tpu.memory_space<vmem>>, vector<16x16x4xbf16>
    tpu.vector_store %arg9[%c1, %c1_9, %c0_10], %4 {strides = array<i32>} : memref<18x18x4xbf16, #tpu.memory_space<vmem>>, vector<16x16x4xbf16>,
    %6 = vector.extract_strided_slice %4 {offsets = [1, 0, 0], sizes = [1, 16, 4], strides = [1, 1, 1]} : vector<16x16x4xbf16> to vector<1x16x4xbf16>
    %c0_11 = arith.constant 0 : index
    %c1_12 = arith.constant 1 : index
    %c0_13 = arith.constant 0 : index
    %7 = vector.load %arg9[%c0_11, %c1_12, %c0_13] : memref<18x18x4xbf16, #tpu.memory_space<vmem>>, vector<1x16x4xbf16>
    tpu.vector_store %arg9[%c0_11, %c1_12, %c0_13], %6 {strides = array<i32>} : memref<18x18x4xbf16, #tpu.memory_space<vmem>>, vector<1x16x4xbf16>,
    %8 = vector.extract_strided_slice %4 {offsets = [14, 0, 0], sizes = [1, 16, 4], strides = [1, 1, 1]} : vector<16x16x4xbf16> to vector<1x16x4xbf16>
    %c17 = arith.constant 17 : index
    %c1_14 = arith.constant 1 : index
    %c0_15 = arith.constant 0 : index
    %9 = vector.load %arg9[%c17, %c1_14, %c0_15] : memref<18x18x4xbf16, #tpu.memory_space<vmem>>, vector<1x16x4xbf16>
    tpu.vector_store %arg9[%c17, %c1_14, %c0_15], %8 {strides = array<i32>} : memref<18x18x4xbf16, #tpu.memory_space<vmem>>, vector<1x16x4xbf16>,
    %c0_16 = arith.constant 0 : index
    %c2 = arith.constant 2 : index
    %c0_17 = arith.constant 0 : index
    %10 = vector.load %arg9[%c0_16, %c2, %c0_17] : memref<18x18x4xbf16, #tpu.memory_space<vmem>>, vector<18x1x4xbf16>
    %c0_18 = arith.constant 0 : index
    %c0_19 = arith.constant 0 : index
    %c0_20 = arith.constant 0 : index
    %11 = vector.load %arg9[%c0_18, %c0_19, %c0_20] : memref<18x18x4xbf16, #tpu.memory_space<vmem>>, vector<18x1x4xbf16>
    tpu.vector_store %arg9[%c0_18, %c0_19, %c0_20], %10 {strides = array<i32>} : memref<18x18x4xbf16, #tpu.memory_space<vmem>>, vector<18x1x4xbf16>,
    %c0_21 = arith.constant 0 : index
    %c15 = arith.constant 15 : index
    %c0_22 = arith.constant 0 : index
    %12 = vector.load %arg9[%c0_21, %c15, %c0_22] : memref<18x18x4xbf16, #tpu.memory_space<vmem>>, vector<18x1x4xbf16>
    %c0_23 = arith.constant 0 : index
    %c17_24 = arith.constant 17 : index
    %c0_25 = arith.constant 0 : index
    %13 = vector.load %arg9[%c0_23, %c17_24, %c0_25] : memref<18x18x4xbf16, #tpu.memory_space<vmem>>, vector<18x1x4xbf16>
    tpu.vector_store %arg9[%c0_23, %c17_24, %c0_25], %12 {strides = array<i32>} : memref<18x18x4xbf16, #tpu.memory_space<vmem>>, vector<18x1x4xbf16>,
    %cst = arith.constant 0.000000e+00 : f32
    %14 = vector.broadcast %cst : f32 to vector<1x4xf32>
    %cst_26 = arith.constant 0.000000e+00 : f32
    %15 = vector.broadcast %cst_26 : f32 to vector<1x4xf32>
    %c0_27 = arith.constant 0 : index
    %c0_28 = arith.constant 0 : index
    %c0_29 = arith.constant 0 : index
    %16 = vector.load %arg9[%c0_27, %c0_28, %c0_29] : memref<18x18x4xbf16, #tpu.memory_space<vmem>>, vector<10x18x4xbf16>
    %17 = vector.extract_strided_slice %16 {offsets = [0, 0, 0], sizes = [10, 16, 4], strides = [1, 1, 1]} : vector<10x18x4xbf16> to vector<10x16x4xbf16>
    %18 = vector.extract_strided_slice %16 {offsets = [0, 1, 0], sizes = [10, 16, 4], strides = [1, 1, 1]} : vector<10x18x4xbf16> to vector<10x16x4xbf16>
    %19 = vector.extract_strided_slice %16 {offsets = [0, 2, 0], sizes = [10, 16, 4], strides = [1, 1, 1]} : vector<10x18x4xbf16> to vector<10x16x4xbf16>
    %20 = tpu.concatenate %17, %18, %19 in 2 : vector<10x16x4xbf16>, vector<10x16x4xbf16>, vector<10x16x4xbf16> -> vector<10x16x12xbf16>
    %cst_30 = arith.constant 0.000000e+00 : f32
    %21 = vector.broadcast %cst_30 : f32 to vector<128x4xf32>
    %22 = vector.extract_strided_slice %20 {offsets = [0, 0, 0], sizes = [8, 16, 12], strides = [1, 1, 1]} : vector<10x16x12xbf16> to vector<8x16x12xbf16>
    %23 = vector.shape_cast %22 : vector<8x16x12xbf16> to vector<128x12xbf16>
    %24 = vector.extract_strided_slice %0 {offsets = [0, 0, 0], sizes = [1, 12, 4], strides = [1, 1, 1]} : vector<3x12x4xbf16> to vector<1x12x4xbf16>
    %25 = vector.shape_cast %24 : vector<1x12x4xbf16> to vector<12x4xbf16>
    %cst_31 = arith.constant dense<0.000000e+00> : vector<128x4xf32>
    %26 = tpu.matmul %23, %25, %cst_31 {dimension_numbers = #tpu.dot_dimension_numbers<[1], [0], [0], [1], [0, 0, 1, 1], [], []>} : vector<128x12xbf16>, vector<12x4xbf16>, vector<128x4xf32> -> vector<128x4xf32>
    %27 = arith.addf %21, %26 : vector<128x4xf32>
    %28 = vector.extract_strided_slice %20 {offsets = [1, 0, 0], sizes = [8, 16, 12], strides = [1, 1, 1]} : vector<10x16x12xbf16> to vector<8x16x12xbf16>
    %29 = vector.shape_cast %28 : vector<8x16x12xbf16> to vector<128x12xbf16>
    %30 = vector.extract_strided_slice %0 {offsets = [1, 0, 0], sizes = [1, 12, 4], strides = [1, 1, 1]} : vector<3x12x4xbf16> to vector<1x12x4xbf16>
    %31 = vector.shape_cast %30 : vector<1x12x4xbf16> to vector<12x4xbf16>
    %cst_32 = arith.constant dense<0.000000e+00> : vector<128x4xf32>
    %32 = tpu.matmul %29, %31, %cst_32 {dimension_numbers = #tpu.dot_dimension_numbers<[1], [0], [0], [1], [0, 0, 1, 1], [], []>} : vector<128x12xbf16>, vector<12x4xbf16>, vector<128x4xf32> -> vector<128x4xf32>
    %33 = arith.addf %27, %32 : vector<128x4xf32>
    %34 = vector.extract_strided_slice %20 {offsets = [2, 0, 0], sizes = [8, 16, 12], strides = [1, 1, 1]} : vector<10x16x12xbf16> to vector<8x16x12xbf16>
    %35 = vector.shape_cast %34 : vector<8x16x12xbf16> to vector<128x12xbf16>
    %36 = vector.extract_strided_slice %0 {offsets = [2, 0, 0], sizes = [1, 12, 4], strides = [1, 1, 1]} : vector<3x12x4xbf16> to vector<1x12x4xbf16>
    %37 = vector.shape_cast %36 : vector<1x12x4xbf16> to vector<12x4xbf16>
    %cst_33 = arith.constant dense<0.000000e+00> : vector<128x4xf32>
    %38 = tpu.matmul %35, %37, %cst_33 {dimension_numbers = #tpu.dot_dimension_numbers<[1], [0], [0], [1], [0, 0, 1, 1], [], []>} : vector<128x12xbf16>, vector<12x4xbf16>, vector<128x4xf32> -> vector<128x4xf32>
    %39 = arith.addf %33, %38 : vector<128x4xf32>
    %cst_34 = arith.constant dense<0.000000e+00> : vector<4xf32>
    %40 = vector.multi_reduction <add>, %39, %cst_34 [0] : vector<128x4xf32> to vector<4xf32>
    %41 = vector.shape_cast %40 : vector<4xf32> to vector<1x4xf32>
    %cst_35 = arith.constant 1.280000e+02 : f32
    %42 = vector.broadcast %cst_35 : f32 to vector<1x4xf32>
    %43 = arith.divf %41, %42 : vector<1x4xf32>
    %44 = vector.broadcast %43 : vector<1x4xf32> to vector<128x4xf32>
    %45 = arith.subf %39, %44 : vector<128x4xf32>
    %cst_36 = arith.constant dense<0.000000e+00> : vector<4xf32>
    %46 = vector.multi_reduction <add>, %45, %cst_36 [0] : vector<128x4xf32> to vector<4xf32>
    %47 = vector.shape_cast %46 : vector<4xf32> to vector<1x4xf32>
    %48 = arith.addf %14, %47 : vector<1x4xf32>
    %49 = arith.mulf %45, %45 : vector<128x4xf32>
    %cst_37 = arith.constant dense<0.000000e+00> : vector<4xf32>
    %50 = vector.multi_reduction <add>, %49, %cst_37 [0] : vector<128x4xf32> to vector<4xf32>
    %51 = vector.shape_cast %50 : vector<4xf32> to vector<1x4xf32>
    %52 = arith.addf %15, %51 : vector<1x4xf32>
    %53 = vector.shape_cast %39 : vector<128x4xf32> to vector<8x16x4xf32>
    %54 = arith.truncf %53 : vector<8x16x4xf32> to vector<8x16x4xbf16>
    %c1_38 = arith.constant 1 : index
    %c1_39 = arith.constant 1 : index
    %c0_40 = arith.constant 0 : index
    %55 = vector.load %arg10[%c1_38, %c1_39, %c0_40] : memref<18x18x4xbf16, #tpu.memory_space<vmem>>, vector<8x16x4xbf16>
    tpu.vector_store %arg10[%c1_38, %c1_39, %c0_40], %54 {strides = array<i32>} : memref<18x18x4xbf16, #tpu.memory_space<vmem>>, vector<8x16x4xbf16>,
    %c8 = arith.constant 8 : index
    %c0_41 = arith.constant 0 : index
    %c0_42 = arith.constant 0 : index
    %56 = vector.load %arg9[%c8, %c0_41, %c0_42] : memref<18x18x4xbf16, #tpu.memory_space<vmem>>, vector<10x18x4xbf16>
    %57 = vector.extract_strided_slice %56 {offsets = [0, 0, 0], sizes = [10, 16, 4], strides = [1, 1, 1]} : vector<10x18x4xbf16> to vector<10x16x4xbf16>
    %58 = vector.extract_strided_slice %56 {offsets = [0, 1, 0], sizes = [10, 16, 4], strides = [1, 1, 1]} : vector<10x18x4xbf16> to vector<10x16x4xbf16>
    %59 = vector.extract_strided_slice %56 {offsets = [0, 2, 0], sizes = [10, 16, 4], strides = [1, 1, 1]} : vector<10x18x4xbf16> to vector<10x16x4xbf16>
    %60 = tpu.concatenate %57, %58, %59 in 2 : vector<10x16x4xbf16>, vector<10x16x4xbf16>, vector<10x16x4xbf16> -> vector<10x16x12xbf16>
    %cst_43 = arith.constant 0.000000e+00 : f32
    %61 = vector.broadcast %cst_43 : f32 to vector<128x4xf32>
    %62 = vector.extract_strided_slice %60 {offsets = [0, 0, 0], sizes = [8, 16, 12], strides = [1, 1, 1]} : vector<10x16x12xbf16> to vector<8x16x12xbf16>
    %63 = vector.shape_cast %62 : vector<8x16x12xbf16> to vector<128x12xbf16>
    %64 = vector.extract_strided_slice %0 {offsets = [0, 0, 0], sizes = [1, 12, 4], strides = [1, 1, 1]} : vector<3x12x4xbf16> to vector<1x12x4xbf16>
    %65 = vector.shape_cast %64 : vector<1x12x4xbf16> to vector<12x4xbf16>
    %cst_44 = arith.constant dense<0.000000e+00> : vector<128x4xf32>
    %66 = tpu.matmul %63, %65, %cst_44 {dimension_numbers = #tpu.dot_dimension_numbers<[1], [0], [0], [1], [0, 0, 1, 1], [], []>} : vector<128x12xbf16>, vector<12x4xbf16>, vector<128x4xf32> -> vector<128x4xf32>
    %67 = arith.addf %61, %66 : vector<128x4xf32>
    %68 = vector.extract_strided_slice %60 {offsets = [1, 0, 0], sizes = [8, 16, 12], strides = [1, 1, 1]} : vector<10x16x12xbf16> to vector<8x16x12xbf16>
    %69 = vector.shape_cast %68 : vector<8x16x12xbf16> to vector<128x12xbf16>
    %70 = vector.extract_strided_slice %0 {offsets = [1, 0, 0], sizes = [1, 12, 4], strides = [1, 1, 1]} : vector<3x12x4xbf16> to vector<1x12x4xbf16>
    %71 = vector.shape_cast %70 : vector<1x12x4xbf16> to vector<12x4xbf16>
    %cst_45 = arith.constant dense<0.000000e+00> : vector<128x4xf32>
    %72 = tpu.matmul %69, %71, %cst_45 {dimension_numbers = #tpu.dot_dimension_numbers<[1], [0], [0], [1], [0, 0, 1, 1], [], []>} : vector<128x12xbf16>, vector<12x4xbf16>, vector<128x4xf32> -> vector<128x4xf32>
    %73 = arith.addf %67, %72 : vector<128x4xf32>
    %74 = vector.extract_strided_slice %60 {offsets = [2, 0, 0], sizes = [8, 16, 12], strides = [1, 1, 1]} : vector<10x16x12xbf16> to vector<8x16x12xbf16>
    %75 = vector.shape_cast %74 : vector<8x16x12xbf16> to vector<128x12xbf16>
    %76 = vector.extract_strided_slice %0 {offsets = [2, 0, 0], sizes = [1, 12, 4], strides = [1, 1, 1]} : vector<3x12x4xbf16> to vector<1x12x4xbf16>
    %77 = vector.shape_cast %76 : vector<1x12x4xbf16> to vector<12x4xbf16>
    %cst_46 = arith.constant dense<0.000000e+00> : vector<128x4xf32>
    %78 = tpu.matmul %75, %77, %cst_46 {dimension_numbers = #tpu.dot_dimension_numbers<[1], [0], [0], [1], [0, 0, 1, 1], [], []>} : vector<128x12xbf16>, vector<12x4xbf16>, vector<128x4xf32> -> vector<128x4xf32>
    %79 = arith.addf %73, %78 : vector<128x4xf32>
    %80 = vector.broadcast %43 : vector<1x4xf32> to vector<128x4xf32>
    %81 = arith.subf %79, %80 : vector<128x4xf32>
    %cst_47 = arith.constant dense<0.000000e+00> : vector<4xf32>
    %82 = vector.multi_reduction <add>, %81, %cst_47 [0] : vector<128x4xf32> to vector<4xf32>
    %83 = vector.shape_cast %82 : vector<4xf32> to vector<1x4xf32>
    %84 = arith.addf %48, %83 : vector<1x4xf32>
    %85 = arith.mulf %81, %81 : vector<128x4xf32>
    %cst_48 = arith.constant dense<0.000000e+00> : vector<4xf32>
    %86 = vector.multi_reduction <add>, %85, %cst_48 [0] : vector<128x4xf32> to vector<4xf32>
    %87 = vector.shape_cast %86 : vector<4xf32> to vector<1x4xf32>
    %88 = arith.addf %52, %87 : vector<1x4xf32>
    %89 = vector.shape_cast %79 : vector<128x4xf32> to vector<8x16x4xf32>
    %90 = arith.truncf %89 : vector<8x16x4xf32> to vector<8x16x4xbf16>
    %c9 = arith.constant 9 : index
    %c1_49 = arith.constant 1 : index
    %c0_50 = arith.constant 0 : index
    %91 = vector.load %arg10[%c9, %c1_49, %c0_50] : memref<18x18x4xbf16, #tpu.memory_space<vmem>>, vector<8x16x4xbf16>
    tpu.vector_store %arg10[%c9, %c1_49, %c0_50], %90 {strides = array<i32>} : memref<18x18x4xbf16, #tpu.memory_space<vmem>>, vector<8x16x4xbf16>,
    %c0_51 = arith.constant 0 : index
    %c0_52 = arith.constant 0 : index
    %92 = vector.load %arg3[%c0_51, %c0_52] : memref<1x4xf32, #tpu.memory_space<vmem>>, vector<1x4xf32>
    %c0_53 = arith.constant 0 : index
    %c0_54 = arith.constant 0 : index
    %93 = vector.load %arg4[%c0_53, %c0_54] : memref<1x4xf32, #tpu.memory_space<vmem>>, vector<1x4xf32>
    %cst_55 = arith.constant 3.906250e-03 : f32
    %94 = vector.broadcast %cst_55 : f32 to vector<1x4xf32>
    %95 = arith.mulf %84, %94 : vector<1x4xf32>
    %96 = arith.addf %43, %95 : vector<1x4xf32>
    %cst_56 = arith.constant 3.906250e-03 : f32
    %97 = vector.broadcast %cst_56 : f32 to vector<1x4xf32>
    %98 = arith.mulf %88, %97 : vector<1x4xf32>
    %99 = arith.mulf %95, %95 : vector<1x4xf32>
    %100 = arith.subf %98, %99 : vector<1x4xf32>
    %cst_57 = arith.constant 0.000000e+00 : f32
    %101 = vector.broadcast %cst_57 : f32 to vector<1x4xf32>
    %102 = arith.maximumf %100, %101 : vector<1x4xf32>
    %cst_58 = arith.constant 9.99999974E-6 : f32
    %103 = vector.broadcast %cst_58 : f32 to vector<1x4xf32>
    %104 = arith.addf %102, %103 : vector<1x4xf32>
    %105 = math.rsqrt %104 : vector<1x4xf32>
    %106 = arith.mulf %92, %105 : vector<1x4xf32>
    %107 = arith.mulf %96, %106 : vector<1x4xf32>
    %108 = arith.subf %93, %107 : vector<1x4xf32>
    %109 = vector.shape_cast %106 : vector<1x4xf32> to vector<1x1x4xf32>
    %110 = vector.shape_cast %108 : vector<1x4xf32> to vector<1x1x4xf32>
    %c1_59 = arith.constant 1 : index
    %c1_60 = arith.constant 1 : index
    %c0_61 = arith.constant 0 : index
    %111 = vector.load %arg10[%c1_59, %c1_60, %c0_61] : memref<18x18x4xbf16, #tpu.memory_space<vmem>>, vector<8x16x4xbf16>
    %112 = arith.extf %111 : vector<8x16x4xbf16> to vector<8x16x4xf32>
    %113 = vector.broadcast %109 : vector<1x1x4xf32> to vector<8x16x4xf32>
    %114 = arith.mulf %112, %113 : vector<8x16x4xf32>
    %115 = vector.broadcast %110 : vector<1x1x4xf32> to vector<8x16x4xf32>
    %116 = arith.addf %114, %115 : vector<8x16x4xf32>
    %cst_62 = arith.constant 0.000000e+00 : f32
    %117 = vector.broadcast %cst_62 : f32 to vector<8x16x4xf32>
    %118 = arith.maximumf %116, %117 : vector<8x16x4xf32>
    %119 = arith.truncf %118 : vector<8x16x4xf32> to vector<8x16x4xbf16>
    %c1_63 = arith.constant 1 : index
    %c1_64 = arith.constant 1 : index
    %c0_65 = arith.constant 0 : index
    %120 = vector.load %arg10[%c1_63, %c1_64, %c0_65] : memref<18x18x4xbf16, #tpu.memory_space<vmem>>, vector<8x16x4xbf16>
    tpu.vector_store %arg10[%c1_63, %c1_64, %c0_65], %119 {strides = array<i32>} : memref<18x18x4xbf16, #tpu.memory_space<vmem>>, vector<8x16x4xbf16>,
    %c9_66 = arith.constant 9 : index
    %c1_67 = arith.constant 1 : index
    %c0_68 = arith.constant 0 : index
    %121 = vector.load %arg10[%c9_66, %c1_67, %c0_68] : memref<18x18x4xbf16, #tpu.memory_space<vmem>>, vector<8x16x4xbf16>
    %122 = arith.extf %121 : vector<8x16x4xbf16> to vector<8x16x4xf32>
    %123 = vector.broadcast %109 : vector<1x1x4xf32> to vector<8x16x4xf32>
    %124 = arith.mulf %122, %123 : vector<8x16x4xf32>
    %125 = vector.broadcast %110 : vector<1x1x4xf32> to vector<8x16x4xf32>
    %126 = arith.addf %124, %125 : vector<8x16x4xf32>
    %cst_69 = arith.constant 0.000000e+00 : f32
    %127 = vector.broadcast %cst_69 : f32 to vector<8x16x4xf32>
    %128 = arith.maximumf %126, %127 : vector<8x16x4xf32>
    %129 = arith.truncf %128 : vector<8x16x4xf32> to vector<8x16x4xbf16>
    %c9_70 = arith.constant 9 : index
    %c1_71 = arith.constant 1 : index
    %c0_72 = arith.constant 0 : index
    %130 = vector.load %arg10[%c9_70, %c1_71, %c0_72] : memref<18x18x4xbf16, #tpu.memory_space<vmem>>, vector<8x16x4xbf16>
    tpu.vector_store %arg10[%c9_70, %c1_71, %c0_72], %129 {strides = array<i32>} : memref<18x18x4xbf16, #tpu.memory_space<vmem>>, vector<8x16x4xbf16>,
    %c2_73 = arith.constant 2 : index
    %c1_74 = arith.constant 1 : index
    %c0_75 = arith.constant 0 : index
    %131 = vector.load %arg10[%c2_73, %c1_74, %c0_75] : memref<18x18x4xbf16, #tpu.memory_space<vmem>>, vector<1x16x4xbf16>
    %c0_76 = arith.constant 0 : index
    %c1_77 = arith.constant 1 : index
    %c0_78 = arith.constant 0 : index
    %132 = vector.load %arg10[%c0_76, %c1_77, %c0_78] : memref<18x18x4xbf16, #tpu.memory_space<vmem>>, vector<1x16x4xbf16>
    tpu.vector_store %arg10[%c0_76, %c1_77, %c0_78], %131 {strides = array<i32>} : memref<18x18x4xbf16, #tpu.memory_space<vmem>>, vector<1x16x4xbf16>,
    %c15_79 = arith.constant 15 : index
    %c1_80 = arith.constant 1 : index
    %c0_81 = arith.constant 0 : index
    %133 = vector.load %arg10[%c15_79, %c1_80, %c0_81] : memref<18x18x4xbf16, #tpu.memory_space<vmem>>, vector<1x16x4xbf16>
    %c17_82 = arith.constant 17 : index
    %c1_83 = arith.constant 1 : index
    %c0_84 = arith.constant 0 : index
    %134 = vector.load %arg10[%c17_82, %c1_83, %c0_84] : memref<18x18x4xbf16, #tpu.memory_space<vmem>>, vector<1x16x4xbf16>
    tpu.vector_store %arg10[%c17_82, %c1_83, %c0_84], %133 {strides = array<i32>} : memref<18x18x4xbf16, #tpu.memory_space<vmem>>, vector<1x16x4xbf16>,
    %c0_85 = arith.constant 0 : index
    %c2_86 = arith.constant 2 : index
    %c0_87 = arith.constant 0 : index
    %135 = vector.load %arg10[%c0_85, %c2_86, %c0_87] : memref<18x18x4xbf16, #tpu.memory_space<vmem>>, vector<18x1x4xbf16>
    %c0_88 = arith.constant 0 : index
    %c0_89 = arith.constant 0 : index
    %c0_90 = arith.constant 0 : index
    %136 = vector.load %arg10[%c0_88, %c0_89, %c0_90] : memref<18x18x4xbf16, #tpu.memory_space<vmem>>, vector<18x1x4xbf16>
    tpu.vector_store %arg10[%c0_88, %c0_89, %c0_90], %135 {strides = array<i32>} : memref<18x18x4xbf16, #tpu.memory_space<vmem>>, vector<18x1x4xbf16>,
    %c0_91 = arith.constant 0 : index
    %c15_92 = arith.constant 15 : index
    %c0_93 = arith.constant 0 : index
    %137 = vector.load %arg10[%c0_91, %c15_92, %c0_93] : memref<18x18x4xbf16, #tpu.memory_space<vmem>>, vector<18x1x4xbf16>
    %c0_94 = arith.constant 0 : index
    %c17_95 = arith.constant 17 : index
    %c0_96 = arith.constant 0 : index
    %138 = vector.load %arg10[%c0_94, %c17_95, %c0_96] : memref<18x18x4xbf16, #tpu.memory_space<vmem>>, vector<18x1x4xbf16>
    tpu.vector_store %arg10[%c0_94, %c17_95, %c0_96], %137 {strides = array<i32>} : memref<18x18x4xbf16, #tpu.memory_space<vmem>>, vector<18x1x4xbf16>,
    %cst_97 = arith.constant 0.000000e+00 : f32
    %139 = vector.broadcast %cst_97 : f32 to vector<1x4xf32>
    %cst_98 = arith.constant 0.000000e+00 : f32
    %140 = vector.broadcast %cst_98 : f32 to vector<1x4xf32>
    %c0_99 = arith.constant 0 : index
    %c0_100 = arith.constant 0 : index
    %c0_101 = arith.constant 0 : index
    %141 = vector.load %arg10[%c0_99, %c0_100, %c0_101] : memref<18x18x4xbf16, #tpu.memory_space<vmem>>, vector<10x18x4xbf16>
    %142 = vector.extract_strided_slice %141 {offsets = [0, 0, 0], sizes = [10, 16, 4], strides = [1, 1, 1]} : vector<10x18x4xbf16> to vector<10x16x4xbf16>
    %143 = vector.extract_strided_slice %141 {offsets = [0, 1, 0], sizes = [10, 16, 4], strides = [1, 1, 1]} : vector<10x18x4xbf16> to vector<10x16x4xbf16>
    %144 = vector.extract_strided_slice %141 {offsets = [0, 2, 0], sizes = [10, 16, 4], strides = [1, 1, 1]} : vector<10x18x4xbf16> to vector<10x16x4xbf16>
    %145 = tpu.concatenate %142, %143, %144 in 2 : vector<10x16x4xbf16>, vector<10x16x4xbf16>, vector<10x16x4xbf16> -> vector<10x16x12xbf16>
    %cst_102 = arith.constant 0.000000e+00 : f32
    %146 = vector.broadcast %cst_102 : f32 to vector<128x4xf32>
    %147 = vector.extract_strided_slice %145 {offsets = [0, 0, 0], sizes = [8, 16, 12], strides = [1, 1, 1]} : vector<10x16x12xbf16> to vector<8x16x12xbf16>
    %148 = vector.shape_cast %147 : vector<8x16x12xbf16> to vector<128x12xbf16>
    %149 = vector.extract_strided_slice %1 {offsets = [0, 0, 0], sizes = [1, 12, 4], strides = [1, 1, 1]} : vector<3x12x4xbf16> to vector<1x12x4xbf16>
    %150 = vector.shape_cast %149 : vector<1x12x4xbf16> to vector<12x4xbf16>
    %cst_103 = arith.constant dense<0.000000e+00> : vector<128x4xf32>
    %151 = tpu.matmul %148, %150, %cst_103 {dimension_numbers = #tpu.dot_dimension_numbers<[1], [0], [0], [1], [0, 0, 1, 1], [], []>} : vector<128x12xbf16>, vector<12x4xbf16>, vector<128x4xf32> -> vector<128x4xf32>
    %152 = arith.addf %146, %151 : vector<128x4xf32>
    %153 = vector.extract_strided_slice %145 {offsets = [1, 0, 0], sizes = [8, 16, 12], strides = [1, 1, 1]} : vector<10x16x12xbf16> to vector<8x16x12xbf16>
    %154 = vector.shape_cast %153 : vector<8x16x12xbf16> to vector<128x12xbf16>
    %155 = vector.extract_strided_slice %1 {offsets = [1, 0, 0], sizes = [1, 12, 4], strides = [1, 1, 1]} : vector<3x12x4xbf16> to vector<1x12x4xbf16>
    %156 = vector.shape_cast %155 : vector<1x12x4xbf16> to vector<12x4xbf16>
    %cst_104 = arith.constant dense<0.000000e+00> : vector<128x4xf32>
    %157 = tpu.matmul %154, %156, %cst_104 {dimension_numbers = #tpu.dot_dimension_numbers<[1], [0], [0], [1], [0, 0, 1, 1], [], []>} : vector<128x12xbf16>, vector<12x4xbf16>, vector<128x4xf32> -> vector<128x4xf32>
    %158 = arith.addf %152, %157 : vector<128x4xf32>
    %159 = vector.extract_strided_slice %145 {offsets = [2, 0, 0], sizes = [8, 16, 12], strides = [1, 1, 1]} : vector<10x16x12xbf16> to vector<8x16x12xbf16>
    %160 = vector.shape_cast %159 : vector<8x16x12xbf16> to vector<128x12xbf16>
    %161 = vector.extract_strided_slice %1 {offsets = [2, 0, 0], sizes = [1, 12, 4], strides = [1, 1, 1]} : vector<3x12x4xbf16> to vector<1x12x4xbf16>
    %162 = vector.shape_cast %161 : vector<1x12x4xbf16> to vector<12x4xbf16>
    %cst_105 = arith.constant dense<0.000000e+00> : vector<128x4xf32>
    %163 = tpu.matmul %160, %162, %cst_105 {dimension_numbers = #tpu.dot_dimension_numbers<[1], [0], [0], [1], [0, 0, 1, 1], [], []>} : vector<128x12xbf16>, vector<12x4xbf16>, vector<128x4xf32> -> vector<128x4xf32>
    %164 = arith.addf %158, %163 : vector<128x4xf32>
    %cst_106 = arith.constant dense<0.000000e+00> : vector<4xf32>
    %165 = vector.multi_reduction <add>, %164, %cst_106 [0] : vector<128x4xf32> to vector<4xf32>
    %166 = vector.shape_cast %165 : vector<4xf32> to vector<1x4xf32>
    %cst_107 = arith.constant 1.280000e+02 : f32
    %167 = vector.broadcast %cst_107 : f32 to vector<1x4xf32>
    %168 = arith.divf %166, %167 : vector<1x4xf32>
    %169 = vector.broadcast %168 : vector<1x4xf32> to vector<128x4xf32>
    %170 = arith.subf %164, %169 : vector<128x4xf32>
    %cst_108 = arith.constant dense<0.000000e+00> : vector<4xf32>
    %171 = vector.multi_reduction <add>, %170, %cst_108 [0] : vector<128x4xf32> to vector<4xf32>
    %172 = vector.shape_cast %171 : vector<4xf32> to vector<1x4xf32>
    %173 = arith.addf %139, %172 : vector<1x4xf32>
    %174 = arith.mulf %170, %170 : vector<128x4xf32>
    %cst_109 = arith.constant dense<0.000000e+00> : vector<4xf32>
    %175 = vector.multi_reduction <add>, %174, %cst_109 [0] : vector<128x4xf32> to vector<4xf32>
    %176 = vector.shape_cast %175 : vector<4xf32> to vector<1x4xf32>
    %177 = arith.addf %140, %176 : vector<1x4xf32>
    %178 = vector.shape_cast %164 : vector<128x4xf32> to vector<8x16x4xf32>
    %c0_110 = arith.constant 0 : index
    %c0_111 = arith.constant 0 : index
    %c0_112 = arith.constant 0 : index
    %c0_113 = arith.constant 0 : index
    %179 = vector.load %arg8[%c0_110, %c0_111, %c0_112, %c0_113] : memref<1x16x16x4xf32, #tpu.memory_space<vmem>>, vector<1x8x16x4xf32>
    %180 = vector.shape_cast %179 : vector<1x8x16x4xf32> to vector<8x16x4xf32>
    %181 = vector.shape_cast %178 : vector<8x16x4xf32> to vector<1x8x16x4xf32>
    tpu.vector_store %arg8[%c0_110, %c0_111, %c0_112, %c0_113], %181 {strides = array<i32>} : memref<1x16x16x4xf32, #tpu.memory_space<vmem>>, vector<1x8x16x4xf32>,
    %c8_114 = arith.constant 8 : index
    %c0_115 = arith.constant 0 : index
    %c0_116 = arith.constant 0 : index
    %182 = vector.load %arg10[%c8_114, %c0_115, %c0_116] : memref<18x18x4xbf16, #tpu.memory_space<vmem>>, vector<10x18x4xbf16>
    %183 = vector.extract_strided_slice %182 {offsets = [0, 0, 0], sizes = [10, 16, 4], strides = [1, 1, 1]} : vector<10x18x4xbf16> to vector<10x16x4xbf16>
    %184 = vector.extract_strided_slice %182 {offsets = [0, 1, 0], sizes = [10, 16, 4], strides = [1, 1, 1]} : vector<10x18x4xbf16> to vector<10x16x4xbf16>
    %185 = vector.extract_strided_slice %182 {offsets = [0, 2, 0], sizes = [10, 16, 4], strides = [1, 1, 1]} : vector<10x18x4xbf16> to vector<10x16x4xbf16>
    %186 = tpu.concatenate %183, %184, %185 in 2 : vector<10x16x4xbf16>, vector<10x16x4xbf16>, vector<10x16x4xbf16> -> vector<10x16x12xbf16>
    %cst_117 = arith.constant 0.000000e+00 : f32
    %187 = vector.broadcast %cst_117 : f32 to vector<128x4xf32>
    %188 = vector.extract_strided_slice %186 {offsets = [0, 0, 0], sizes = [8, 16, 12], strides = [1, 1, 1]} : vector<10x16x12xbf16> to vector<8x16x12xbf16>
    %189 = vector.shape_cast %188 : vector<8x16x12xbf16> to vector<128x12xbf16>
    %190 = vector.extract_strided_slice %1 {offsets = [0, 0, 0], sizes = [1, 12, 4], strides = [1, 1, 1]} : vector<3x12x4xbf16> to vector<1x12x4xbf16>
    %191 = vector.shape_cast %190 : vector<1x12x4xbf16> to vector<12x4xbf16>
    %cst_118 = arith.constant dense<0.000000e+00> : vector<128x4xf32>
    %192 = tpu.matmul %189, %191, %cst_118 {dimension_numbers = #tpu.dot_dimension_numbers<[1], [0], [0], [1], [0, 0, 1, 1], [], []>} : vector<128x12xbf16>, vector<12x4xbf16>, vector<128x4xf32> -> vector<128x4xf32>
    %193 = arith.addf %187, %192 : vector<128x4xf32>
    %194 = vector.extract_strided_slice %186 {offsets = [1, 0, 0], sizes = [8, 16, 12], strides = [1, 1, 1]} : vector<10x16x12xbf16> to vector<8x16x12xbf16>
    %195 = vector.shape_cast %194 : vector<8x16x12xbf16> to vector<128x12xbf16>
    %196 = vector.extract_strided_slice %1 {offsets = [1, 0, 0], sizes = [1, 12, 4], strides = [1, 1, 1]} : vector<3x12x4xbf16> to vector<1x12x4xbf16>
    %197 = vector.shape_cast %196 : vector<1x12x4xbf16> to vector<12x4xbf16>
    %cst_119 = arith.constant dense<0.000000e+00> : vector<128x4xf32>
    %198 = tpu.matmul %195, %197, %cst_119 {dimension_numbers = #tpu.dot_dimension_numbers<[1], [0], [0], [1], [0, 0, 1, 1], [], []>} : vector<128x12xbf16>, vector<12x4xbf16>, vector<128x4xf32> -> vector<128x4xf32>
    %199 = arith.addf %193, %198 : vector<128x4xf32>
    %200 = vector.extract_strided_slice %186 {offsets = [2, 0, 0], sizes = [8, 16, 12], strides = [1, 1, 1]} : vector<10x16x12xbf16> to vector<8x16x12xbf16>
    %201 = vector.shape_cast %200 : vector<8x16x12xbf16> to vector<128x12xbf16>
    %202 = vector.extract_strided_slice %1 {offsets = [2, 0, 0], sizes = [1, 12, 4], strides = [1, 1, 1]} : vector<3x12x4xbf16> to vector<1x12x4xbf16>
    %203 = vector.shape_cast %202 : vector<1x12x4xbf16> to vector<12x4xbf16>
    %cst_120 = arith.constant dense<0.000000e+00> : vector<128x4xf32>
    %204 = tpu.matmul %201, %203, %cst_120 {dimension_numbers = #tpu.dot_dimension_numbers<[1], [0], [0], [1], [0, 0, 1, 1], [], []>} : vector<128x12xbf16>, vector<12x4xbf16>, vector<128x4xf32> -> vector<128x4xf32>
    %205 = arith.addf %199, %204 : vector<128x4xf32>
    %206 = vector.broadcast %168 : vector<1x4xf32> to vector<128x4xf32>
    %207 = arith.subf %205, %206 : vector<128x4xf32>
    %cst_121 = arith.constant dense<0.000000e+00> : vector<4xf32>
    %208 = vector.multi_reduction <add>, %207, %cst_121 [0] : vector<128x4xf32> to vector<4xf32>
    %209 = vector.shape_cast %208 : vector<4xf32> to vector<1x4xf32>
    %210 = arith.addf %173, %209 : vector<1x4xf32>
    %211 = arith.mulf %207, %207 : vector<128x4xf32>
    %cst_122 = arith.constant dense<0.000000e+00> : vector<4xf32>
    %212 = vector.multi_reduction <add>, %211, %cst_122 [0] : vector<128x4xf32> to vector<4xf32>
    %213 = vector.shape_cast %212 : vector<4xf32> to vector<1x4xf32>
    %214 = arith.addf %177, %213 : vector<1x4xf32>
    %215 = vector.shape_cast %205 : vector<128x4xf32> to vector<8x16x4xf32>
    %c0_123 = arith.constant 0 : index
    %c8_124 = arith.constant 8 : index
    %c0_125 = arith.constant 0 : index
    %c0_126 = arith.constant 0 : index
    %216 = vector.load %arg8[%c0_123, %c8_124, %c0_125, %c0_126] : memref<1x16x16x4xf32, #tpu.memory_space<vmem>>, vector<1x8x16x4xf32>
    %217 = vector.shape_cast %216 : vector<1x8x16x4xf32> to vector<8x16x4xf32>
    %218 = vector.shape_cast %215 : vector<8x16x4xf32> to vector<1x8x16x4xf32>
    tpu.vector_store %arg8[%c0_123, %c8_124, %c0_125, %c0_126], %218 {strides = array<i32>} : memref<1x16x16x4xf32, #tpu.memory_space<vmem>>, vector<1x8x16x4xf32>,
    %c0_127 = arith.constant 0 : index
    %c0_128 = arith.constant 0 : index
    %219 = vector.load %arg6[%c0_127, %c0_128] : memref<1x4xf32, #tpu.memory_space<vmem>>, vector<1x4xf32>
    %c0_129 = arith.constant 0 : index
    %c0_130 = arith.constant 0 : index
    %220 = vector.load %arg7[%c0_129, %c0_130] : memref<1x4xf32, #tpu.memory_space<vmem>>, vector<1x4xf32>
    %cst_131 = arith.constant 3.906250e-03 : f32
    %221 = vector.broadcast %cst_131 : f32 to vector<1x4xf32>
    %222 = arith.mulf %210, %221 : vector<1x4xf32>
    %223 = arith.addf %168, %222 : vector<1x4xf32>
    %cst_132 = arith.constant 3.906250e-03 : f32
    %224 = vector.broadcast %cst_132 : f32 to vector<1x4xf32>
    %225 = arith.mulf %214, %224 : vector<1x4xf32>
    %226 = arith.mulf %222, %222 : vector<1x4xf32>
    %227 = arith.subf %225, %226 : vector<1x4xf32>
    %cst_133 = arith.constant 0.000000e+00 : f32
    %228 = vector.broadcast %cst_133 : f32 to vector<1x4xf32>
    %229 = arith.maximumf %227, %228 : vector<1x4xf32>
    %cst_134 = arith.constant 9.99999974E-6 : f32
    %230 = vector.broadcast %cst_134 : f32 to vector<1x4xf32>
    %231 = arith.addf %229, %230 : vector<1x4xf32>
    %232 = math.rsqrt %231 : vector<1x4xf32>
    %233 = arith.mulf %219, %232 : vector<1x4xf32>
    %234 = arith.mulf %223, %233 : vector<1x4xf32>
    %235 = arith.subf %220, %234 : vector<1x4xf32>
    %236 = vector.shape_cast %233 : vector<1x4xf32> to vector<1x1x4xf32>
    %237 = vector.shape_cast %235 : vector<1x4xf32> to vector<1x1x4xf32>
    %c0_135 = arith.constant 0 : index
    %c0_136 = arith.constant 0 : index
    %c0_137 = arith.constant 0 : index
    %c0_138 = arith.constant 0 : index
    %238 = vector.load %arg8[%c0_135, %c0_136, %c0_137, %c0_138] : memref<1x16x16x4xf32, #tpu.memory_space<vmem>>, vector<1x8x16x4xf32>
    %239 = vector.shape_cast %238 : vector<1x8x16x4xf32> to vector<8x16x4xf32>
    %c0_139 = arith.constant 0 : index
    %c0_140 = arith.constant 0 : index
    %c0_141 = arith.constant 0 : index
    %c0_142 = arith.constant 0 : index
    %240 = vector.load %arg1[%c0_139, %c0_140, %c0_141, %c0_142] : memref<1x16x16x4xf32, #tpu.memory_space<vmem>>, vector<1x8x16x4xf32>
    %241 = vector.shape_cast %240 : vector<1x8x16x4xf32> to vector<8x16x4xf32>
    %242 = vector.broadcast %236 : vector<1x1x4xf32> to vector<8x16x4xf32>
    %243 = arith.mulf %239, %242 : vector<8x16x4xf32>
    %244 = vector.broadcast %237 : vector<1x1x4xf32> to vector<8x16x4xf32>
    %245 = arith.addf %243, %244 : vector<8x16x4xf32>
    %246 = arith.addf %245, %241 : vector<8x16x4xf32>
    %c0_143 = arith.constant 0 : index
    %c0_144 = arith.constant 0 : index
    %c0_145 = arith.constant 0 : index
    %c0_146 = arith.constant 0 : index
    %247 = vector.load %arg8[%c0_143, %c0_144, %c0_145, %c0_146] : memref<1x16x16x4xf32, #tpu.memory_space<vmem>>, vector<1x8x16x4xf32>
    %248 = vector.shape_cast %247 : vector<1x8x16x4xf32> to vector<8x16x4xf32>
    %249 = vector.shape_cast %246 : vector<8x16x4xf32> to vector<1x8x16x4xf32>
    tpu.vector_store %arg8[%c0_143, %c0_144, %c0_145, %c0_146], %249 {strides = array<i32>} : memref<1x16x16x4xf32, #tpu.memory_space<vmem>>, vector<1x8x16x4xf32>,
    %c0_147 = arith.constant 0 : index
    %c8_148 = arith.constant 8 : index
    %c0_149 = arith.constant 0 : index
    %c0_150 = arith.constant 0 : index
    %250 = vector.load %arg8[%c0_147, %c8_148, %c0_149, %c0_150] : memref<1x16x16x4xf32, #tpu.memory_space<vmem>>, vector<1x8x16x4xf32>
    %251 = vector.shape_cast %250 : vector<1x8x16x4xf32> to vector<8x16x4xf32>
    %c0_151 = arith.constant 0 : index
    %c8_152 = arith.constant 8 : index
    %c0_153 = arith.constant 0 : index
    %c0_154 = arith.constant 0 : index
    %252 = vector.load %arg1[%c0_151, %c8_152, %c0_153, %c0_154] : memref<1x16x16x4xf32, #tpu.memory_space<vmem>>, vector<1x8x16x4xf32>
    %253 = vector.shape_cast %252 : vector<1x8x16x4xf32> to vector<8x16x4xf32>
    %254 = vector.broadcast %236 : vector<1x1x4xf32> to vector<8x16x4xf32>
    %255 = arith.mulf %251, %254 : vector<8x16x4xf32>
    %256 = vector.broadcast %237 : vector<1x1x4xf32> to vector<8x16x4xf32>
    %257 = arith.addf %255, %256 : vector<8x16x4xf32>
    %258 = arith.addf %257, %253 : vector<8x16x4xf32>
    %c0_155 = arith.constant 0 : index
    %c8_156 = arith.constant 8 : index
    %c0_157 = arith.constant 0 : index
    %c0_158 = arith.constant 0 : index
    %259 = vector.load %arg8[%c0_155, %c8_156, %c0_157, %c0_158] : memref<1x16x16x4xf32, #tpu.memory_space<vmem>>, vector<1x8x16x4xf32>
    %260 = vector.shape_cast %259 : vector<1x8x16x4xf32> to vector<8x16x4xf32>
    %261 = vector.shape_cast %258 : vector<8x16x4xf32> to vector<1x8x16x4xf32>
    tpu.vector_store %arg8[%c0_155, %c8_156, %c0_157, %c0_158], %261 {strides = array<i32>} : memref<1x16x16x4xf32, #tpu.memory_space<vmem>>, vector<1x8x16x4xf32>,
    return
  }
  func.func @transform_0(%arg0: i32) -> (i32, i32, i32, i32) {
    %c0_i32 = arith.constant 0 : i32
    %c0_i32_0 = arith.constant 0 : i32
    %c0_i32_1 = arith.constant 0 : i32
    %c0_i32_2 = arith.constant 0 : i32
    return %arg0, %c0_i32, %c0_i32_0, %c0_i32_1 : i32, i32, i32, i32
  }
  func.func @transform_1(%arg0: i32) -> (i32, i32, i32) {
    %c0_i32 = arith.constant 0 : i32
    %c0_i32_0 = arith.constant 0 : i32
    %c0_i32_1 = arith.constant 0 : i32
    %c0_i32_2 = arith.constant 0 : i32
    return %c0_i32, %c0_i32_0, %c0_i32_1 : i32, i32, i32
  }
  func.func @transform_2(%arg0: i32) -> (i32, i32) {
    %c0_i32 = arith.constant 0 : i32
    %c0_i32_0 = arith.constant 0 : i32
    %c0_i32_1 = arith.constant 0 : i32
    return %c0_i32, %c0_i32_0 : i32, i32
  }
  func.func @transform_3(%arg0: i32) -> (i32, i32) {
    %c0_i32 = arith.constant 0 : i32
    %c0_i32_0 = arith.constant 0 : i32
    %c0_i32_1 = arith.constant 0 : i32
    return %c0_i32, %c0_i32_0 : i32, i32
  }
  func.func @transform_4(%arg0: i32) -> (i32, i32, i32) {
    %c0_i32 = arith.constant 0 : i32
    %c0_i32_0 = arith.constant 0 : i32
    %c0_i32_1 = arith.constant 0 : i32
    %c0_i32_2 = arith.constant 0 : i32
    return %c0_i32, %c0_i32_0, %c0_i32_1 : i32, i32, i32
  }
  func.func @transform_5(%arg0: i32) -> (i32, i32) {
    %c0_i32 = arith.constant 0 : i32
    %c0_i32_0 = arith.constant 0 : i32
    %c0_i32_1 = arith.constant 0 : i32
    return %c0_i32, %c0_i32_0 : i32, i32
  }
  func.func @transform_6(%arg0: i32) -> (i32, i32) {
    %c0_i32 = arith.constant 0 : i32
    %c0_i32_0 = arith.constant 0 : i32
    %c0_i32_1 = arith.constant 0 : i32
    return %c0_i32, %c0_i32_0 : i32, i32
  }
  func.func @transform_7(%arg0: i32) -> (i32, i32, i32, i32) {
    %c0_i32 = arith.constant 0 : i32
    %c0_i32_0 = arith.constant 0 : i32
    %c0_i32_1 = arith.constant 0 : i32
    %c0_i32_2 = arith.constant 0 : i32
    return %arg0, %c0_i32, %c0_i32_0, %c0_i32_1 : i32, i32, i32, i32
  }
}

</mosaic_0001>

<bundles_post_ra>
// kernel: tpu_custom_call.1
= control target key start
LH: loop header
LB: loop body
LE: loop exit
PB: predicated region body
PF: predicated region fallthrough
CT: control target
= control target key end

     0   :  { %s5864_s24 = smov 0   ;;  %s8697_s0 = inlined_call_operand.vmem [shape: f32[2,16,16,4], index: 0, kind: input, shape index: {}]   ;;  %s8698_s1 = inlined_call_operand.vmem [shape: bf16[3,12,4], index: 1, kind: input, shape index: {}]   ;;  %s8699_s2 = inlined_call_operand.vmem [shape: f32[1,4], index: 2, kind: input, shape index: {}]   ;;  %s8700_s3 = inlined_call_operand.vmem [shape: f32[1,4], index: 3, kind: input, shape index: {}]   ;;  %s8701_s4 = inlined_call_operand.vmem [shape: bf16[3,12,4], index: 4, kind: input, shape index: {}]   ;;  %s8702_s5 = inlined_call_operand.vmem [shape: f32[1,4], index: 5, kind: input, shape index: {}]   ;;  %s8703_s6 = inlined_call_operand.vmem [shape: f32[1,4], index: 6, kind: input, shape index: {}]   ;;  %s8704_s7 = inlined_call_operand.vmem [shape: f32[2,16,16,4], index: 7, kind: output, shape index: {}]  }
   0x1 LB: > { %s5277_s25 = sadd.s32 4294967295, %s5819_s24   ;;  %p5281_p0 = scmp.ge.s32.totalorder %s5819_s24, 1  ;;  %s5819_s24 = sphi %s5864_s24, %s17_s24  }
   0x2   : > { %p237_p1 = scmp.lt.s32.totalorder %s5819_s24, 3 }
   0x4   : > { %p238_p2 = pnand %p5281_p0, %p237_p1 }
   0x6   : > { %241 = sbr.rel (%p238_p2) target bundleno = 1352 (0x548), region = 48 }
   0xb   : > { %p269_p3 = scmp.lt.s32.totalorder %s5277_s25, 1  ;;  %vm356_vm0 = vsmask.f32 256  ;;  %vm357_vm1 = vsmask.f32 4368  ;;  %vm680_vm2 = vcmask 27648  }
   0xc   : > { %vm681_vm3 = vsmask.f32 7938  ;;  %vm688_vm4 = vcmask 24576   ;;  %vm5890_vm5 = vmor %vm356_vm0, %vm357_vm1  ;;  %v798_v24 = vld [vmem:[#allocation2] sm:$0xf]  ;;  %vm1353_vm10 = vcmask 1046528  }
   0xd   : > { %s8760_s25 = smov (!%p269_p3, %s5277_s25), 1  ;;  %vm5898_vm6 = vmand %vm680_vm2, %vm681_vm3  ;;  %v802_v28 = vld [vmem:[#allocation2 + $0x8] sm:$0x1]  ;;  %v683_v41 = vld [vmem:[#allocation2 + $0xc] sm:$0xf]  ;;  %s5821_s30 = smov 4  }
   0xe   : > { %s5704_s26 = sshll.u32 %s8760_s25, 8  ;;  %vm5904_vm7 = vmand %vm688_vm4, %vm356_vm0  ;;  %v690_v45 = vld [vmem:[#allocation2 + $0x14] sm:$0x1]  ;;  %v700_v48 = vld [vmem:[#allocation2 + $0x24] sm:$0xf]  ;;  %s5822_s8 = smov 8  }
   0xf   : > { %s5880_s29 = scalar_lea.vmem %s8697_s0, %s5704_s26  ;;  %v704_v59 = vld [vmem:[#allocation2 + $0x2c] sm:$0x1]  ;;  %v693_v62 = vld [vmem:[#allocation2 + $0x18] sm:$0xf]  ;;  %vm5937_vm8 = vmand %vm688_vm4, %vm681_vm3  ;;  %vm1212_vm9 = vsmask.f32 7424  ;;  %s8108_s20 = scalar_lea.vmem %s8704_s7, %s5704_s26 }
  0x10   : > { %v294_v0 = vld [vmem:[%s5880_s29 + $0x10] sm:$0xff]  ;;  %v295_v1 = vld [vmem:[%s5880_s29 + $0x18] sm:$0xff]  ;;  %v292_v2 = vld [vmem:[%s5880_s29] sm:$0xff]  ;;  %vm1468_vm11 = vcmask 1045504   ;;  %vm1404_vm12 = vcmask 31744   ;;  %vm1425_vm13 = vcmask 64512  }
  0x11   : > { %v326_v3 = vpack.c.bf16 %v294_v0, %v294_v0  ;;  %v327_v4 = vpack.c.bf16 %v295_v1, %v295_v1  ;;  %v293_v5 = vld [vmem:[%s5880_s29 + $0x8] sm:$0xff]  ;;  %v324_v6 = vpack.c.bf16 %v292_v2, %v292_v2  ;;  %v296_v7 = vld [vmem:[%s5880_s29 + $0x20] sm:$0xff]  ;;  %v298_v52 = vld [vmem:[%s5880_s29 + $0x30] sm:$0xff]  ;;  %vm1451_vm14 = vcmask 97280  }
  0x12   : > { %v297_v8 = vld [vmem:[%s5880_s29 + $0x28] sm:$0xff]  ;;  %v325_v9 = vpack.c.bf16 %v293_v5, %v293_v5  ;;  %v328_v10 = vpack.c.bf16 %v296_v7, %v296_v7  ;;  %v299_v53 = vld [vmem:[%s5880_s29 + $0x38] sm:$0xff]  ;;  %v330_v57 = vpack.c.bf16 %v298_v52, %v298_v52  ;;  %v697_v2 = vld [vmem:[#allocation2 + $0x20] sm:$0x1] }
  0x13   : > { %v329_v11 = vpack.c.bf16 %v297_v8, %v297_v8  ;;  %v377_v12 = vshrl.u32 %v326_v3, 16  ;;  %v380_v13 = vshll.u32 %v326_v3, 16  ;;  %v385_v14 = vshrl.u32 %v327_v4, 16 }
  0x14   : > { %v388_v15 = vshll.u32 %v327_v4, 16  ;;  %v360_v17 = vshrl.u32 %v324_v6, 16  ;;  %v363_v18 = vshll.u32 %v324_v6, 16  ;;  %v368_v19 = vshrl.u32 %v325_v9, 16 }
  0x15   : > { %v371_v20 = vshll.u32 %v325_v9, 16  ;;  %v379_v21 = vrot.slane %v377_v12, 7  ;;  %v5894_v22 = vrot.slane %v385_v14, 7  ;;  %v394_v25 = vshrl.u32 %v328_v10, 16 }
  0x16   : > { %v397_v26 = vshll.u32 %v328_v10, 16  ;;  %v362_v29 = vrot.slane %v360_v17, 7  ;;  %v370_v30 = vrot.slane %v368_v19, 7  ;;  %v402_v31 = vshrl.u32 %v329_v11, 16 }
  0x17   : > { %v405_v32 = vshll.u32 %v329_v11, 16  ;;  %v382_v33 = vor.u32 %v380_v13, %v379_v21  ;;  %v383_v34 = vrot.slane %v379_v21, 4  ;;  %v390_v35 = vor.u32 %v388_v15, %v5894_v22 }
  0x18   : > { %v392_v36 = vrot.slane %v5894_v22, 4  ;;  %v365_v37 = vor.u32 %v363_v18, %v362_v29  ;;  %v366_v38 = vrot.slane %v362_v29, 4  ;;  %v373_v39 = vor.u32 %v371_v20, %v370_v30 }
  0x19   : > { %v375_v40 = vrot.slane %v370_v30, 4  ;;  %v391_v42 = vsel %vm5890_vm5, %v383_v34, %v390_v35  ;;  %v799_v43 = vsel %vm5898_vm6, %v382_v33, %v798_v24  ;;  %v396_v46 = vrot.slane %v394_v25, 7 }
  0x1a   : > { %v803_v44 = vsel %vm5904_vm7, %v392_v36, %v802_v28  ;;  %800 = vst [vmem:[#allocation2] sm:$0xf] %v799_v43  ;;  %v404_v47 = vrot.slane %v402_v31, 7  ;;  %v684_v49 = vsel %vm5898_vm6, %v365_v37, %v683_v41  ;;  %v374_v54 = vsel %vm5890_vm5, %v366_v38, %v373_v39  ;;  %v707_v37 = vld [vmem:[#allocation2 + $0x30] sm:$0xf] }
  0x1b   : > { %801 = vst.msk [vmem:[#allocation2 + $0x4] sm:$0xf] %vm680_vm2, %v391_v42  ;;  %v399_v50 = vor.u32 %v397_v26, %v396_v46  ;;  %v400_v51 = vrot.slane %v396_v46, 4  ;;  %v691_v58 = vsel %vm5904_vm7, %v375_v40, %v690_v45  ;;  %v331_v60 = vpack.c.bf16 %v299_v53, %v299_v53  ;;  %v301_v45 = vld [vmem:[%s5880_s29 + $0x48] sm:$0xff] }
  0x1c   : > { %804 = vst [vmem:[#allocation2 + $0x8] sm:$0x1] %v803_v44  ;;  %v407_v55 = vor.u32 %v405_v32, %v404_v47  ;;  %v409_v56 = vrot.slane %v404_v47, 4  ;;  %v411_v63 = vshrl.u32 %v330_v57, 16  ;;  %v694_v7 = vsel %vm5898_vm6, %v382_v33, %v693_v62 }
  0x1d   : > { %696 = vst.msk [vmem:[#allocation2 + $0x1c] sm:$0xf] %vm680_vm2, %v391_v42  ;;  %v701_v61 = vsel %vm5898_vm6, %v399_v50, %v700_v48  ;;  %v419_v4 = vshrl.u32 %v331_v60, 16  ;;  %v8714_v10 = vmov 0  ;;  %v422_v11 = vshll.u32 %v331_v60, 16  ;;  %v300_v42 = vld [vmem:[%s5880_s29 + $0x40] sm:$0xff] }
  0x1e   : > { %685 = vst [vmem:[#allocation2 + $0xc] sm:$0xf] %v684_v49  ;;  %v408_v0 = vsel %vm5890_vm5, %v400_v51, %v407_v55  ;;  %v705_v1 = vsel %vm5904_vm7, %v409_v56, %v704_v59  ;;  %v413_v3 = vrot.slane %v411_v63, 7  ;;  %v8715_v10 = vsel %vm5937_vm8, 4294967295, %v8714_v10  ;;  %v711_v55 = vld [vmem:[#allocation2 + $0x38] sm:$0x1] }
  0x1f   : > { %687 = vst.msk [vmem:[#allocation2 + $0x10] sm:$0xf] %vm680_vm2, %v374_v54  ;;  %v414_v14 = vshll.u32 %v330_v57, 16  ;;  %v698_v17 = vsel %vm5904_vm7, %v392_v36, %v697_v2  ;;  %v421_v20 = vrot.slane %v419_v4, 7  ;;  %v5956_v46 = vpack.c.bf16 %v300_v42, %v300_v42 }
  0x20   : > { %692 = vst [vmem:[#allocation2 + $0x14] sm:$0x1] %v691_v58  ;;  %v417_v19 = vrot.slane %v413_v3, 4  ;;  %v333_v50 = vpack.c.bf16 %v301_v45, %v301_v45 }
  0x21   : > { %v813_v5 = vld [vmem:[#allocation2] sm:$0x2]  ;;  %v903_v6 = vld [vmem:[#allocation2] sm:$0x1]  ;;  %702 = vst [vmem:[#allocation2 + $0x24] sm:$0xf] %v701_v61  ;;  %v416_v25 = vor.u32 %v414_v14, %v413_v3  ;;  %v424_v36 = vor.u32 %v422_v11, %v421_v20 }
  0x22   : > { %v5286_v8 = vrot.slane %v813_v5, 9  ;;  %v957_v9 = vld [vmem:[#allocation2 + $0x4] sm:$0x8]  ;;  %8716 = vst [vmem:[#allocation4_spill] sm:$0xff] %v8715_v10  ;;  %v426_v32 = vrot.slane %v421_v20, 4  ;;  %v428_v57 = vshrl.u32 %v5956_v46, 16 }
  0x23   : > { %703 = vst.msk [vmem:[#allocation2 + $0x28] sm:$0xf] %vm680_vm2, %v408_v0  ;;  %v5304_v12 = vrot.slane %v957_v9, 11  ;;  %v1048_v13 = vld [vmem:[#allocation2 + $0x8] sm:$0x1]  ;;  %v708_v41 = vsel %vm5898_vm6, %v416_v25, %v707_v37  ;;  %v425_v54 = vsel %vm5890_vm5, %v417_v19, %v424_v36  ;;  %v436_v58 = vshrl.u32 %v333_v50, 16 }
  0x24   : > { %706 = vst [vmem:[#allocation2 + $0x2c] sm:$0x1] %v705_v1  ;;  %v904_v15 = vsel %vm5904_vm7, %v5286_v8, %v903_v6  ;;  %v959_v18 = vld [vmem:[#allocation2 + $0x1c] sm:$0x8]  ;;  %v712_v1 = vsel %vm5904_vm7, %v426_v32, %v711_v55  ;;  %v430_v2 = vrot.slane %v428_v57, 7  ;;  %v302_v55 = vld [vmem:[%s5880_s29 + $0x50] sm:$0xff] }
  0x25   : > { %695 = vst [vmem:[#allocation2 + $0x18] sm:$0xf] %v694_v7  ;;  %v1049_v21 = vsel %vm5937_vm8, %v5304_v12, %v1048_v13  ;;  %v814_v22 = vld [vmem:[#allocation2 + $0xc] sm:$0x2]  ;;  %v906_v24 = vld [vmem:[#allocation2 + $0xc] sm:$0x1] }
  0x26   : > { %905 = vst [vmem:[#allocation2] sm:$0x1] %v904_v15  ;;  %v5287_v26 = vrot.slane %v814_v22, 9  ;;  %v958_v28 = vld [vmem:[#allocation2 + $0x10] sm:$0x8]  ;;  %v5306_v29 = vrot.slane %v959_v18, 11 }
  0x27   : > { %1050 = vst [vmem:[#allocation2 + $0x8] sm:$0x1] %v1049_v21  ;;  %v5305_v30 = vrot.slane %v958_v28, 11  ;;  %v1051_v31 = vld [vmem:[#allocation2 + $0x14] sm:$0x1]  ;;  %v5978_v6 = vrot.slane %v436_v58, 7 }
  0x28   : > { %699 = vst [vmem:[#allocation2 + $0x20] sm:$0x1] %v698_v17  ;;  %v907_v33 = vsel %vm5904_vm7, %v5287_v26, %v906_v24  ;;  %v816_v34 = vld [vmem:[#allocation2 + $0x24] sm:$0x2]  ;;  %v912_v35 = vld [vmem:[#allocation2 + $0x24] sm:$0x1] }
  0x29   : > { %908 = vst [vmem:[#allocation2 + $0xc] sm:$0x1] %v907_v33  ;;  %v1052_v38 = vsel %vm5937_vm8, %v5305_v30, %v1051_v31  ;;  %v5289_v39 = vrot.slane %v816_v34, 9  ;;  %v439_v7 = vshll.u32 %v333_v50, 16  ;;  %v431_v15 = vshll.u32 %v5956_v46, 16 }
  0x2a   : > { %v960_v40 = vld [vmem:[#allocation2 + $0x28] sm:$0x8]  ;;  %1053 = vst [vmem:[#allocation2 + $0x14] sm:$0x1] %v1052_v38  ;;  %v434_v21 = vrot.slane %v430_v2, 4  ;;  %v443_v33 = vrot.slane %v5978_v6, 4 }
  0x2b   : > { %v5307_v43 = vrot.slane %v960_v40, 11  ;;  %v1057_v44 = vld [vmem:[#allocation2 + $0x2c] sm:$0x1]  ;;  %v913_v47 = vsel %vm5904_vm7, %v5289_v39, %v912_v35  ;;  %709 = vst [vmem:[#allocation2 + $0x30] sm:$0xf] %v708_v41 }
  0x2c   : > { %v815_v48 = vld [vmem:[#allocation2 + $0x18] sm:$0x2]  ;;  %v909_v49 = vld [vmem:[#allocation2 + $0x18] sm:$0x1]  ;;  %914 = vst [vmem:[#allocation2 + $0x24] sm:$0x1] %v913_v47 }
  0x2d   : > { %v5960_v51 = vld [vmem:[#allocation2] sm:$0xff]  ;;  %v1058_v52 = vsel %vm5937_vm8, %v5307_v43, %v1057_v44  ;;  %v5288_v53 = vrot.slane %v815_v48, 9  ;;  %710 = vst.msk [vmem:[#allocation2 + $0x34] sm:$0xf] %vm680_vm2, %v425_v54  ;;  %v714_v44 = vld [vmem:[#allocation2 + $0x3c] sm:$0xf]  ;;  %v433_v48 = vor.u32 %v431_v15, %v430_v2 }
  0x2e   : > { %v1104_v56 = vld [vmem:[#allocation2 + $0x8] sm:$0x1]  ;;  %1059 = vst [vmem:[#allocation2 + $0x2c] sm:$0x1] %v1058_v52  ;;  %v1214_v60 = vshrl.u32 %v5960_v51, 16  ;;  %v1216_v61 = vshll.u32 %v5960_v51, 16 }
  0x2f   : > { %v1192_v59 = vunpack.c.l.b16 %v1104_v56  ;;  %v1054_v62 = vld [vmem:[#allocation2 + $0x20] sm:$0x1]  ;;  %v910_v63 = vsel %vm5904_vm7, %v5288_v53, %v909_v49  ;;  %v1354_v9 = vrot.slane %v5960_v51, 1  ;;  %713 = vst [vmem:[#allocation2 + $0x38] sm:$0x1] %v712_v1  ;;  %v303_v1 = vld [vmem:[%s5880_s29 + $0x58] sm:$0xff] }
  0x30   : > { %v1055_v0 = vsel %vm5937_vm8, %v5306_v29, %v1054_v62  ;;  %v1218_v4 = vrot.slane %v1216_v61, 1  ;;  %v5976_v5 = vld [vmem:[#allocation2 + $0xc] sm:$0xff]  ;;  %911 = vst [vmem:[#allocation2 + $0x18] sm:$0x1] %v910_v63  ;;  %v441_v29 = vor.u32 %v439_v7, %v5978_v6  ;;  %v718_v54 = vld [vmem:[#allocation2 + $0x44] sm:$0x1] }
  0x31   : > { %v1202_v3 = vpack.c.b16 %v1192_v59, %v1192_v59  ;;  %v1107_v8 = vld [vmem:[#allocation2 + $0x14] sm:$0x1]  ;;  %1056 = vst [vmem:[#allocation2 + $0x20] sm:$0x1] %v1055_v0  ;;  %v1226_v17 = vshrl.u32 %v5976_v5, 16  ;;  %v1228_v18 = vshll.u32 %v5976_v5, 16 }
  0x32   : > { %v1219_v11 = vor.u32 %v1218_v4, %v1214_v60  ;;  %v1193_v13 = vunpack.c.l.b16 %v1107_v8  ;;  %v817_v14 = vld [vmem:[#allocation2 + $0x30] sm:$0x2]  ;;  %v915_v28 = vld [vmem:[#allocation2 + $0x30] sm:$0x1]  ;;  %v1357_v31 = vrot.slane %v5976_v5, 1  ;;  %v442_v49 = vsel %vm5890_vm5, %v434_v21, %v441_v29 }
  0x33   : > { %v1221_v12 = vshll.u32 %v1202_v3, 16  ;;  %v5984_v19 = vld [vmem:[#allocation2 + $0x24] sm:$0xff]  ;;  %v5290_v20 = vrot.slane %v817_v14, 9  ;;  %v1355_v25 = vrot.slane %v1202_v3, 1  ;;  %v1230_v30 = vrot.slane %v1228_v18, 1 }
  0x34   : > { %v5986_v24 = vpack.c.b16 %v1193_v13, %v1193_v13  ;;  %v1250_v36 = vshrl.u32 %v5984_v19, 16  ;;  %v1252_v37 = vshll.u32 %v5984_v19, 16  ;;  %v961_v43 = vld [vmem:[#allocation2 + $0x34] sm:$0x8]  ;;  %v1363_v51 = vrot.slane %v5984_v19, 1 }
  0x35   : > { %v1223_v22 = vrot.slane %v1221_v12, 1  ;;  %v1113_v26 = vld [vmem:[#allocation2 + $0x2c] sm:$0x1]  ;;  %v1231_v38 = vor.u32 %v1230_v30, %v1226_v17  ;;  %v916_v42 = vsel %vm5904_vm7, %v5290_v20, %v915_v28  ;;  %v1356_v57 = vsel %vm1353_vm10, %v1354_v9, %v1355_v25  ;;  %717 = vst.msk [vmem:[#allocation2 + $0x40] sm:$0xf] %vm680_vm2, %v442_v49 }
  0x36   : > { %v1195_v32 = vunpack.c.l.b16 %v1113_v26  ;;  %v1233_v35 = vshll.u32 %v5986_v24, 16  ;;  %v1358_v39 = vrot.slane %v5986_v24, 1  ;;  %v1254_v46 = vrot.slane %v1252_v37, 1  ;;  %917 = vst [vmem:[#allocation2 + $0x30] sm:$0x1] %v916_v42  ;;  %v304_v37 = vld [vmem:[%s5880_s29 + $0x60] sm:$0xff] }
  0x37   : > { %v1224_v34 = vsel %vm1212_vm9, %v1219_v11, %v1223_v22  ;;  %v5997_v41 = vld [vmem:[#allocation2 + $0x18] sm:$0xff]  ;;  %v5308_v0 = vrot.slane %v961_v43, 11  ;;  %v715_v3 = vsel %vm5898_vm6, %v433_v48, %v714_v44  ;;  %v719_v4 = vsel %vm5904_vm7, %v443_v33, %v718_v54  ;;  %v721_v25 = vld [vmem:[#allocation2 + $0x48] sm:$0xf]  ;;  %v725_v43 = vld [vmem:[#allocation2 + $0x50] sm:$0x1] }
  0x38   : > { %1333 = vrot.lane.b32.xlu1 %v1224_v34, %s5821_s30  ;;  %v1205_v40 = vpack.c.b16 %v1195_v32, %v1195_v32  ;;  %v1235_v45 = vrot.slane %v1233_v35, 1  ;;  %v1110_v47 = vld [vmem:[#allocation2 + $0x20] sm:$0x1]  ;;  %v1238_v58 = vshrl.u32 %v5997_v41, 16  ;;  %v1240_v59 = vshll.u32 %v5997_v41, 16  ;;  %v306_v32 = vld [vmem:[%s5880_s29 + $0x70] sm:$0xff] }
  0x39   : > { %v1194_v53 = vunpack.c.l.b16 %v1110_v47  ;;  %v1060_v60 = vld [vmem:[#allocation2 + $0x38] sm:$0x1]  ;;  %v1255_v61 = vor.u32 %v1254_v46, %v1250_v36  ;;  %v334_v5 = vpack.c.bf16 %v302_v55, %v302_v55  ;;  %v1360_v7 = vrot.slane %v5997_v41, 1  ;;  %716 = vst [vmem:[#allocation2 + $0x3c] sm:$0xf] %v715_v3 }
  0x3a   : > { %v1257_v50 = vshll.u32 %v1205_v40, 16  ;;  %v1364_v52 = vrot.slane %v1205_v40, 1  ;;  %v1236_v56 = vsel %vm1212_vm9, %v1231_v38, %v1235_v45  ;;  %v1242_v2 = vrot.slane %v1240_v59, 1  ;;  %720 = vst [vmem:[#allocation2 + $0x44] sm:$0x1] %v719_v4  ;;  %v305_v38 = vld [vmem:[%s5880_s29 + $0x68] sm:$0xff] }
  0x3b   : > { %1335 = vrot.lane.b32.xlu0 %v1236_v56, %s5821_s30  ;;  %v1204_v63 = vpack.c.b16 %v1194_v53, %v1194_v53  ;;  %v1061_v9 = vsel %vm5937_vm8, %v5308_v0, %v1060_v60  ;;  %v335_v12 = vpack.c.bf16 %v303_v1, %v303_v1  ;;  %v445_v13 = vshrl.u32 %v334_v5, 16 }
  0x3c   : > { %v1259_v62 = vrot.slane %v1257_v50, 1  ;;  %v1243_v11 = vor.u32 %v1242_v2, %v1238_v58  ;;  %1062 = vst [vmem:[#allocation2 + $0x38] sm:$0x1] %v1061_v9  ;;  %v448_v14 = vshll.u32 %v334_v5, 16  ;;  %v1359_v15 = vsel %vm1353_vm10, %v1357_v31, %v1358_v39  ;;  %v962_v29 = vld [vmem:[#allocation2 + $0x40] sm:$0x8] }
  0x3d   : > { %v1245_v6 = vshll.u32 %v1204_v63, 16  ;;  %v1361_v8 = vrot.slane %v1204_v63, 1  ;;  %v1365_v17 = vsel %vm1353_vm10, %v1363_v51, %v1364_v52  ;;  %v6022_v19 = vld [vmem:[#allocation2 + $0x30] sm:$0xff]  ;;  %v447_v21 = vrot.slane %v445_v13, 7  ;;  %v307_v39 = vld [vmem:[%s5880_s29 + $0x78] sm:$0xff] }
  0x3e   : > { %v6025_v20 = vsel %vm1212_vm9, %v1255_v61, %v1259_v62  ;;  %v453_v22 = vshrl.u32 %v335_v12, 16  ;;  %v456_v24 = vshll.u32 %v335_v12, 16  ;;  %v1262_v30 = vshrl.u32 %v6022_v19, 16  ;;  %v728_v2 = vld [vmem:[#allocation2 + $0x54] sm:$0xf] }
  0x3f   : > { %v1247_v18 = vrot.slane %v1245_v6, 1  ;;  %v1362_v28 = vsel %vm1353_vm10, %v1360_v7, %v1361_v8  ;;  %v1264_v31 = vshll.u32 %v6022_v19, 16  ;;  %v1366_v33 = vrot.slane %v6022_v19, 1  ;;  %v732_v5 = vld [vmem:[#allocation2 + $0x5c] sm:$0x1] }
  0x40   : > { %1384 = vrot.lane.b32.xlu1 %v1356_v57, %s5822_s8  ;;  %v450_v34 = vor.u32 %v448_v14, %v447_v21  ;;  %v451_v35 = vrot.slane %v447_v21, 4  ;;  %v455_v36 = vrot.slane %v453_v22, 7  ;;  %v5309_v40 = vrot.slane %v962_v29, 11  ;;  %v818_v46 = vld [vmem:[#allocation2 + $0x3c] sm:$0x2]  ;;  %v309_v29 = vld [vmem:[%s5880_s29 + $0x88] sm:$0xff] }
  0x41   : > { %v1248_v26 = vsel %vm1212_vm9, %v1243_v11, %v1247_v18  ;;  %v1266_v42 = vrot.slane %v1264_v31, 1  ;;  %v336_v44 = vpack.c.bf16 %v304_v37, %v304_v37  ;;  %v337_v45 = vpack.c.bf16 %v305_v38, %v305_v38  ;;  %v918_v47 = vld [vmem:[#allocation2 + $0x3c] sm:$0x1]  ;;  %v1063_v58 = vld [vmem:[#allocation2 + $0x44] sm:$0x1] }
  0x42   : > { %1337 = vrot.lane.b32.xlu2 %v1248_v26, %s5821_s30  ;;  %v458_v48 = vor.u32 %v456_v24, %v455_v36  ;;  %v460_v49 = vrot.slane %v455_v36, 4  ;;  %v722_v50 = vsel %vm5898_vm6, %v450_v34, %v721_v25  ;;  %v338_v51 = vpack.c.bf16 %v306_v32, %v306_v32  ;;  %v735_v25 = vld [vmem:[#allocation2 + $0x60] sm:$0xf]  ;;  %v739_v38 = vld [vmem:[#allocation2 + $0x68] sm:$0x1] }
  0x43   : > { %1386 = vrot.lane.b32.xlu0 %v1359_v15, %s5822_s8  ;;  %v1116_v52 = vld [vmem:[#allocation2 + $0x38] sm:$0x1]  ;;  %v5291_v53 = vrot.slane %v818_v46, 9  ;;  %v1267_v54 = vor.u32 %v1266_v42, %v1262_v30  ;;  %723 = vst [vmem:[#allocation2 + $0x48] sm:$0xf] %v722_v50  ;;  %v462_v55 = vshrl.u32 %v336_v44, 16  ;;  %v339_v56 = vpack.c.bf16 %v307_v39, %v307_v39 }
  0x44   : > { %v1196_v57 = vunpack.c.l.b16 %v1116_v52  ;;  %v459_v59 = vsel %vm5890_vm5, %v451_v35, %v458_v48  ;;  %v726_v60 = vsel %vm5904_vm7, %v460_v49, %v725_v43  ;;  %v465_v61 = vshll.u32 %v336_v44, 16  ;;  %v308_v26 = vld [vmem:[%s5880_s29 + $0x80] sm:$0xff] }
  0x45   : > { %v919_v62 = vsel %vm5904_vm7, %v5291_v53, %v918_v47  ;;  %v1064_v63 = vsel %vm5937_vm8, %v5309_v40, %v1063_v58  ;;  %724 = vst.msk [vmem:[#allocation2 + $0x4c] sm:$0xf] %vm680_vm2, %v459_v59  ;;  %v464_v0 = vrot.slane %v462_v55, 7  ;;  %v470_v1 = vshrl.u32 %v337_v45, 16 }
  0x46   : > { %v1206_v3 = vpack.c.b16 %v1196_v57, %v1196_v57  ;;  %920 = vst [vmem:[#allocation2 + $0x3c] sm:$0x1] %v919_v62  ;;  %v473_v4 = vshll.u32 %v337_v45, 16  ;;  %v479_v6 = vshrl.u32 %v338_v51, 16  ;;  %v482_v7 = vshll.u32 %v338_v51, 16 }
  0x47   : > { %1065 = vst [vmem:[#allocation2 + $0x44] sm:$0x1] %v1064_v63  ;;  %v467_v8 = vor.u32 %v465_v61, %v464_v0  ;;  %v468_v9 = vrot.slane %v464_v0, 4  ;;  %v472_v11 = vrot.slane %v470_v1, 7  ;;  %v487_v12 = vshrl.u32 %v339_v56, 16  ;;  %v310_v1 = vld [vmem:[%s5880_s29 + $0x90] sm:$0xff] }
  0x48   : > { %1390 = vrot.lane.b32.xlu1 %v1365_v17, %s5822_s8  ;;  %v1367_v13 = vrot.slane %v1206_v3, 1  ;;  %v1269_v14 = vshll.u32 %v1206_v3, 16  ;;  %727 = vst [vmem:[#allocation2 + $0x50] sm:$0x1] %v726_v60  ;;  %v481_v15 = vrot.slane %v479_v6, 7  ;;  %v490_v17 = vshll.u32 %v339_v56, 16 }
  0x49   : > { %v475_v18 = vor.u32 %v473_v4, %v472_v11  ;;  %v477_v21 = vrot.slane %v472_v11, 4  ;;  %v729_v22 = vsel %vm5898_vm6, %v467_v8, %v728_v2  ;;  %v489_v24 = vrot.slane %v487_v12, 7  ;;  %v742_v60 = vld [vmem:[#allocation2 + $0x6c] sm:$0xf]  ;;  %v311_v11 = vld [vmem:[%s5880_s29 + $0x98] sm:$0xff] }
  0x4a   : > { %1388 = vrot.lane.b32.xlu2 %v1362_v28, %s5822_s8  ;;  %v1271_v30 = vrot.slane %v1269_v14, 1  ;;  %v819_v31 = vld [vmem:[#allocation2 + $0x48] sm:$0x2]  ;;  %v921_v28 = vld [vmem:[#allocation2 + $0x48] sm:$0x1]  ;;  %v484_v32 = vor.u32 %v482_v7, %v481_v15  ;;  %v485_v34 = vrot.slane %v481_v15, 4  ;;  %v340_v44 = vpack.c.bf16 %v308_v26, %v308_v26 }
  0x4b   : > { %1339 = vrot.lane.b32.xlu0 %v6025_v20, %s5821_s30  ;;  %v5292_v35 = vrot.slane %v819_v31, 9  ;;  %v476_v36 = vsel %vm5890_vm5, %v468_v9, %v475_v18  ;;  %730 = vst [vmem:[#allocation2 + $0x54] sm:$0xf] %v729_v22  ;;  %v733_v20 = vsel %vm5904_vm7, %v477_v21, %v732_v5  ;;  %v492_v37 = vor.u32 %v490_v17, %v489_v24 }
  0x4c   : > { %v1272_v39 = vsel %vm1212_vm9, %v1267_v54, %v1271_v30  ;;  %v963_v40 = vld [vmem:[#allocation2 + $0x4c] sm:$0x8]  ;;  %731 = vst.msk [vmem:[#allocation2 + $0x58] sm:$0xf] %vm680_vm2, %v476_v36  ;;  %v494_v42 = vrot.slane %v489_v24, 4  ;;  %v736_v43 = vsel %vm5898_vm6, %v484_v32, %v735_v25  ;;  %v341_v49 = vpack.c.bf16 %v309_v29, %v309_v29 }
  0x4d   : > { %v6065_v45 = vld [vmem:[#allocation2 + $0x3c] sm:$0xff]  ;;  %v922_v46 = vsel %vm5904_vm7, %v5292_v35, %v921_v28  ;;  %v5310_v47 = vrot.slane %v963_v40, 11  ;;  %734 = vst [vmem:[#allocation2 + $0x5c] sm:$0x1] %v733_v20  ;;  %v493_v48 = vsel %vm5890_vm5, %v485_v34, %v492_v37  ;;  %v1368_v50 = vsel %vm1353_vm10, %v1366_v33, %v1367_v13  ;;  %v746_v25 = vld [vmem:[#allocation2 + $0x74] sm:$0x1] }
  0x4e   : > { %v1119_v51 = vld [vmem:[#allocation2 + $0x44] sm:$0x1]  ;;  %923 = vst [vmem:[#allocation2 + $0x48] sm:$0x1] %v922_v46  ;;  %v496_v52 = vshrl.u32 %v340_v44, 16  ;;  %v499_v53 = vshll.u32 %v340_v44, 16  ;;  %v740_v58 = vsel %vm5904_vm7, %v494_v42, %v739_v38  ;;  %v342_v28 = vpack.c.bf16 %v310_v1, %v310_v1 }
  0x4f   : > { %v1197_v54 = vunpack.c.l.b16 %v1119_v51  ;;  %v1274_v55 = vshrl.u32 %v6065_v45, 16  ;;  %v1276_v56 = vshll.u32 %v6065_v45, 16  ;;  %v1066_v57 = vld [vmem:[#allocation2 + $0x50] sm:$0x1]  ;;  %737 = vst [vmem:[#allocation2 + $0x60] sm:$0xf] %v736_v43  ;;  %v343_v32 = vpack.c.bf16 %v311_v11, %v311_v11 }
  0x50   : > { %v1067_v19 = vsel %vm5937_vm8, %v5310_v47, %v1066_v57  ;;  %738 = vst.msk [vmem:[#allocation2 + $0x64] sm:$0xf] %vm680_vm2, %v493_v48  ;;  %v498_v33 = vrot.slane %v496_v52, 7  ;;  %v504_v59 = vshrl.u32 %v341_v49, 16  ;;  %v1369_v63 = vrot.slane %v6065_v45, 1  ;;  %v312_v37 = vld [vmem:[%s5880_s29 + $0xa0] sm:$0xff] }
  0x51   : > { %v1207_v61 = vpack.c.b16 %v1197_v54, %v1197_v54  ;;  %v1278_v62 = vrot.slane %v1276_v56, 1  ;;  %1068 = vst [vmem:[#allocation2 + $0x50] sm:$0x1] %v1067_v19  ;;  %v507_v0 = vshll.u32 %v341_v49, 16  ;;  %v513_v51 = vshrl.u32 %v342_v28, 16  ;;  %v313_v57 = vld [vmem:[%s5880_s29 + $0xa8] sm:$0xff] }
  0x52   : > { %1341 = vrot.lane.b32.xlu2 %v1272_v39, %s5821_s30  ;;  %v820_v2 = vld [vmem:[#allocation2 + $0x54] sm:$0x2]  ;;  %v924_v3 = vld [vmem:[#allocation2 + $0x54] sm:$0x1]  ;;  %741 = vst [vmem:[#allocation2 + $0x68] sm:$0x1] %v740_v58  ;;  %v501_v4 = vor.u32 %v499_v53, %v498_v33  ;;  %v344_v52 = vpack.c.bf16 %v312_v37, %v312_v37 }
  0x53   : > { %1392 = vrot.lane.b32.xlu0 %v1368_v50, %s5822_s8  ;;  %v1279_v5 = vor.u32 %v1278_v62, %v1274_v55  ;;  %v1281_v6 = vshll.u32 %v1207_v61, 16  ;;  %v5293_v7 = vrot.slane %v820_v2, 9  ;;  %v964_v8 = vld [vmem:[#allocation2 + $0x58] sm:$0x8]  ;;  %v1370_v9 = vrot.slane %v1207_v61, 1 }
  0x54   : > { %v5311_v12 = vrot.slane %v964_v8, 11  ;;  %v1069_v13 = vld [vmem:[#allocation2 + $0x5c] sm:$0x1]  ;;  %v502_v14 = vrot.slane %v498_v33, 4  ;;  %v506_v15 = vrot.slane %v504_v59, 7  ;;  %v743_v17 = vsel %vm5898_vm6, %v501_v4, %v742_v60 }
  0x55   : > { %v1283_v18 = vrot.slane %v1281_v6, 1  ;;  %v6088_v21 = vld [vmem:[#allocation2 + $0x48] sm:$0xff]  ;;  %v925_v22 = vsel %vm5904_vm7, %v5293_v7, %v924_v3  ;;  %v1371_v24 = vsel %vm1353_vm10, %v1369_v63, %v1370_v9  ;;  %744 = vst [vmem:[#allocation2 + $0x6c] sm:$0xf] %v743_v17  ;;  %v516_v55 = vshll.u32 %v342_v28, 16 }
  0x56   : > { %926 = vst [vmem:[#allocation2 + $0x54] sm:$0x1] %v925_v22  ;;  %v1070_v26 = vsel %vm5937_vm8, %v5311_v12, %v1069_v13  ;;  %v821_v29 = vld [vmem:[#allocation2 + $0x60] sm:$0x2]  ;;  %v927_v30 = vld [vmem:[#allocation2 + $0x60] sm:$0x1]  ;;  %v509_v31 = vor.u32 %v507_v0, %v506_v15  ;;  %v345_v63 = vpack.c.bf16 %v313_v57, %v313_v57 }
  0x57   : > { %v1284_v34 = vsel %vm1212_vm9, %v1279_v5, %v1283_v18  ;;  %v1286_v35 = vshrl.u32 %v6088_v21, 16  ;;  %v1288_v36 = vshll.u32 %v6088_v21, 16  ;;  %v1372_v20 = vrot.slane %v6088_v21, 1  ;;  %1071 = vst [vmem:[#allocation2 + $0x5c] sm:$0x1] %v1070_v26 }
  0x58   : > { %1343 = vrot.lane.b32.xlu1 %v1284_v34, %s5821_s30  ;;  %v1122_v38 = vld [vmem:[#allocation2 + $0x50] sm:$0x1]  ;;  %v5294_v39 = vrot.slane %v821_v29, 9  ;;  %v965_v40 = vld [vmem:[#allocation2 + $0x64] sm:$0x8]  ;;  %v510_v42 = vsel %vm5890_vm5, %v502_v14, %v509_v31  ;;  %v511_v43 = vrot.slane %v506_v15, 4 }
  0x59   : > { %v1198_v44 = vunpack.c.l.b16 %v1122_v38  ;;  %v1290_v46 = vrot.slane %v1288_v36, 1  ;;  %v5312_v47 = vrot.slane %v965_v40, 11  ;;  %v1072_v48 = vld [vmem:[#allocation2 + $0x68] sm:$0x1]  ;;  %745 = vst.msk [vmem:[#allocation2 + $0x70] sm:$0xf] %vm680_vm2, %v510_v42 }
  0x5a   : > { %1394 = vrot.lane.b32.xlu2 %v1371_v24, %s5822_s8  ;;  %v928_v49 = vsel %vm5904_vm7, %v5294_v39, %v927_v30  ;;  %v747_v50 = vsel %vm5904_vm7, %v511_v43, %v746_v25  ;;  %v521_v56 = vshrl.u32 %v343_v32, 16  ;;  %v515_v1 = vrot.slane %v513_v51, 7  ;;  %v749_v9 = vld [vmem:[#allocation2 + $0x78] sm:$0xf]  ;;  %v753_v25 = vld [vmem:[#allocation2 + $0x80] sm:$0x1] }
  0x5b   : > { %v1208_v53 = vpack.c.b16 %v1198_v44, %v1198_v44  ;;  %929 = vst [vmem:[#allocation2 + $0x60] sm:$0x1] %v928_v49  ;;  %v1073_v54 = vsel %vm5937_vm8, %v5312_v47, %v1072_v48  ;;  %v1291_v58 = vor.u32 %v1290_v46, %v1286_v35  ;;  %v524_v3 = vshll.u32 %v343_v32, 16  ;;  %v314_v32 = vld [vmem:[%s5880_s29 + $0xb0] sm:$0xff]  ;;  %v760_v57 = vld [vmem:[#allocation2 + $0x8c] sm:$0x1] }
  0x5c   : > { %1074 = vst [vmem:[#allocation2 + $0x68] sm:$0x1] %v1073_v54  ;;  %v822_v19 = vld [vmem:[#allocation2 + $0x6c] sm:$0x2]  ;;  %v930_v33 = vld [vmem:[#allocation2 + $0x6c] sm:$0x1]  ;;  %v518_v13 = vor.u32 %v516_v55, %v515_v1  ;;  %v6138_v46 = vpack.c.bf16 %v314_v32, %v314_v32 }
  0x5d   : > { %v1293_v59 = vshll.u32 %v1208_v53, 16  ;;  %v1373_v60 = vrot.slane %v1208_v53, 1  ;;  %v6112_v61 = vld [vmem:[#allocation2 + $0x54] sm:$0xff]  ;;  %748 = vst [vmem:[#allocation2 + $0x74] sm:$0x1] %v747_v50  ;;  %v5295_v62 = vrot.slane %v822_v19, 9 }
  0x5e   : > { %v1125_v0 = vld [vmem:[#allocation2 + $0x5c] sm:$0x1]  ;;  %v523_v2 = vrot.slane %v521_v56, 7  ;;  %v530_v4 = vshrl.u32 %v344_v52, 16  ;;  %v1375_v8 = vrot.slane %v6112_v61, 1  ;;  %v519_v14 = vrot.slane %v515_v1, 4 }
  0x5f   : > { %v1295_v5 = vrot.slane %v1293_v59, 1  ;;  %v1374_v6 = vsel %vm1353_vm10, %v1372_v20, %v1373_v60  ;;  %v1199_v7 = vunpack.c.l.b16 %v1125_v0  ;;  %v931_v11 = vsel %vm5904_vm7, %v5295_v62, %v930_v33  ;;  %v756_v20 = vld [vmem:[#allocation2 + $0x84] sm:$0xf]  ;;  %v315_v59 = vld [vmem:[%s5880_s29 + $0xb8] sm:$0xff] }
  0x60   : > { %1396 = vrot.lane.b32.xlu1 %v1374_v6, %s5822_s8  ;;  %v966_v12 = vld [vmem:[#allocation2 + $0x70] sm:$0x8]  ;;  %v526_v15 = vor.u32 %v524_v3, %v523_v2  ;;  %932 = vst [vmem:[#allocation2 + $0x6c] sm:$0x1] %v931_v11  ;;  %v528_v24 = vrot.slane %v523_v2, 4  ;;  %v750_v30 = vsel %vm5898_vm6, %v518_v13, %v749_v9  ;;  %v532_v31 = vrot.slane %v530_v4, 7 }
  0x61   : > { %v1296_v17 = vsel %vm1212_vm9, %v1291_v58, %v1295_v5  ;;  %v6120_v18 = vpack.c.b16 %v1199_v7, %v1199_v7  ;;  %v5313_v22 = vrot.slane %v966_v12, 11  ;;  %v533_v28 = vshll.u32 %v344_v52, 16  ;;  %751 = vst [vmem:[#allocation2 + $0x78] sm:$0xf] %v750_v30  ;;  %v316_v62 = vld [vmem:[%s5880_s29 + $0xc0] sm:$0xff]  ;;  %v317_v4 = vld [vmem:[%s5880_s29 + $0xc8] sm:$0xff] }
  0x62   : > { %1345 = vrot.lane.b32.xlu0 %v1296_v17, %s5821_s30  ;;  %v6123_v26 = vld [vmem:[#allocation2 + $0x60] sm:$0xff]  ;;  %v527_v29 = vsel %vm5890_vm5, %v519_v14, %v526_v15  ;;  %v538_v36 = vshrl.u32 %v345_v63, 16  ;;  %v754_v42 = vsel %vm5904_vm7, %v528_v24, %v753_v25  ;;  %v536_v50 = vrot.slane %v532_v31, 4 }
  0x63   : > { %v1376_v34 = vrot.slane %v6120_v18, 1  ;;  %v1128_v35 = vld [vmem:[#allocation2 + $0x68] sm:$0x1]  ;;  %v1310_v38 = vshrl.u32 %v6123_v26, 16  ;;  %v1312_v39 = vshll.u32 %v6123_v26, 16  ;;  %v535_v44 = vor.u32 %v533_v28, %v532_v31 }
  0x64   : > { %v1200_v37 = vunpack.c.l.b16 %v1128_v35  ;;  %v1075_v40 = vld [vmem:[#allocation2 + $0x74] sm:$0x1]  ;;  %752 = vst.msk [vmem:[#allocation2 + $0x7c] sm:$0xf] %vm680_vm2, %v527_v29  ;;  %v540_v51 = vrot.slane %v538_v36, 7  ;;  %v541_v52 = vshll.u32 %v345_v63, 16  ;;  %v347_v25 = vpack.c.bf16 %v315_v59, %v315_v59 }
  0x65   : > { %v1076_v43 = vsel %vm5937_vm8, %v5313_v22, %v1075_v40  ;;  %v1377_v47 = vsel %vm1353_vm10, %v1375_v8, %v1376_v34  ;;  %v1314_v49 = vrot.slane %v1312_v39, 1  ;;  %755 = vst [vmem:[#allocation2 + $0x80] sm:$0x1] %v754_v42  ;;  %v757_v53 = vsel %vm5898_vm6, %v535_v44, %v756_v20  ;;  %v2044_v2 = vld [vmem:[#allocation2 + $0x68] sm:$0x1]  ;;  %v6171_v44 = vld [vmem:[#allocation2 + $0x60] sm:$0xff] }
  0x66   : > { %v6141_v48 = vpack.c.b16 %v1200_v37, %v1200_v37  ;;  %1077 = vst [vmem:[#allocation2 + $0x74] sm:$0x1] %v1076_v43  ;;  %v543_v58 = vor.u32 %v541_v52, %v540_v51  ;;  %v545_v19 = vrot.slane %v540_v51, 4  ;;  %v1300_v33 = vshll.u32 %v6112_v61, 16 }
  0x67   : > { %v1315_v54 = vor.u32 %v1314_v49, %v1310_v38  ;;  %v6146_v56 = vld [vmem:[#allocation2 + $0x6c] sm:$0xff]  ;;  %758 = vst [vmem:[#allocation2 + $0x84] sm:$0xf] %v757_v53  ;;  %v547_v60 = vshrl.u32 %v6138_v46, 16  ;;  %v1298_v3 = vshrl.u32 %v6112_v61, 16  ;;  %v1305_v24 = vshll.u32 %v6120_v18, 16 }
  0x68   : > { %v1317_v55 = vshll.u32 %v6141_v48, 16  ;;  %v2165_v0 = vshrl.u32 %v6146_v56, 16  ;;  %v2167_v1 = vshll.u32 %v6146_v56, 16  ;;  %v2295_v5 = vrot.slane %v6146_v56, 1  ;;  %v823_v6 = vld [vmem:[#allocation2 + $0x78] sm:$0x2] }
  0x69   : > { %v933_v7 = vld [vmem:[#allocation2 + $0x78] sm:$0x1]  ;;  %v544_v8 = vsel %vm5890_vm5, %v536_v50, %v543_v58  ;;  %v761_v9 = vsel %vm5904_vm7, %v545_v19, %v760_v57  ;;  %v1302_v11 = vrot.slane %v1300_v33, 1  ;;  %v5296_v14 = vrot.slane %v823_v6, 9  ;;  %v763_v57 = vld [vmem:[#allocation2 + $0x90] sm:$0xf] }
  0x6a   : > { %1398 = vrot.lane.b32.xlu0 %v1377_v47, %s5822_s8  ;;  %v1319_v63 = vrot.slane %v1317_v55, 1  ;;  %v2169_v13 = vrot.slane %v2167_v1, 1  ;;  %759 = vst.msk [vmem:[#allocation2 + $0x88] sm:$0xf] %vm680_vm2, %v544_v8  ;;  %v348_v29 = vpack.c.bf16 %v316_v62, %v316_v62  ;;  %v549_v34 = vrot.slane %v547_v60, 7 }
  0x6b   : > { %v967_v15 = vld [vmem:[#allocation2 + $0x7c] sm:$0x8]  ;;  %762 = vst [vmem:[#allocation2 + $0x8c] sm:$0x1] %v761_v9  ;;  %v934_v31 = vsel %vm5904_vm7, %v5296_v14, %v933_v7  ;;  %v1303_v32 = vor.u32 %v1302_v11, %v1298_v3  ;;  %v2132_v36 = vunpack.c.l.b16 %v2044_v2  ;;  %v349_v39 = vpack.c.bf16 %v317_v4, %v317_v4  ;;  %v767_v58 = vld [vmem:[#allocation2 + $0x98] sm:$0x1] }
  0x6c   : > { %v1320_v12 = vsel %vm1212_vm9, %v1315_v54, %v1319_v63  ;;  %v5314_v22 = vrot.slane %v967_v15, 11  ;;  %v1078_v28 = vld [vmem:[#allocation2 + $0x80] sm:$0x1]  ;;  %v2170_v35 = vor.u32 %v2169_v13, %v2165_v0  ;;  %935 = vst [vmem:[#allocation2 + $0x78] sm:$0x1] %v934_v31  ;;  %v1307_v42 = vrot.slane %v1305_v24, 1 }
  0x6d   : > { %1349 = vrot.lane.b32.xlu1 %v1320_v12, %s5821_s30  ;;  %v2047_v17 = vld [vmem:[#allocation2 + $0x74] sm:$0x1]  ;;  %v550_v43 = vshll.u32 %v6138_v46, 16  ;;  %v553_v47 = vrot.slane %v549_v34, 4  ;;  %v555_v49 = vshrl.u32 %v347_v25, 16  ;;  %v558_v50 = vshll.u32 %v347_v25, 16 }
  0x6e   : > { %v2133_v30 = vunpack.c.l.b16 %v2047_v17  ;;  %v1079_v20 = vsel %vm5937_vm8, %v5314_v22, %v1078_v28  ;;  %v824_v37 = vld [vmem:[#allocation2 + $0x84] sm:$0x2]  ;;  %v936_v38 = vld [vmem:[#allocation2 + $0x84] sm:$0x1]  ;;  %v564_v51 = vshrl.u32 %v348_v29, 16  ;;  %v1308_v55 = vsel %vm1212_vm9, %v1303_v32, %v1307_v42 }
  0x6f   : > { %1080 = vst [vmem:[#allocation2 + $0x80] sm:$0x1] %v1079_v20  ;;  %v5297_v18 = vrot.slane %v824_v37, 9  ;;  %v6176_v19 = vpack.c.b16 %v2132_v36, %v2132_v36  ;;  %1347 = vrot.lane.b32.xlu2 %v1308_v55, %s5821_s30  ;;  %v552_v46 = vor.u32 %v550_v43, %v549_v34  ;;  %v557_v59 = vrot.slane %v555_v49, 7  ;;  %v770_v13 = vld [vmem:[#allocation2 + $0x9c] sm:$0xf] }
  0x70   : > { %v2143_v40 = vpack.c.b16 %v2133_v30, %v2133_v30  ;;  %v566_v60 = vrot.slane %v564_v51, 7  ;;  %v567_v2 = vshll.u32 %v348_v29, 16  ;;  %v2292_v3 = vrot.slane %v6171_v44, 1  ;;  %v774_v34 = vld [vmem:[#allocation2 + $0xa4] sm:$0x1] }
  0x71   : > { %v937_v54 = vsel %vm5904_vm7, %v5297_v18, %v936_v38  ;;  %v968_v33 = vld [vmem:[#allocation2 + $0x88] sm:$0x8]  ;;  %v560_v4 = vor.u32 %v558_v50, %v557_v59  ;;  %v562_v6 = vrot.slane %v557_v59, 4  ;;  %v764_v7 = vsel %vm5898_vm6, %v552_v46, %v763_v57 }
  0x72   : > { %v2172_v52 = vshll.u32 %v2143_v40, 16  ;;  %v2296_v53 = vrot.slane %v2143_v40, 1  ;;  %938 = vst [vmem:[#allocation2 + $0x84] sm:$0x1] %v937_v54  ;;  %v5315_v0 = vrot.slane %v968_v33, 11  ;;  %v572_v12 = vshrl.u32 %v349_v39, 16 }
  0x73   : > { %v1081_v1 = vld [vmem:[#allocation2 + $0x8c] sm:$0x1]  ;;  %v6185_v9 = vld [vmem:[#allocation2 + $0x78] sm:$0xff]  ;;  %765 = vst [vmem:[#allocation2 + $0x90] sm:$0xf] %v764_v7  ;;  %v2293_v14 = vrot.slane %v6176_v19, 1  ;;  %v561_v17 = vsel %vm5890_vm5, %v553_v47, %v560_v4  ;;  %v768_v22 = vsel %vm5904_vm7, %v562_v6, %v767_v58 }
  0x74   : > { %v2174_v62 = vrot.slane %v2172_v52, 1  ;;  %v2297_v63 = vsel %vm1353_vm10, %v2295_v5, %v2296_v53  ;;  %v1082_v11 = vsel %vm5937_vm8, %v5315_v0, %v1081_v1  ;;  %v569_v5 = vor.u32 %v567_v2, %v566_v60  ;;  %766 = vst.msk [vmem:[#allocation2 + $0x94] sm:$0xf] %vm680_vm2, %v561_v17 }
  0x75   : > { %2324 = vrot.lane.b32.xlu1 %v2297_v63, %s5822_s8  ;;  %1083 = vst [vmem:[#allocation2 + $0x8c] sm:$0x1] %v1082_v11  ;;  %v575_v24 = vshll.u32 %v349_v39, 16  ;;  %v2177_v29 = vshrl.u32 %v6185_v9, 16  ;;  %v2179_v30 = vshll.u32 %v6185_v9, 16  ;;  %v574_v31 = vrot.slane %v572_v12, 7 }
  0x76   : > { %v2175_v8 = vsel %vm1212_vm9, %v2170_v35, %v2174_v62  ;;  %v2050_v15 = vld [vmem:[#allocation2 + $0x80] sm:$0x1]  ;;  %769 = vst [vmem:[#allocation2 + $0x98] sm:$0x1] %v768_v22  ;;  %v570_v28 = vrot.slane %v566_v60, 4  ;;  %v771_v32 = vsel %vm5898_vm6, %v569_v5, %v770_v13  ;;  %v2294_v39 = vsel %vm1353_vm10, %v2292_v3, %v2293_v14  ;;  %v6225_v22 = vld [vmem:[#allocation2 + $0x6c] sm:$0xff] }
  0x77   : > { %2274 = vrot.lane.b32.xlu0 %v2175_v8, %s5821_s30  ;;  %v2134_v25 = vunpack.c.l.b16 %v2050_v15  ;;  %v2181_v36 = vrot.slane %v2179_v30, 1  ;;  %v577_v37 = vor.u32 %v575_v24, %v574_v31  ;;  %v579_v38 = vrot.slane %v574_v31, 4  ;;  %772 = vst [vmem:[#allocation2 + $0x9c] sm:$0xf] %v771_v32  ;;  %v1131_v11 = vld [vmem:[#allocation2 + $0x74] sm:$0x1] }
  0x78   : > { %v1201_v24 = vunpack.c.l.b16 %v1131_v11  ;;  %v1324_v32 = vshll.u32 %v6225_v22, 16 }
  0x79   : > { %v6200_v35 = vpack.c.b16 %v2134_v25, %v2134_v25  ;;  %v6202_v20 = vld [vmem:[#allocation2 + $0x84] sm:$0xff]  ;;  %v2182_v40 = vor.u32 %v2181_v36, %v2177_v29  ;;  %v578_v49 = vsel %vm5890_vm5, %v570_v28, %v577_v37  ;;  %v775_v50 = vsel %vm5904_vm7, %v579_v38, %v774_v34  ;;  %v5388_v34 = vld [vmem:[%s8698_s1 + $0x10] sm:$0xf]  ;;  %v5708_v36 = vld [vmem:[%s8698_s1 + $0x10] sm:$0x30] }
  0x7a   : > { %v2191_v42 = vshll.u32 %v6202_v20, 16  ;;  %v825_v43 = vld [vmem:[#allocation2 + $0x90] sm:$0x2]  ;;  %v939_v47 = vld [vmem:[#allocation2 + $0x90] sm:$0x1]  ;;  %v2189_v55 = vshrl.u32 %v6202_v20, 16  ;;  %v1211_v28 = vpack.c.b16 %v1201_v24, %v1201_v24  ;;  %v5389_v38 = vor.u32 %v5708_v36, %v5388_v34 }
  0x7b   : > { %v2184_v18 = vshll.u32 %v6200_v35, 16  ;;  %v5298_v53 = vrot.slane %v825_v43, 9  ;;  %v969_v58 = vld [vmem:[#allocation2 + $0x94] sm:$0x8]  ;;  %773 = vst.msk [vmem:[#allocation2 + $0xa0] sm:$0xf] %vm680_vm2, %v578_v49 }
  0x7c   : > { %v2053_v52 = vld [vmem:[#allocation2 + $0x8c] sm:$0x1]  ;;  %v2193_v57 = vrot.slane %v2191_v42, 1  ;;  %v5316_v59 = vrot.slane %v969_v58, 11  ;;  %776 = vst [vmem:[#allocation2 + $0xa4] sm:$0x1] %v775_v50 }
  0x7d   : > { %v2186_v51 = vrot.slane %v2184_v18, 1  ;;  %v2135_v54 = vunpack.c.l.b16 %v2053_v52  ;;  %v940_v46 = vsel %vm5904_vm7, %v5298_v53, %v939_v47  ;;  %v1084_v60 = vld [vmem:[#allocation2 + $0x98] sm:$0x1]  ;;  %v2301_v1 = vrot.slane %v6202_v20, 1  ;;  %v5707_v42 = vld [vmem:[%s8698_s1 + $0x8] sm:$0x30] }
  0x7e   : > { %941 = vst [vmem:[#allocation2 + $0x90] sm:$0x1] %v940_v46  ;;  %v826_v63 = vld [vmem:[#allocation2 + $0x9c] sm:$0x2]  ;;  %v942_v0 = vld [vmem:[#allocation2 + $0x9c] sm:$0x1]  ;;  %v1085_v2 = vsel %vm5937_vm8, %v5316_v59, %v1084_v60  ;;  %v2194_v4 = vor.u32 %v2193_v57, %v2189_v55 }
  0x7f   : > { %2322 = vrot.lane.b32.xlu0 %v2294_v39, %s5822_s8  ;;  %v2187_v33 = vsel %vm1212_vm9, %v2182_v40, %v2186_v51  ;;  %v2145_v62 = vpack.c.b16 %v2135_v54, %v2135_v54  ;;  %v5299_v3 = vrot.slane %v826_v63, 9  ;;  %1086 = vst [vmem:[#allocation2 + $0x98] sm:$0x1] %v1085_v2  ;;  %v5364_v39 = vld [vmem:[%s8698_s1 + $0x8] sm:$0xf]  ;;  %v1322_v49 = vshrl.u32 %v6225_v22, 16 }
  0x80   : > { %2276 = vrot.lane.b32.xlu1 %v2187_v33, %s5821_s30  ;;  %v5376_v43 = vld [vmem:[%s8698_s1] sm:$0xf]  ;;  %v1588_v50 = vsel %vm1468_vm11, %v5389_v38, 0  ;;  %v5365_v51 = vor.u32 %v5707_v42, %v5364_v39  ;;  %v5706_v52 = vld [vmem:[%s8698_s1] sm:$0x30]  ;;  %v1326_v54 = vrot.slane %v1324_v32, 1 }
  0x81   : > { %v2196_v6 = vshll.u32 %v2145_v62, 16  ;;  %v2302_v7 = vrot.slane %v2145_v62, 1  ;;  %v943_v8 = vsel %vm5904_vm7, %v5299_v3, %v942_v0  ;;  %v1329_v55 = vshll.u32 %v1211_v28, 16  ;;  %1597 = vmatpush.bf16.msra.mxu2 %v1588_v50 }
  0x82   : > { %944 = vst [vmem:[#allocation2 + $0x9c] sm:$0x1] %v943_v8  ;;  %v970_v13 = vld [vmem:[#allocation2 + $0xa0] sm:$0x8]  ;;  %v5377_v57 = vor.u32 %v5706_v52, %v5376_v43  ;;  %v1470_v58 = vsel %vm1468_vm11, %v5365_v51, 0  ;;  %v1378_v0 = vrot.slane %v6123_v26, 1  ;;  %v1327_v2 = vor.u32 %v1326_v54, %v1322_v49 }
  0x83   : > { %v2198_v5 = vrot.slane %v2196_v6, 1  ;;  %v2303_v12 = vsel %vm1353_vm10, %v2301_v1, %v2302_v7  ;;  %v5317_v15 = vrot.slane %v970_v13, 11  ;;  %v1087_v17 = vld [vmem:[#allocation2 + $0xa4] sm:$0x1]  ;;  %1479 = vmatpush.bf16.msra.mxu0 %v1470_v58  ;;  %2405 = vmatpush.bf16.msra.mxu3 %v1470_v58  ;;  %v1379_v1 = vrot.slane %v6141_v48, 1  ;;  %v5810_v51 = vld [vmem:[#allocation2 + $0xc] sm:$0xff] }
  0x84   : > { %v1529_v60 = vsel %vm1468_vm11, %v5377_v57, 0  ;;  %v1331_v3 = vrot.slane %v1329_v55, 1  ;;  %v1381_v48 = vrot.slane %v6225_v22, 1  ;;  %v2299_v42 = vrot.slane %v6200_v35, 1  ;;  %v5809_v43 = vld [vmem:[#allocation2] sm:$0xff]  ;;  %v318_v35 = vld [vmem:[%s5880_s29 + $0xd0] sm:$0xff] }
  0x85   : > { %v2199_v14 = vsel %vm1212_vm9, %v2194_v4, %v2198_v5  ;;  %v6229_v25 = vld [vmem:[#allocation2 + $0x90] sm:$0xff]  ;;  %v1088_v29 = vsel %vm5937_vm8, %v5317_v15, %v1087_v17  ;;  %1538 = vmatpush.bf16.msra.mxu1 %v1529_v60  ;;  %v1380_v6 = vsel %vm1353_vm10, %v1378_v0, %v1379_v1  ;;  %v319_v55 = vld [vmem:[%s5880_s29 + $0xd8] sm:$0xff]  ;;  %v350_v57 = vpack.c.bf16 %v318_v35, %v318_v35 }
  0x86   : > { %v2056_v30 = vld [vmem:[#allocation2 + $0x98] sm:$0x1]  ;;  %1089 = vst [vmem:[#allocation2 + $0xa4] sm:$0x1] %v1088_v29  ;;  %v2304_v18 = vrot.slane %v6229_v25, 1  ;;  %1400 = vrot.lane.b32.xlu2 %v1380_v6, %s5822_s8  ;;  %v1332_v11 = vsel %vm1212_vm9, %v1327_v2, %v1331_v3  ;;  %v351_v58 = vpack.c.bf16 %v319_v55, %v319_v55 }
  0x87   : > { %2278 = vrot.lane.b32.xlu0 %v2199_v14, %s5821_s30  ;;  %v2136_v31 = vunpack.c.l.b16 %v2056_v30  ;;  %2456 = vmatpush.bf16.msrb.mxu0 %v1529_v60  ;;  %v1382_v14 = vrot.slane %v1211_v28, 1  ;;  %v2155_v30 = vshll.u32 %v6171_v44, 16  ;;  %v2160_v28 = vshll.u32 %v6176_v19, 16 }
  0x88   : > { %2328 = vrot.lane.b32.xlu1 %v2303_v12, %s5822_s8  ;;  %v592_v2 = vshll.u32 %v351_v58, 16 }
  0x89   : > { %v6240_v37 = vld [vmem:[#allocation2 + $0x9c] sm:$0xff]  ;;  %v6245_v40 = vpack.c.b16 %v2136_v31, %v2136_v31  ;;  %2507 = vmatpush.bf16.msrb.mxu1 %v1588_v50  ;;  %v1383_v17 = vsel %vm1353_vm10, %v1381_v48, %v1382_v14  ;;  %v2153_v31 = vshrl.u32 %v6171_v44, 16  ;;  %v2162_v34 = vrot.slane %v2160_v28, 1  ;;  %v777_v48 = vld [vmem:[#allocation2 + $0xa8] sm:$0xf] }
  0x8a   : > { %v2215_v47 = vshll.u32 %v6240_v37, 16  ;;  %v2213_v59 = vshrl.u32 %v6240_v37, 16 }
  0x8b   : > { %v2305_v53 = vrot.slane %v6245_v40, 1 }
  0x8c   : > { %v2217_v63 = vrot.slane %v2215_v47, 1 }
  0x8d   : > { %v2306_v33 = vsel %vm1353_vm10, %v2304_v18, %v2305_v53  ;;  %v2059_v46 = vld [vmem:[#allocation2 + $0xa4] sm:$0x1]  ;;  %v2298_v18 = vrot.slane %v6185_v9, 1 }
  0x8e   : > { %v2137_v62 = vunpack.c.l.b16 %v2059_v46  ;;  %v2218_v7 = vor.u32 %v2217_v63, %v2213_v59  ;;  %v581_v46 = vshrl.u32 %v350_v57, 16  ;;  %v589_v59 = vshrl.u32 %v351_v58, 16 }
  0x8f   : > { %2330 = vrot.lane.b32.xlu0 %v2306_v33, %s5822_s8  ;;  %v2300_v50 = vsel %vm1353_vm10, %v2298_v18, %v2299_v42  ;;  %v2201_v58 = vshrl.u32 %v6229_v25, 16 }
  0x90   : > { %v6268_v4 = vpack.c.b16 %v2137_v62, %v2137_v62  ;;  %v5811_v62 = vld [vmem:[#allocation2 + $0x24] sm:$0xff]  ;;  %v583_v0 = vrot.slane %v581_v46, 7  ;;  %v591_v1 = vrot.slane %v589_v59, 7  ;;  %v2208_v46 = vshll.u32 %v6245_v40, 16 }
  0x92   : > { %v2220_v8 = vshll.u32 %v6268_v4, 16  ;;  %v587_v6 = vrot.slane %v583_v0, 4 }
  0x94   : > { %v2222_v5 = vrot.slane %v2220_v8, 1  ;;  %v584_v8 = vshll.u32 %v350_v57, 16 }
  0x96   : > { %v2223_v12 = vsel %vm1212_vm9, %v2218_v7, %v2222_v5  ;;  %v594_v7 = vor.u32 %v592_v2, %v591_v1  ;;  %v596_v5 = vrot.slane %v591_v1, 4  ;;  %v788_v1 = vld [vmem:[#allocation2 + $0xbc] sm:$0x1] }
  0x97   : > { %1351 = vrot.lane.b32.xlu0 %v1332_v11, %s5821_s30  ;;  %2282 = vrot.lane.b32.xlu1 %v2223_v12, %s5821_s30  ;;  %v586_v12 = vor.u32 %v584_v8, %v583_v0  ;;  %v784_v0 = vld [vmem:[#allocation2 + $0xb4] sm:$0xf] }
  0x98   : > { %v595_v11 = vsel %vm5890_vm5, %v587_v6, %v594_v7  ;;  %v2210_v6 = vrot.slane %v2208_v46, 1 }
  0x99   : > { %780 = vst.msk [vmem:[#allocation2 + $0xac] sm:$0xf] %vm680_vm2, %v595_v11 }
  0x9c   : > { %v1338_v13 = vpop.permute.xlu2 %1337 }
  0x9d   : > { %v1410_v15 = vsel %vm1404_vm12, %v5997_v41, %v1338_v13  ;;  %v2157_v41 = vrot.slane %v2155_v30, 1  ;;  %v781_v13 = vld [vmem:[#allocation2 + $0xb0] sm:$0x1] }
  0x9e   : > { %v782_v14 = vsel %vm5904_vm7, %v596_v5, %v781_v13  ;;  %v322_v13 = vld [vmem:[%s5880_s29 + $0xf0] sm:$0xff] }
  0x9f   : > { %1402 = vrot.lane.b32.xlu1 %v1383_v17, %s5822_s8  ;;  %v2158_v36 = vor.u32 %v2157_v41, %v2153_v31  ;;  %783 = vst [vmem:[#allocation2 + $0xb0] sm:$0x1] %v782_v14  ;;  %v320_v17 = vld [vmem:[%s5880_s29 + $0xe0] sm:$0xff]  ;;  %v354_v14 = vpack.c.bf16 %v322_v13, %v322_v13 }
  0xa0   : > { %v352_v31 = vpack.c.bf16 %v320_v17, %v320_v17 }
  0xa1   : > { %v2163_v38 = vsel %vm1212_vm9, %v2158_v36, %v2162_v34  ;;  %v5812_v34 = vld [vmem:[#allocation2 + $0x30] sm:$0xff] }
  0xa2   : > { %2272 = vrot.lane.b32.xlu2 %v2163_v38, %s5821_s30  ;;  %v598_v41 = vshrl.u32 %v352_v31, 16 }
  0xa4   : > { %v1389_v24 = vpop.permute.xlu2 %1388  ;;  %v600_v42 = vrot.slane %v598_v41, 7 }
  0xa5   : > { %v6283_v29 = vsel %vm1425_vm13, %v1410_v15, %v1389_v24  ;;  %v778_v15 = vsel %vm5898_vm6, %v586_v12, %v777_v48  ;;  %v321_v24 = vld [vmem:[%s5880_s29 + $0xe8] sm:$0xff]  ;;  %v323_v48 = vld [vmem:[%s5880_s29 + $0xf8] sm:$0xff] }
  0xa6   : > { %5390 = vmatmul.msk.bf16.vlgmr.msra.gmra.mxu2 %vm1451_vm14, %v6283_v29  ;;  %779 = vst [vmem:[#allocation2 + $0xa8] sm:$0xf] %v778_v15  ;;  %v353_v28 = vpack.c.bf16 %v321_v24, %v321_v24  ;;  %v355_v15 = vpack.c.bf16 %v323_v48, %v323_v48 }
  0xaa   : > { %v1334_v32 = vpop.permute.xlu1 %1333  ;;  %2326 = vrot.lane.b32.xlu2 %v2300_v50, %s5822_s8 }
  0xab   : > { %v1406_v47 = vsel %vm1404_vm12, %v5809_v43, %v1334_v32  ;;  %v606_v32 = vshrl.u32 %v353_v28, 16 }
  0xac   : > { %v1342_v30 = vpop.permute.xlu2 %1341 }
  0xad   : > { %v1336_v39 = vpop.permute.xlu0 %1335  ;;  %v1414_v36 = vsel %vm1404_vm12, %v5812_v34, %v1342_v30  ;;  %v6323_v43 = vrot.slane %v606_v32, 7  ;;  %v945_v59 = vld [vmem:[#allocation2 + $0xa8] sm:$0x1]  ;;  %v615_v30 = vshrl.u32 %v354_v14, 16 }
  0xae   : > { %v1408_v52 = vsel %vm1404_vm12, %v5810_v51, %v1336_v39  ;;  %v971_v39 = vld [vmem:[#allocation2 + $0xac] sm:$0x8]  ;;  %v2203_v51 = vshll.u32 %v6229_v25, 16 }
  0xaf   : > { %v5318_v18 = vrot.slane %v971_v39, 11 }
  0xb2   : > { %v1385_v49 = vpop.permute.xlu1 %1384 }
  0xb3   : > { %v1427_v19 = vsel %vm1425_vm13, %v1406_v47, %v1385_v49  ;;  %v609_v47 = vshll.u32 %v353_v28, 16  ;;  %v1090_v49 = vld [vmem:[#allocation2 + $0xb0] sm:$0x1] }
  0xb4   : > { %5378 = vmatmul.msk.bf16.vlgmr.msra.gmra.mxu1 %vm1451_vm14, %v1427_v19  ;;  %v601_v19 = vshll.u32 %v352_v31, 16  ;;  %v623_v31 = vshrl.u32 %v355_v15, 16  ;;  %v1395_v41 = vpop.permute.xlu2 %1394 }
  0xb5   : > { %v1387_v53 = vpop.permute.xlu0 %1386  ;;  %v611_v57 = vor.u32 %v609_v47, %v6323_v43  ;;  %v617_v47 = vrot.slane %v615_v30, 7 }
  0xb6   : > { %v1429_v54 = vsel %vm1425_vm13, %v1408_v52, %v1387_v53  ;;  %v827_v52 = vld [vmem:[#allocation2 + $0xa8] sm:$0x2]  ;;  %v1091_v53 = vsel %vm5937_vm8, %v5318_v18, %v1090_v49  ;;  %v6331_v55 = vor.u32 %v601_v19, %v600_v42  ;;  %v625_v49 = vrot.slane %v623_v31, 7 }
  0xb7   : > { %5366 = vmatmul.msk.bf16.vlgmr.msra.gmra.mxu0 %vm1451_vm14, %v1429_v54  ;;  %v5300_v35 = vrot.slane %v827_v52, 9  ;;  %1092 = vst [vmem:[#allocation2 + $0xb0] sm:$0x1] %v1091_v53  ;;  %v618_v53 = vshll.u32 %v354_v14, 16 }
  0xb8   : > { %v785_v40 = vsel %vm5898_vm6, %v6331_v55, %v784_v0  ;;  %v2308_v0 = vrot.slane %v6268_v4, 1 }
  0xb9   : > { %786 = vst [vmem:[#allocation2 + $0xb4] sm:$0xf] %v785_v40 }
  0xba   : > { %v1391_v33 = vpop.permute.xlu1 %1390 }
  0xbd   : > { %v1340_v60 = vpop.permute.xlu0 %1339 }
  0xbe   : > { %v1412_v63 = vsel %vm1404_vm12, %v5811_v62, %v1340_v60  ;;  %v613_v60 = vrot.slane %v6323_v43, 4  ;;  %v946_v62 = vsel %vm5904_vm7, %v5300_v35, %v945_v59  ;;  %v2062_v11 = vld [vmem:[#allocation2 + $0xb0] sm:$0x1]  ;;  %v626_v35 = vshll.u32 %v355_v15, 16 }
  0xbf   : > { %v6306_v3 = vsel %vm1425_vm13, %v1412_v63, %v1391_v33  ;;  %v2205_v33 = vrot.slane %v2203_v51, 1  ;;  %947 = vst [vmem:[#allocation2 + $0xa8] sm:$0x1] %v946_v62  ;;  %v2138_v12 = vunpack.c.l.b16 %v2062_v11  ;;  %v630_v59 = vrot.slane %v625_v49, 4  ;;  %v791_v62 = vld [vmem:[#allocation2 + $0xc0] sm:$0xf] }
  0xc0   : > { %5391 = vmatmul.msk.bf16.gmra.mxu2 %vm1451_vm14, %v6306_v3  ;;  %v789_v7 = vsel %vm5904_vm7, %v613_v60, %v788_v1  ;;  %v828_v24 = vld [vmem:[#allocation2 + $0xb4] sm:$0x2]  ;;  %v628_v46 = vor.u32 %v626_v35, %v625_v49 }
  0xc1   : > { %v2206_v2 = vor.u32 %v2205_v33, %v2201_v58  ;;  %790 = vst [vmem:[#allocation2 + $0xbc] sm:$0x1] %v789_v7  ;;  %v6362_v17 = vpack.c.b16 %v2138_v12, %v2138_v12  ;;  %v620_v33 = vor.u32 %v618_v53, %v617_v47 }
  0xc3   : > { %v2211_v8 = vsel %vm1212_vm9, %v2206_v2, %v2210_v6  ;;  %v2311_v34 = vrot.slane %v6362_v17, 1  ;;  %v792_v1 = vsel %vm5898_vm6, %v620_v33, %v791_v62  ;;  %v795_v2 = vld [vmem:[#allocation2 + $0xc8] sm:$0x1] }
  0xc4   : > { %5379 = vmatmul.msk.bf16.gmra.mxu1 %vm1451_vm14, %v1429_v54  ;;  %v604_v54 = vrot.slane %v600_v42, 4  ;;  %2280 = vrot.lane.b32.xlu2 %v2211_v8, %s5821_s30  ;;  %793 = vst [vmem:[#allocation2 + $0xc0] sm:$0xf] %v792_v1  ;;  %v796_v40 = vsel %vm5904_vm7, %v630_v59, %v795_v2 }
  0xc5   : > { %v1393_v38 = vpop.permute.xlu0 %1392  ;;  %797 = vst [vmem:[#allocation2 + $0xc8] sm:$0x1] %v796_v40 }
  0xc6   : > { %v6326_v50 = vsel %vm1425_vm13, %v1414_v36, %v1393_v38  ;;  %v612_v63 = vsel %vm5890_vm5, %v604_v54, %v611_v57  ;;  %v5301_v36 = vrot.slane %v828_v24, 9  ;;  %v948_v38 = vld [vmem:[#allocation2 + $0xb4] sm:$0x1]  ;;  %v621_v54 = vrot.slane %v617_v47, 4 }
  0xc7   : > { %5367 = vmatmul.msk.bf16.gmra.mxu0 %vm1451_vm14, %v6283_v29  ;;  %787 = vst.msk [vmem:[#allocation2 + $0xb8] sm:$0xf] %vm680_vm2, %v612_v63 }
  0xc8   : > { %809 = vst.msk [vmem:[#allocation2 + $0xd0] sm:$0xf] %vm680_vm2, %v612_v63  ;;  %v1093_v42 = vld [vmem:[#allocation2 + $0xbc] sm:$0x1]  ;;  %v949_v51 = vsel %vm5904_vm7, %v5301_v36, %v948_v38  ;;  %v2307_v63 = vrot.slane %v6240_v37, 1  ;;  %v629_v6 = vsel %vm5890_vm5, %v621_v54, %v628_v46 }
  0xc9   : > { %950 = vst [vmem:[#allocation2 + $0xb4] sm:$0x1] %v949_v51  ;;  %v1348_v62 = vpop.permute.xlu2 %1347 }
  0xca   : > { %v1344_v5 = vpop.permute.xlu1 %1343  ;;  %v2309_v7 = vsel %vm1353_vm10, %v2307_v63, %v2308_v0  ;;  %794 = vst.msk [vmem:[#allocation2 + $0xc4] sm:$0xf] %vm680_vm2, %v629_v6 }
  0xcb   : > { %v1416_v28 = vsel %vm1404_vm12, %v6065_v45, %v1344_v5 }
  0xcc   : > { %v6372_v45 = vsel %vm1425_vm13, %v1416_v28, %v1395_v41  ;;  %2332 = vrot.lane.b32.xlu2 %v2309_v7, %s5822_s8  ;;  %v951_v28 = vld [vmem:[#allocation2 + $0xc0] sm:$0x1] }
  0xce   : > { %v972_v18 = vld [vmem:[#allocation2 + $0xb8] sm:$0x8] }
  0xcf   : > { %v5319_v52 = vrot.slane %v972_v18, 11 }
  0xd0   : > { %5392 = vmatmul.msk.bf16.gmra.mxu2 %vm1451_vm14, %v6326_v50  ;;  %v6392_v4 = vld [vmem:[#allocation2 + $0xb4] sm:$0xff] }
  0xd1   : > { %v1094_v58 = vsel %vm5937_vm8, %v5319_v52, %v1093_v42  ;;  %v2239_v5 = vshll.u32 %v6392_v4, 16  ;;  %v2237_v13 = vshrl.u32 %v6392_v4, 16  ;;  %v973_v30 = vld [vmem:[#allocation2 + $0xc4] sm:$0x8]  ;;  %v2232_v52 = vshll.u32 %v6362_v17, 16 }
  0xd2   : > { %v1397_v57 = vpop.permute.xlu1 %1396  ;;  %1095 = vst [vmem:[#allocation2 + $0xbc] sm:$0x1] %v1094_v58  ;;  %v5320_v41 = vrot.slane %v973_v30, 11 }
  0xd3   : > { %v2241_v14 = vrot.slane %v2239_v5, 1  ;;  %v2234_v54 = vrot.slane %v2232_v52, 1  ;;  %v1420_v5 = vsel %vm1404_vm12, %v6112_v61, %v1348_v62 }
  0xd4   : > { %5380 = vmatmul.msk.bf16.gmra.mxu1 %vm1451_vm14, %v6283_v29  ;;  %v6360_v29 = vld [vmem:[#allocation2 + $0xa8] sm:$0xff]  ;;  %v1346_v39 = vpop.permute.xlu0 %1345 }
  0xd5   : > { %v2310_v32 = vrot.slane %v6360_v29, 1  ;;  %v1418_v31 = vsel %vm1404_vm12, %v6088_v21, %v1346_v39  ;;  %v2227_v49 = vshll.u32 %v6360_v29, 16 }
  0xd6   : > { %v6412_v42 = vsel %vm1425_vm13, %v1418_v31, %v1397_v57  ;;  %v2313_v31 = vrot.slane %v6392_v4, 1 }
  0xd7   : > { %5368 = vmatmul.msk.bf16.gmra.mxu0 %vm1451_vm14, %v6306_v3  ;;  %v2312_v19 = vsel %vm1353_vm10, %v2310_v32, %v2311_v34  ;;  %v1096_v32 = vld [vmem:[#allocation2 + $0xc8] sm:$0x1]  ;;  %v2242_v34 = vor.u32 %v2241_v14, %v2237_v13  ;;  %v2229_v51 = vrot.slane %v2227_v49, 1 }
  0xd8   : > { %2334 = vrot.lane.b32.xlu0 %v2312_v19, %s5822_s8  ;;  %v1097_v18 = vsel %vm5937_vm8, %v5320_v41, %v1096_v32  ;;  %v2225_v19 = vshrl.u32 %v6360_v29, 16 }
  0xd9   : > { %v2065_v11 = vld [vmem:[#allocation2 + $0xbc] sm:$0x1]  ;;  %1098 = vst [vmem:[#allocation2 + $0xc8] sm:$0x1] %v1097_v18 }
  0xda   : > { %v2139_v12 = vunpack.c.l.b16 %v2065_v11  ;;  %v2230_v53 = vor.u32 %v2229_v51, %v2225_v19  ;;  %v810_v11 = vld [vmem:[#allocation2 + $0xd4] sm:$0x1] }
  0xdb   : > { %v811_v13 = vsel %vm5904_vm7, %v613_v60, %v810_v11 }
  0xdc   : > { %v6394_v8 = vpop.permute.xlu0 %1398  ;;  %v6402_v15 = vpack.c.b16 %v2139_v12, %v2139_v12  ;;  %v2235_v57 = vsel %vm1212_vm9, %v2230_v53, %v2234_v54  ;;  %v806_v12 = vld [vmem:[#allocation2 + $0xcc] sm:$0xf]  ;;  %812 = vst [vmem:[#allocation2 + $0xd4] sm:$0x1] %v811_v13 }
  0xdd   : > { %2284 = vrot.lane.b32.xlu2 %v2235_v57, %s5821_s30  ;;  %v1441_v61 = vsel %vm1425_vm13, %v1420_v5, %v6394_v8 }
  0xde   : > { %v2244_v36 = vshll.u32 %v6402_v15, 16 }
  0xdf   : > { %v6400_v48 = vpop.permute.xlu1 %1349 }
  0xe0   : > { %5393 = vmatmul.msk.bf16.gmra.mxu2 %vm1451_vm14, %v6372_v45  ;;  %v2246_v47 = vrot.slane %v2244_v36, 1  ;;  %v2068_v33 = vld [vmem:[#allocation2 + $0xc8] sm:$0x1]  ;;  %v1401_v60 = vpop.permute.xlu2 %1400 }
  0xe1   : > { %v2140_v46 = vunpack.c.l.b16 %v2068_v33 }
  0xe2   : > { %v2247_v39 = vsel %vm1212_vm9, %v2242_v34, %v2246_v47 }
  0xe3   : > { %2286 = vrot.lane.b32.xlu1 %v2247_v39, %s5821_s30  ;;  %v2150_v63 = vpack.c.b16 %v2140_v46, %v2140_v46  ;;  %v1099_v34 = vld [vmem:[#allocation2 + $0xd4] sm:$0x1] }
  0xe4   : > { %5381 = vmatmul.msk.bf16.gmra.mxu1 %vm1451_vm14, %v6306_v3  ;;  %v829_v3 = vld [vmem:[#allocation2 + $0xc0] sm:$0x2] }
  0xe5   : > { %v5302_v24 = vrot.slane %v829_v3, 9  ;;  %v2317_v7 = vrot.slane %v2150_v63, 1 }
  0xe7   : > { %5369 = vmatmul.msk.bf16.gmra.mxu0 %vm1451_vm14, %v6326_v50  ;;  %v952_v38 = vsel %vm5904_vm7, %v5302_v24, %v951_v28  ;;  %v2325_v35 = vpop.permute.xlu1 %2324  ;;  %v807_v24 = vsel %vm5898_vm6, %v6331_v55, %v806_v12  ;;  %v2314_v28 = vrot.slane %v6402_v15, 1  ;;  %v974_v55 = vld [vmem:[#allocation2 + $0xd0] sm:$0x8] }
  0xe8   : > { %953 = vst [vmem:[#allocation2 + $0xc0] sm:$0x1] %v952_v38  ;;  %v5321_v41 = vrot.slane %v974_v55, 11 }
  0xe9   : > { %v2275_v21 = vpop.permute.xlu0 %2274  ;;  %808 = vst [vmem:[#allocation2 + $0xcc] sm:$0xf] %v807_v24  ;;  %v2315_v32 = vsel %vm1353_vm10, %v2313_v31, %v2314_v28 }
  0xea   : > { %v2345_v17 = vsel %vm1404_vm12, %v6146_v56, %v2275_v21  ;;  %v2256_v56 = vshll.u32 %v2150_v63, 16  ;;  %2336 = vrot.lane.b32.xlu2 %v2315_v32, %s5822_s8  ;;  %v1100_v38 = vsel %vm5937_vm8, %v5321_v41, %v1099_v34 }
  0xeb   : > { %v6435_v2 = vsel %vm1425_vm13, %v2345_v17, %v2325_v35  ;;  %1101 = vst [vmem:[#allocation2 + $0xd4] sm:$0x1] %v1100_v38 }
  0xec   : > { %5438 = vmatmul.msk.bf16.vlgmr.msra.gmra.mxu3 %vm1451_vm14, %v6435_v2  ;;  %v2258_v14 = vrot.slane %v2256_v56, 1 }
  0xef   : > { %v6424_v58 = vld [vmem:[#allocation2 + $0xc0] sm:$0xff] }
  0xf0   : > { %5394 = vmatmul.msk.bf16.gmra.mxu2 %vm1451_vm14, %v6412_v42  ;;  %v2251_v59 = vshll.u32 %v6424_v58, 16  ;;  %v2316_v1 = vrot.slane %v6424_v58, 1  ;;  %v830_v36 = vld [vmem:[#allocation2 + $0xcc] sm:$0x2]  ;;  %v954_v47 = vld [vmem:[#allocation2 + $0xcc] sm:$0x1] }
  0xf1   : > { %v6437_v6 = vpop.permute.xlu0 %2322  ;;  %v5303_v18 = vrot.slane %v830_v36, 9 }
  0xf2   : > { %v2253_v0 = vrot.slane %v2251_v59, 1  ;;  %v2318_v3 = vsel %vm1353_vm10, %v2316_v1, %v2317_v7  ;;  %v2277_v30 = vpop.permute.xlu1 %2276  ;;  %v2071_v39 = vld [vmem:[#allocation2 + $0xd4] sm:$0x1] }
  0xf3   : > { %2338 = vrot.lane.b32.xlu1 %v2318_v3, %s5822_s8  ;;  %v955_v15 = vsel %vm5904_vm7, %v5303_v18, %v954_v47  ;;  %v2141_v19 = vunpack.c.l.b16 %v2071_v39  ;;  %v2347_v51 = vsel %vm1404_vm12, %v6185_v9, %v2277_v30 }
  0xf4   : > { %5382 = vmatmul.msk.bf16.gmra.mxu1 %vm1451_vm14, %v6326_v50  ;;  %v2249_v50 = vshrl.u32 %v6424_v58, 16  ;;  %956 = vst [vmem:[#allocation2 + $0xcc] sm:$0x1] %v955_v15 }
  0xf5   : > { %v2151_v35 = vpack.c.b16 %v2141_v19, %v2141_v19 }
  0xf6   : > { %v2254_v40 = vor.u32 %v2253_v0, %v2249_v50 }
  0xf7   : > { %5370 = vmatmul.msk.bf16.gmra.mxu0 %vm1451_vm14, %v6372_v45 }
  0xf8   : > { %v2259_v43 = vsel %vm1212_vm9, %v2254_v40, %v2258_v14  ;;  %v2268_v40 = vshll.u32 %v2151_v35, 16 }
  0xf9   : > { %2288 = vrot.lane.b32.xlu0 %v2259_v43, %s5821_s30  ;;  %v2279_v8 = vpop.permute.xlu0 %2278 }
  0xfa   : > { %v2329_v49 = vpop.permute.xlu1 %2328  ;;  %v2349_v50 = vsel %vm1404_vm12, %v6202_v20, %v2279_v8  ;;  %v2270_v20 = vrot.slane %v2268_v40, 1  ;;  %v1985_v8 = vld [vmem:[#allocation3 + $0xc] sm:$0xf] }
  0xfb   : > { %v6475_v54 = vld [vmem:[#allocation2 + $0xcc] sm:$0xff]  ;;  %v6496_v0 = vsel %vm1425_vm13, %v2349_v50, %v2329_v49 }
  0xfc   : > { %v2273_v21 = vpop.permute.xlu2 %2272 }
  0xfd   : > { %v2343_v3 = vsel %vm1404_vm12, %v6171_v44, %v2273_v21 }
 0x100   : > { %5395 = vmatmul.msk.bf16.gmra.mxu2 %vm1451_vm14, %v1441_v61 }
 0x101   : > { %v2331_v53 = vpop.permute.xlu0 %2330 }
 0x104   : > { %5383 = vmatmul.msk.bf16.gmra.mxu1 %vm1451_vm14, %v6372_v45  ;;  %v1422_v45 = vsel %vm1404_vm12, %v6123_v26, %v6400_v48  ;;  %v2327_v57 = vpop.permute.xlu2 %2326  ;;  %v2319_v26 = vrot.slane %v6475_v54, 1  ;;  %v2320_v48 = vrot.slane %v2151_v35, 1 }
 0x105   : > { %v1443_v52 = vsel %vm1425_vm13, %v1422_v45, %v1401_v60  ;;  %v6479_v17 = vsel %vm1425_vm13, %v2347_v51, %v2327_v57 }
 0x106   : > { %5439 = vmatmul.msk.bf16.gmra.mxu3 %vm1451_vm14, %v6479_v17  ;;  %v2321_v9 = vsel %vm1353_vm10, %v2319_v26, %v2320_v48 }
 0x107   : > { %5371 = vmatmul.msk.bf16.gmra.mxu0 %vm1451_vm14, %v6412_v42  ;;  %2340 = vrot.lane.b32.xlu0 %v2321_v9, %s5822_s8 }
 0x109   : > { %v2283_v33 = vpop.permute.xlu1 %2282  ;;  %v1352_v46 = vpop.permute.xlu0 %1351 }
 0x10a   : > { %v1424_v59 = vsel %vm1404_vm12, %v6225_v22, %v1352_v46  ;;  %v2261_v22 = vshrl.u32 %v6475_v54, 16  ;;  %v2353_v34 = vsel %vm1404_vm12, %v6240_v37, %v2283_v33 }
 0x110   : > { %5396 = vmatmul.msk.bf16.gmra.mxu2 %vm1451_vm14, %v1443_v52 }
 0x111   : > { %v1403_v62 = vpop.permute.xlu1 %1402 }
 0x112   : > { %v1445_v63 = vsel %vm1425_vm13, %v1424_v59, %v1403_v62 }
 0x114   : > { %5384 = vmatmul.msk.bf16.gmra.mxu1 %vm1451_vm14, %v6412_v42  ;;  %v2263_v42 = vshll.u32 %v6475_v54, 16 }
 0x116   : > { %5440 = vmatmul.msk.bf16.gmra.mxu3 %vm1451_vm14, %v6496_v0  ;;  %v2265_v1 = vrot.slane %v2263_v42, 1 }
 0x117   : > { %5372 = vmatmul.msk.bf16.gmra.mxu0 %vm1451_vm14, %v1441_v61 }
 0x118   : > { %v2266_v56 = vor.u32 %v2265_v1, %v2261_v22 }
 0x11a   : > { %v2271_v7 = vsel %vm1212_vm9, %v2266_v56, %v2270_v20 }
 0x11b   : > { %2290 = vrot.lane.b32.xlu2 %v2271_v7, %s5821_s30 }
 0x11e   : > { %v2281_v5 = vpop.permute.xlu2 %2280 }
 0x11f   : > { %v2351_v13 = vsel %vm1404_vm12, %v6229_v25, %v2281_v5 }
 0x120   : > { %5397 = vmatmul.msk.bf16.gmra.mxu2 %vm1451_vm14, %v1445_v63  ;;  %v6509_v14 = vsel %vm1425_vm13, %v2351_v13, %v2331_v53 }
 0x124   : > { %5385 = vmatmul.msk.bf16.gmra.mxu1 %vm1451_vm14, %v1441_v61  ;;  %v2363_v61 = vsel %vm1425_vm13, %v2343_v3, %v6437_v6 }
 0x126   : > { %5441 = vmatmul.msk.bf16.gmra.mxu3 %vm1451_vm14, %v6509_v14  ;;  %v2333_v18 = vpop.permute.xlu2 %2332 }
 0x127   : > { %5373 = vmatmul.msk.bf16.gmra.mxu0 %vm1451_vm14, %v1443_v52  ;;  %v6533_v15 = vsel %vm1425_vm13, %v2353_v34, %v2333_v18  ;;  %v1989_v52 = vld [vmem:[#allocation3 + $0x14] sm:$0x1] }
 0x129   : > { %v1599_v11 = vpop.f32.mrf.mxu2 }
 0x131   : > { %v1540_v12 = vpop.f32.mrf.mxu1  ;;  %v1601_v31 = vpop.f32.mrf.mxu2 }
 0x134   : > { %5454 = vmatmul.msk.bf16.vlgmr.msrb.gmra.mxu1 %vm1451_vm14, %v6479_v17  ;;  %v1481_v24 = vpop.f32.mrf.mxu0 }
 0x135   : > { %v1541_v30 = vadd.f32 %v1540_v12, %v1481_v24 }
 0x136   : > { %5442 = vmatmul.msk.bf16.gmra.mxu3 %vm1451_vm14, %v6533_v15 }
 0x137   : > { %v6519_v43 = vadd.f32 %v1599_v11, %v1541_v30  ;;  %5446 = vmatmul.msk.bf16.vlgmr.msrb.gmra.mxu0 %vm1451_vm14, %v2363_v61  ;;  %v2285_v56 = vpop.permute.xlu2 %2284 }
 0x138   : > { %v2355_v7 = vsel %vm1404_vm12, %v6360_v29, %v2285_v56 }
 0x139   : > { %v1542_v25 = vpop.f32.mrf.mxu1  ;;  %v1808_v60 = vpack.c.bf16 %v6519_v43, %v6519_v43 }
 0x13b   : > { %v1825_v28 = vshrl.u32 %v1808_v60, 16  ;;  %v1828_v41 = vshll.u32 %v1808_v60, 16  ;;  %v1996_v60 = vld [vmem:[#allocation3 + $0x20] sm:$0x1] }
 0x13c   : > { %v1483_v55 = vpop.f32.mrf.mxu0 }
 0x13d   : > { %v1827_v44 = vrot.slane %v1825_v28, 7  ;;  %v1543_v32 = vadd.f32 %v1542_v25, %v1483_v55 }
 0x13f   : > { %v1830_v36 = vor.u32 %v1828_v41, %v1827_v44  ;;  %v6526_v6 = vadd.f32 %v1601_v31, %v1543_v32  ;;  %v1831_v53 = vrot.slane %v1827_v44, 4 }
 0x141   : > { %v1545_v38 = vpop.f32.mrf.mxu1  ;;  %v1986_v47 = vsel %vm5898_vm6, %v1830_v36, %v1985_v8  ;;  %v1809_v49 = vpack.c.bf16 %v6526_v6, %v6526_v6 }
 0x142   : > { %1987 = vst [vmem:[#allocation3 + $0xc] sm:$0xf] %v1986_v47 }
 0x143   : > { %v1833_v37 = vshrl.u32 %v1809_v49, 16  ;;  %v1604_v21 = vpop.f32.mrf.mxu2  ;;  %v1836_v19 = vshll.u32 %v1809_v49, 16 }
 0x144   : > { %5455 = vmatmul.msk.bf16.gmra.mxu1 %vm1451_vm14, %v6496_v0  ;;  %v1486_v45 = vpop.f32.mrf.mxu0 }
 0x145   : > { %v1835_v39 = vrot.slane %v1833_v37, 7  ;;  %v1546_v51 = vadd.f32 %v1545_v38, %v1486_v45 }
 0x147   : > { %v1838_v35 = vor.u32 %v1836_v19, %v1835_v39  ;;  %v1840_v57 = vrot.slane %v1835_v39, 4  ;;  %v6539_v33 = vadd.f32 %v1604_v21, %v1546_v51  ;;  %5447 = vmatmul.msk.bf16.gmra.mxu0 %vm1451_vm14, %v6435_v2  ;;  %v1992_v2 = vld [vmem:[#allocation3 + $0x18] sm:$0xf] }
 0x149   : > { %v1547_v26 = vpop.f32.mrf.mxu1  ;;  %v1839_v48 = vsel %vm5890_vm5, %v1831_v53, %v1838_v35  ;;  %v1990_v9 = vsel %vm5904_vm7, %v1840_v57, %v1989_v52  ;;  %v1810_v46 = vpack.c.bf16 %v6539_v33, %v6539_v33  ;;  %v2337_v52 = vpop.permute.xlu2 %2336 }
 0x14a   : > { %1988 = vst.msk [vmem:[#allocation3 + $0x10] sm:$0xf] %vm680_vm2, %v1839_v48  ;;  %v2335_v11 = vpop.permute.xlu0 %2334 }
 0x14b   : > { %1991 = vst [vmem:[#allocation3 + $0x14] sm:$0x1] %v1990_v9  ;;  %v1842_v59 = vshrl.u32 %v1810_v46, 16  ;;  %v1606_v62 = vpop.f32.mrf.mxu2  ;;  %v1845_v42 = vshll.u32 %v1810_v46, 16  ;;  %v6559_v13 = vsel %vm1425_vm13, %v2355_v7, %v2335_v11 }
 0x14c   : > { %v1488_v63 = vpop.f32.mrf.mxu0  ;;  %5443 = vmatmul.msk.bf16.gmra.mxu3 %vm1451_vm14, %v6559_v13 }
 0x14d   : > { %v1844_v50 = vrot.slane %v1842_v59, 7  ;;  %v1548_v22 = vadd.f32 %v1547_v26, %v1488_v63  ;;  %v2003_v63 = vld [vmem:[#allocation3 + $0x2c] sm:$0x1] }
 0x14f   : > { %v1847_v1 = vor.u32 %v1845_v42, %v1844_v50  ;;  %v6550_v40 = vadd.f32 %v1606_v62, %v1548_v22  ;;  %v1848_v31 = vrot.slane %v1844_v50, 4 }
 0x151   : > { %v1550_v20 = vpop.f32.mrf.mxu1  ;;  %v1993_v5 = vsel %vm5898_vm6, %v1847_v1, %v1992_v2  ;;  %v1811_v12 = vpack.c.bf16 %v6550_v40, %v6550_v40 }
 0x152   : > { %1994 = vst [vmem:[#allocation3 + $0x18] sm:$0xf] %v1993_v5 }
 0x153   : > { %v1850_v3 = vshrl.u32 %v1811_v12, 16  ;;  %v1609_v24 = vpop.f32.mrf.mxu2  ;;  %v1853_v61 = vshll.u32 %v1811_v12, 16 }
 0x154   : > { %5456 = vmatmul.msk.bf16.gmra.mxu1 %vm1451_vm14, %v6509_v14  ;;  %v1491_v29 = vpop.f32.mrf.mxu0 }
 0x155   : > { %v1852_v30 = vrot.slane %v1850_v3, 7  ;;  %v1551_v25 = vadd.f32 %v1550_v20, %v1491_v29  ;;  %v2287_v53 = vpop.permute.xlu1 %2286 }
 0x156   : > { %v2357_v26 = vsel %vm1404_vm12, %v6392_v4, %v2287_v53 }
 0x157   : > { %v1855_v28 = vor.u32 %v1853_v61, %v1852_v30  ;;  %v1857_v55 = vrot.slane %v1852_v30, 4  ;;  %v6565_v44 = vadd.f32 %v1609_v24, %v1551_v25  ;;  %5448 = vmatmul.msk.bf16.gmra.mxu0 %vm1451_vm14, %v6479_v17  ;;  %v1999_v17 = vld [vmem:[#allocation3 + $0x24] sm:$0xf]  ;;  %v6587_v9 = vsel %vm1425_vm13, %v2357_v26, %v2337_v52 }
 0x158   : > { %v1656_v52 = vsel %vm1404_vm12, %v6526_v6, 0.0  ;;  %v1658_v26 = vsel %vm1404_vm12, %v6539_v33, 0.0 }
 0x159   : > { %v1552_v41 = vpop.f32.mrf.mxu1  ;;  %v1856_v32 = vsel %vm5890_vm5, %v1848_v31, %v1855_v28  ;;  %v1997_v34 = vsel %vm5904_vm7, %v1857_v55, %v1996_v60  ;;  %v1812_v8 = vpack.c.bf16 %v6565_v44, %v6565_v44 }
 0x15a   : > { %1995 = vst.msk [vmem:[#allocation3 + $0x1c] sm:$0xf] %vm680_vm2, %v1856_v32 }
 0x15b   : > { %1998 = vst [vmem:[#allocation3 + $0x20] sm:$0x1] %v1997_v34  ;;  %v1859_v36 = vshrl.u32 %v1812_v8, 16  ;;  %v1611_v38 = vpop.f32.mrf.mxu2  ;;  %v1862_v49 = vshll.u32 %v1812_v8, 16 }
 0x15c   : > { %v1493_v18 = vpop.f32.mrf.mxu0  ;;  %5444 = vmatmul.msk.bf16.gmra.mxu3 %vm1451_vm14, %v6587_v9 }
 0x15d   : > { %v1861_v47 = vrot.slane %v1859_v36, 7  ;;  %v1553_v37 = vadd.f32 %v1552_v41, %v1493_v18 }
 0x15f   : > { %v1864_v21 = vor.u32 %v1862_v49, %v1861_v47  ;;  %v6576_v45 = vadd.f32 %v1611_v38, %v1553_v37  ;;  %v1865_v50 = vrot.slane %v1861_v47, 4  ;;  %v2010_v47 = vld [vmem:[#allocation3 + $0x38] sm:$0x1] }
 0x161   : > { %v1555_v39 = vpop.f32.mrf.mxu1  ;;  %v2000_v19 = vsel %vm5898_vm6, %v1864_v21, %v1999_v17  ;;  %v1813_v51 = vpack.c.bf16 %v6576_v45, %v6576_v45 }
 0x162   : > { %2001 = vst [vmem:[#allocation3 + $0x24] sm:$0xf] %v2000_v19 }
 0x163   : > { %v1867_v35 = vshrl.u32 %v1813_v51, 16  ;;  %v1614_v57 = vpop.f32.mrf.mxu2  ;;  %v1870_v59 = vshll.u32 %v1813_v51, 16 }
 0x164   : > { %5457 = vmatmul.msk.bf16.gmra.mxu1 %vm1451_vm14, %v6533_v15  ;;  %v1496_v48 = vpop.f32.mrf.mxu0 }
 0x165   : > { %v1869_v46 = vrot.slane %v1867_v35, 7  ;;  %v1556_v62 = vadd.f32 %v1555_v39, %v1496_v48  ;;  %v2339_v55 = vpop.permute.xlu1 %2338 }
 0x167   : > { %v1872_v42 = vor.u32 %v1870_v59, %v1869_v46  ;;  %v1874_v22 = vrot.slane %v1869_v46, 4  ;;  %v6591_v2 = vadd.f32 %v1614_v57, %v1556_v62  ;;  %5449 = vmatmul.msk.bf16.gmra.mxu0 %vm1451_vm14, %v6496_v0  ;;  %v2006_v0 = vld [vmem:[#allocation3 + $0x30] sm:$0xf] }
 0x169   : > { %v1557_v4 = vpop.f32.mrf.mxu1  ;;  %v1873_v1 = vsel %vm5890_vm5, %v1865_v50, %v1872_v42  ;;  %v2004_v56 = vsel %vm5904_vm7, %v1874_v22, %v2003_v63  ;;  %v1814_v20 = vpack.c.bf16 %v6591_v2, %v6591_v2  ;;  %v2013_v63 = vld [vmem:[#allocation3 + $0x3c] sm:$0xf]  ;;  %v1660_v50 = vsel %vm1404_vm12, %v6550_v40, 0.0 }
 0x16a   : > { %2002 = vst.msk [vmem:[#allocation3 + $0x28] sm:$0xf] %vm680_vm2, %v1873_v1 }
 0x16b   : > { %2005 = vst [vmem:[#allocation3 + $0x2c] sm:$0x1] %v2004_v56  ;;  %v1876_v7 = vshrl.u32 %v1814_v20, 16  ;;  %v1616_v11 = vpop.f32.mrf.mxu2  ;;  %v1879_v3 = vshll.u32 %v1814_v20, 16  ;;  %v2289_v25 = vpop.permute.xlu0 %2288  ;;  %v1662_v56 = vsel %vm1404_vm12, %v6565_v44, 0.0 }
 0x16c   : > { %v1498_v5 = vpop.f32.mrf.mxu0  ;;  %v2359_v28 = vsel %vm1404_vm12, %v6424_v58, %v2289_v25 }
 0x16d   : > { %v1878_v12 = vrot.slane %v1876_v7, 7  ;;  %v1558_v24 = vadd.f32 %v1557_v4, %v1498_v5  ;;  %v6611_v41 = vsel %vm1425_vm13, %v2359_v28, %v2339_v55  ;;  %v1664_v5 = vsel %vm1404_vm12, %v6576_v45, 0.0  ;;  %v2017_v55 = vld [vmem:[#allocation3 + $0x44] sm:$0x1] }
 0x16e   : > { %5445 = vmatmul.msk.bf16.gmra.mxu3 %vm1451_vm14, %v6611_v41 }
 0x16f   : > { %v1881_v29 = vor.u32 %v1879_v3, %v1878_v12  ;;  %v6602_v30 = vadd.f32 %v1616_v11, %v1558_v24  ;;  %v1882_v49 = vrot.slane %v1878_v12, 4 }
 0x171   : > { %v1560_v61 = vpop.f32.mrf.mxu1  ;;  %v2007_v60 = vsel %vm5898_vm6, %v1881_v29, %v2006_v0  ;;  %v1815_v31 = vpack.c.bf16 %v6602_v30, %v6602_v30  ;;  %v1666_v29 = vsel %vm1404_vm12, %v6591_v2, 0.0  ;;  %v1668_v28 = vsel %vm1404_vm12, %v6602_v30, 0.0 }
 0x172   : > { %2008 = vst [vmem:[#allocation3 + $0x30] sm:$0xf] %v2007_v60 }
 0x173   : > { %v1884_v32 = vshrl.u32 %v1815_v31, 16  ;;  %v1619_v34 = vpop.f32.mrf.mxu2  ;;  %v1887_v38 = vshll.u32 %v1815_v31, 16 }
 0x174   : > { %5458 = vmatmul.msk.bf16.gmra.mxu1 %vm1451_vm14, %v6559_v13  ;;  %v1501_v8 = vpop.f32.mrf.mxu0 }
 0x175   : > { %v1886_v36 = vrot.slane %v1884_v32, 7  ;;  %v1561_v18 = vadd.f32 %v1560_v61, %v1501_v8 }
 0x177   : > { %v1889_v58 = vor.u32 %v1887_v38, %v1886_v36  ;;  %v1891_v37 = vrot.slane %v1886_v36, 4  ;;  %v6617_v17 = vadd.f32 %v1619_v34, %v1561_v18  ;;  %5450 = vmatmul.msk.bf16.gmra.mxu0 %vm1451_vm14, %v6509_v14  ;;  %v1655_v14 = vsel %vm1404_vm12, %v6519_v43, 0.0 }
 0x178   : > { %v1657_v62 = vadd.f32 %v1656_v52, %v1655_v14 }
 0x179   : > { %v1562_v21 = vpop.f32.mrf.mxu1  ;;  %v1890_v39 = vsel %vm5890_vm5, %v1882_v49, %v1889_v58  ;;  %v2011_v19 = vsel %vm5904_vm7, %v1891_v37, %v2010_v47  ;;  %v1816_v51 = vpack.c.bf16 %v6617_v17, %v6617_v17  ;;  %v1670_v47 = vsel %vm1404_vm12, %v6617_v17, 0.0 }
 0x17a   : > { %2009 = vst.msk [vmem:[#allocation3 + $0x34] sm:$0xf] %vm680_vm2, %v1890_v39  ;;  %v1659_v4 = vadd.f32 %v1658_v26, %v1657_v62 }
 0x17b   : > { %2012 = vst [vmem:[#allocation3 + $0x38] sm:$0x1] %v2011_v19  ;;  %v1893_v53 = vshrl.u32 %v1816_v51, 16  ;;  %v1621_v35 = vpop.f32.mrf.mxu2  ;;  %v1896_v46 = vshll.u32 %v1816_v51, 16 }
 0x17c   : > { %v1503_v57 = vpop.f32.mrf.mxu0  ;;  %v1661_v11 = vadd.f32 %v1660_v50, %v1659_v4 }
 0x17d   : > { %v1895_v48 = vrot.slane %v1893_v53, 7  ;;  %v1563_v59 = vadd.f32 %v1562_v21, %v1503_v57 }
 0x17e   : > { %v1663_v24 = vadd.f32 %v1662_v56, %v1661_v11 }
 0x17f   : > { %v1898_v42 = vor.u32 %v1896_v46, %v1895_v48  ;;  %v6636_v22 = vadd.f32 %v1621_v35, %v1563_v59  ;;  %v1899_v32 = vrot.slane %v1895_v48, 4  ;;  %v2020_v48 = vld [vmem:[#allocation3 + $0x48] sm:$0xf] }
 0x180   : > { %v1665_v31 = vadd.f32 %v1664_v5, %v1663_v24  ;;  %v6679_v24 = vpop.f32.mrf.mxu3 }
 0x181   : > { %v1565_v1 = vpop.f32.mrf.mxu1  ;;  %v2014_v20 = vsel %vm5898_vm6, %v1898_v42, %v2013_v63  ;;  %v1817_v7 = vpack.c.bf16 %v6636_v22, %v6636_v22 }
 0x182   : > { %2015 = vst [vmem:[#allocation3 + $0x3c] sm:$0xf] %v2014_v20  ;;  %v1667_v38 = vadd.f32 %v1666_v29, %v1665_v31 }
 0x183   : > { %v1901_v12 = vshrl.u32 %v1817_v7, 16  ;;  %v1624_v3 = vpop.f32.mrf.mxu2  ;;  %v1904_v25 = vshll.u32 %v1817_v7, 16 }
 0x184   : > { %5459 = vmatmul.msk.bf16.gmra.mxu1 %vm1451_vm14, %v6587_v9  ;;  %v1506_v0 = vpop.f32.mrf.mxu0  ;;  %v1669_v21 = vadd.f32 %v1668_v28, %v1667_v38 }
 0x185   : > { %v1903_v61 = vrot.slane %v1901_v12, 7  ;;  %v1566_v60 = vadd.f32 %v1565_v1, %v1506_v0 }
 0x186   : > { %v1671_v51 = vadd.f32 %v1670_v47, %v1669_v21  ;;  %v2027_v21 = vld [vmem:[#allocation3 + $0x54] sm:$0xf] }
 0x187   : > { %v1906_v34 = vor.u32 %v1904_v25, %v1903_v61  ;;  %v1908_v8 = vrot.slane %v1903_v61, 4  ;;  %v6652_v36 = vadd.f32 %v1624_v3, %v1566_v60  ;;  %5451 = vmatmul.msk.bf16.gmra.mxu0 %vm1451_vm14, %v6533_v15  ;;  %v1672_v15 = vsel %vm1404_vm12, %v6636_v22, 0.0  ;;  %v2024_v3 = vld [vmem:[#allocation3 + $0x50] sm:$0x1] }
 0x188   : > { %v1673_v26 = vadd.f32 %v1672_v15, %v1671_v51 }
 0x189   : > { %v1567_v18 = vpop.f32.mrf.mxu1  ;;  %v1907_v49 = vsel %vm5890_vm5, %v1899_v32, %v1906_v34  ;;  %v2018_v58 = vsel %vm5904_vm7, %v1908_v8, %v2017_v55  ;;  %v1818_v37 = vpack.c.bf16 %v6652_v36, %v6652_v36  ;;  %v1674_v53 = vsel %vm1404_vm12, %v6652_v36, 0.0  ;;  %v2291_v34 = vpop.permute.xlu2 %2290 }
 0x18a   : > { %2016 = vst.msk [vmem:[#allocation3 + $0x40] sm:$0xf] %vm680_vm2, %v1907_v49  ;;  %v1675_v62 = vadd.f32 %v1674_v53, %v1673_v26 }
 0x18b   : > { %2019 = vst [vmem:[#allocation3 + $0x44] sm:$0x1] %v2018_v58  ;;  %v1910_v39 = vshrl.u32 %v1818_v37, 16  ;;  %v1626_v19 = vpop.f32.mrf.mxu2  ;;  %v1913_v14 = vshll.u32 %v1818_v37, 16  ;;  %v2361_v58 = vsel %vm1404_vm12, %v6475_v54, %v2291_v34  ;;  %v2341_v37 = vpop.permute.xlu0 %2340  ;;  %v2034_v34 = vld [vmem:[#allocation3 + $0x60] sm:$0xf] }
 0x18c   : > { %v1508_v52 = vpop.f32.mrf.mxu0  ;;  %v2381_v51 = vsel %vm1425_vm13, %v2361_v58, %v2341_v37 }
 0x18d   : > { %v1912_v35 = vrot.slane %v1910_v39, 7  ;;  %v1568_v57 = vadd.f32 %v1567_v18, %v1508_v52  ;;  %v6699_v52 = vpop.f32.mrf.mxu3 }
 0x18f   : > { %v1915_v46 = vor.u32 %v1913_v14, %v1912_v35  ;;  %v6669_v59 = vadd.f32 %v1626_v19, %v1568_v57  ;;  %v1916_v0 = vrot.slane %v1912_v35, 4 }
 0x191   : > { %v1570_v63 = vpop.f32.mrf.mxu1  ;;  %v2021_v50 = vsel %vm5898_vm6, %v1915_v46, %v2020_v48  ;;  %v1676_v42 = vsel %vm1404_vm12, %v6669_v59, 0.0  ;;  %v1819_v4 = vpack.c.bf16 %v6669_v59, %v6669_v59  ;;  %v5823_v46 = vmov 128.0  }
 0x192   : > { %2022 = vst [vmem:[#allocation3 + $0x48] sm:$0xf] %v2021_v50  ;;  %v1677_v1 = vadd.f32 %v1676_v42, %v1675_v62  ;;  %5803 = vrcp.f32 %v5823_v46  ;;  %v2031_v42 = vld [vmem:[#allocation3 + $0x5c] sm:$0x1] }
 0x193   : > { %v1918_v56 = vshrl.u32 %v1819_v4, 16  ;;  %v1629_v20 = vpop.f32.mrf.mxu2  ;;  %v1921_v5 = vshll.u32 %v1819_v4, 16 }
 0x194   : > { %5460 = vmatmul.msk.bf16.gmra.mxu1 %vm1451_vm14, %v6611_v41  ;;  %v1511_v7 = vpop.f32.mrf.mxu0 }
 0x195   : > { %v1920_v11 = vrot.slane %v1918_v56, 7  ;;  %v1571_v12 = vadd.f32 %v1570_v63, %v1511_v7 }
 0x197   : > { %v1923_v29 = vor.u32 %v1921_v5, %v1920_v11  ;;  %v1925_v61 = vrot.slane %v1920_v11, 4  ;;  %v6681_v25 = vadd.f32 %v1629_v20, %v1571_v12  ;;  %5452 = vmatmul.msk.bf16.gmra.mxu0 %vm1451_vm14, %v6559_v13 }
 0x199   : > { %v1572_v60 = vpop.f32.mrf.mxu1  ;;  %v1924_v31 = vsel %vm5890_vm5, %v1916_v0, %v1923_v29  ;;  %v2025_v41 = vsel %vm5904_vm7, %v1925_v61, %v2024_v3  ;;  %v1678_v28 = vsel %vm1404_vm12, %v6681_v25, 0.0  ;;  %v1820_v55 = vpack.c.bf16 %v6681_v25, %v6681_v25  ;;  %v5804_v0 = vpop.eup %5803 }
 0x19a   : > { %2023 = vst.msk [vmem:[#allocation3 + $0x4c] sm:$0xf] %vm680_vm2, %v1924_v31  ;;  %v1679_v32 = vadd.f32 %v1678_v28, %v1677_v1  ;;  %v6721_v61 = vpop.f32.mrf.mxu3  ;;  %vm1697_vm15 = vweird.f32 %v5804_v0 }
 0x19b   : > { %2026 = vst [vmem:[#allocation3 + $0x50] sm:$0x1] %v2025_v41  ;;  %v1927_v8 = vshrl.u32 %v1820_v55, 16  ;;  %v1631_v13 = vpop.f32.mrf.mxu2  ;;  %v1930_v47 = vshll.u32 %v1820_v55, 16 }
 0x19c   : > { %v1513_v38 = vpop.f32.mrf.mxu0 }
 0x19d   : > { %v1929_v18 = vrot.slane %v1927_v8, 7  ;;  %v1573_v49 = vadd.f32 %v1572_v60, %v1513_v38 }
 0x19f   : > { %v1932_v15 = vor.u32 %v1930_v47, %v1929_v18  ;;  %v6696_v39 = vadd.f32 %v1631_v13, %v1573_v49  ;;  %v1933_v4 = vrot.slane %v1929_v18, 4 }
 0x1a1   : > { %v1575_v19 = vpop.f32.mrf.mxu1  ;;  %v2028_v53 = vsel %vm5898_vm6, %v1932_v15, %v2027_v21  ;;  %v1680_v35 = vsel %vm1404_vm12, %v6696_v39, 0.0  ;;  %v1821_v14 = vpack.c.bf16 %v6696_v39, %v6696_v39 }
 0x1a2   : > { %2029 = vst [vmem:[#allocation3 + $0x54] sm:$0xf] %v2028_v53  ;;  %v1681_v54 = vadd.f32 %v1680_v35, %v1679_v32  ;;  %v1693_v32 = vmul.f32 128.0, %v5804_v0 }
 0x1a3   : > { %v1935_v57 = vshrl.u32 %v1821_v14, 16  ;;  %v1634_v26 = vpop.f32.mrf.mxu2  ;;  %v1938_v63 = vshll.u32 %v1821_v14, 16 }
 0x1a4   : > { %5461 = vmatmul.msk.bf16.gmra.mxu1 %vm1451_vm14, %v2381_v51  ;;  %v1516_v48 = vpop.f32.mrf.mxu0  ;;  %v1694_v49 = vsub.f32 1.0, %v1693_v32  ;;  %v6731_v51 = vpop.f32.mrf.mxu3 }
 0x1a5   : > { %v1937_v62 = vrot.slane %v1935_v57, 7  ;;  %v1576_v50 = vadd.f32 %v1575_v19, %v1516_v48 }
 0x1a6   : > { %v1695_v53 = vmul.f32 %v5804_v0, %v1694_v49 }
 0x1a7   : > { %v1940_v1 = vor.u32 %v1938_v63, %v1937_v62  ;;  %v1942_v56 = vrot.slane %v1937_v62, 4  ;;  %v6708_v20 = vadd.f32 %v1634_v26, %v1576_v50  ;;  %5453 = vmatmul.msk.bf16.gmra.mxu0 %vm1451_vm14, %v6587_v9  ;;  %v2038_v26 = vld [vmem:[#allocation3 + $0x68] sm:$0x1] }
 0x1a9   : > { %v1577_v7 = vpop.f32.mrf.mxu1  ;;  %v1941_v11 = vsel %vm5890_vm5, %v1933_v4, %v1940_v1  ;;  %v2032_v5 = vsel %vm5904_vm7, %v1942_v56, %v2031_v42  ;;  %v1682_v12 = vsel %vm1404_vm12, %v6708_v20, 0.0  ;;  %v1822_v3 = vpack.c.bf16 %v6708_v20, %v6708_v20 }
 0x1aa   : > { %2030 = vst.msk [vmem:[#allocation3 + $0x58] sm:$0xf] %vm680_vm2, %v1941_v11  ;;  %v1683_v29 = vadd.f32 %v1682_v12, %v1681_v54  ;;  %v1696_v4 = vadd.f32 %v5804_v0, %v1695_v53 }
 0x1ab   : > { %2033 = vst [vmem:[#allocation3 + $0x5c] sm:$0x1] %v2032_v5  ;;  %v1944_v9 = vshrl.u32 %v1822_v3, 16  ;;  %v1636_v31 = vpop.f32.mrf.mxu2  ;;  %v1947_v28 = vshll.u32 %v1822_v3, 16 }
 0x1ac   : > { %v1518_v60 = vpop.f32.mrf.mxu0  ;;  %v6743_v3 = vsel %vm1697_vm15, %v5804_v0, %v1696_v4 }
 0x1ad   : > { %v1946_v41 = vrot.slane %v1944_v9, 7  ;;  %v1578_v55 = vadd.f32 %v1577_v7, %v1518_v60  ;;  %8717 = vst [vmem:[#allocation5_spill] sm:$0xff] %v6743_v3 }
 0x1af   : > { %v1949_v8 = vor.u32 %v1947_v28, %v1946_v41  ;;  %v6723_v13 = vadd.f32 %v1636_v31, %v1578_v55  ;;  %v1950_v48 = vrot.slane %v1946_v41, 4  ;;  %v2850_v31 = vld [vmem:[#allocation3 + $0x6c] sm:$0xf]  ;;  %v6747_v41 = vpop.f32.mrf.mxu3 }
 0x1b1   : > { %v2509_v38 = vpop.f32.mrf.mxu1  ;;  %v2035_v18 = vsel %vm5898_vm6, %v1949_v8, %v2034_v34  ;;  %v1684_v47 = vsel %vm1404_vm12, %v6723_v13, 0.0  ;;  %v1823_v58 = vpack.c.bf16 %v6723_v13, %v6723_v13 }
 0x1b2   : > { %2036 = vst [vmem:[#allocation3 + $0x60] sm:$0xf] %v2035_v18  ;;  %v1685_v37 = vadd.f32 %v1684_v47, %v1683_v29 }
 0x1b3   : > { %v1952_v21 = vshrl.u32 %v1823_v58, 16  ;;  %v1955_v14 = vshll.u32 %v1823_v58, 16 }
 0x1b4   : > { %v1686_v15 = vrot.slane %v1685_v37, 4  ;;  %v2458_v19 = vpop.f32.mrf.mxu0 }
 0x1b5   : > { %v1954_v35 = vrot.slane %v1952_v21, 7  ;;  %v2459_v54 = vadd.f32 %v2458_v19, %v6679_v24 }
 0x1b6   : > { %v1687_v57 = vadd.f32 %v1686_v15, %v1685_v37 }
 0x1b7   : > { %v1957_v46 = vor.u32 %v1955_v14, %v1954_v35  ;;  %v1959_v62 = vrot.slane %v1954_v35, 4  ;;  %v6734_v63 = vadd.f32 %v2509_v38, %v2459_v54  ;;  %v6775_v15 = vpop.f32.mrf.mxu3 }
 0x1b8   : > { %v1688_v50 = vrot.slane %v1687_v57, 2 }
 0x1b9   : > { %v2511_v42 = vpop.f32.mrf.mxu1  ;;  %v1958_v1 = vsel %vm5890_vm5, %v1950_v48, %v1957_v46  ;;  %v2039_v56 = vsel %vm5904_vm7, %v1959_v62, %v2038_v26  ;;  %v2673_v7 = vpack.c.bf16 %v6734_v63, %v6734_v63 }
 0x1ba   : > { %v1689_v24 = vadd.f32 %v1688_v50, %v1687_v57  ;;  %2037 = vst.msk [vmem:[#allocation3 + $0x64] sm:$0xf] %vm680_vm2, %v1958_v1 }
 0x1bb   : > { %2040 = vst [vmem:[#allocation3 + $0x68] sm:$0x1] %v2039_v56  ;;  %v2690_v11 = vshrl.u32 %v2673_v7, 16  ;;  %v2693_v9 = vshll.u32 %v2673_v7, 16 }
 0x1bc   : > { %v1690_v5 = vrot.slane %v1689_v24, 1  ;;  %v2460_v12 = vpop.f32.mrf.mxu0 }
 0x1bd   : > { %v6745_v29 = vrot.slane %v2690_v11, 7  ;;  %v2461_v0 = vadd.f32 %v2460_v12, %v6699_v52 }
 0x1be   : > { %v1691_v60 = vadd.f32 %v1690_v5, %v1689_v24 }
 0x1bf   : > { %v2695_v28 = vor.u32 %v2693_v9, %v6745_v29  ;;  %v6766_v49 = vadd.f32 %v2511_v42, %v2461_v0 }
 0x1c0   : > { %v6751_v55 = vmul.f32 %v6743_v3, %v1691_v60 }
 0x1c1   : > { %v6753_v32 = vpop.f32.mrf.mxu1  ;;  %v2851_v34 = vsel %vm5898_vm6, %v2695_v28, %v2850_v31  ;;  %v6784_v35 = vpack.c.bf16 %v6766_v49, %v6766_v49 }
 0x1c2   : > { %v1700_v8 = vsub.f32 %v6519_v43, %v6751_v55  ;;  %v1701_v38 = vsub.f32 %v6526_v6, %v6751_v55  ;;  %2852 = vst [vmem:[#allocation3 + $0x6c] sm:$0xf] %v2851_v34  ;;  %v1702_v18 = vsub.f32 %v6539_v33, %v6751_v55  ;;  %v1703_v58 = vsub.f32 %v6550_v40, %v6751_v55 }
 0x1c3   : > { %v1704_v43 = vsub.f32 %v6565_v44, %v6751_v55  ;;  %v1705_v19 = vsub.f32 %v6576_v45, %v6751_v55  ;;  %v2696_v40 = vrot.slane %v6745_v29, 4  ;;  %v1706_v14 = vsub.f32 %v6591_v2, %v6751_v55 }
 0x1c4   : > { %v6764_v47 = vpop.f32.mrf.mxu0  ;;  %v1716_v37 = vsel %vm1404_vm12, %v1700_v8, 0.0  ;;  %v1717_v52 = vsel %vm1404_vm12, %v1701_v38, 0.0  ;;  %v1719_v6 = vsel %vm1404_vm12, %v1702_v18, 0.0  ;;  %v1707_v44 = vsub.f32 %v6602_v30, %v6751_v55 }
 0x1c5   : > { %v1718_v21 = vadd.f32 %v1717_v52, %v1716_v37  ;;  %v1708_v54 = vsub.f32 %v6617_v17, %v6751_v55  ;;  %v1721_v57 = vsel %vm1404_vm12, %v1703_v58, 0.0  ;;  %v1709_v45 = vsub.f32 %v6636_v22, %v6751_v55 }
 0x1c6   : > { %v1754_v48 = vmul.f32 %v1700_v8, %v1700_v8  ;;  %v1755_v46 = vmul.f32 %v1701_v38, %v1701_v38  ;;  %v6797_v62 = vsub.f32 %v6652_v36, %v6751_v55  ;;  %v6801_v2 = vsub.f32 %v6669_v59, %v6751_v55 }
 0x1c7   : > { %v1720_v53 = vadd.f32 %v1719_v6, %v1718_v21  ;;  %v6805_v30 = vsub.f32 %v6681_v25, %v6751_v55  ;;  %v1723_v17 = vsel %vm1404_vm12, %v1704_v43, 0.0  ;;  %v6812_v22 = vsub.f32 %v6696_v39, %v6751_v55 }
 0x1c8   : > { %v6816_v36 = vsub.f32 %v6708_v20, %v6751_v55  ;;  %v1756_v4 = vmul.f32 %v1702_v18, %v1702_v18  ;;  %v6820_v59 = vsub.f32 %v6723_v13, %v6751_v55  ;;  %v1725_v25 = vsel %vm1404_vm12, %v1705_v19, 0.0 }
 0x1c9   : > { %v6777_v33 = vpop.f32.mrf.mxu1  ;;  %v1722_v26 = vadd.f32 %v1721_v57, %v1720_v53  ;;  %v1727_v1 = vsel %vm1404_vm12, %v1706_v14, 0.0  ;;  %v1729_v56 = vsel %vm1404_vm12, %v1707_v44, 0.0  ;;  %v1757_v24 = vmul.f32 %v1703_v58, %v1703_v58  ;;  %v6838_v58 = vpop.f32.mrf.mxu3 }
 0x1ca   : > { %v1770_v39 = vsel %vm1404_vm12, %v1754_v48, 0.0  ;;  %v1771_v11 = vsel %vm1404_vm12, %v1755_v46, 0.0  ;;  %v1731_v20 = vsel %vm1404_vm12, %v1708_v54, 0.0  ;;  %v1733_v5 = vsel %vm1404_vm12, %v1709_v45, 0.0 }
 0x1cb   : > { %v1724_v42 = vadd.f32 %v1723_v17, %v1722_v26  ;;  %v1758_v12 = vmul.f32 %v1704_v43, %v1704_v43  ;;  %v1772_v9 = vadd.f32 %v1771_v11, %v1770_v39  ;;  %v1759_v31 = vmul.f32 %v1705_v19, %v1705_v19 }
 0x1cc   : > { %v6808_v50 = vpop.f32.mrf.mxu0  ;;  %v1760_v28 = vmul.f32 %v1706_v14, %v1706_v14  ;;  %v1773_v34 = vsel %vm1404_vm12, %v1756_v4, 0.0  ;;  %v1735_v0 = vsel %vm1404_vm12, %v6797_v62, 0.0  ;;  %v1737_v8 = vsel %vm1404_vm12, %v6801_v2, 0.0 }
 0x1cd   : > { %v1726_v7 = vadd.f32 %v1725_v25, %v1724_v42  ;;  %v1739_v38 = vsel %vm1404_vm12, %v6805_v30, 0.0  ;;  %v1774_v18 = vadd.f32 %v1773_v34, %v1772_v9  ;;  %v1741_v52 = vsel %vm1404_vm12, %v6812_v22, 0.0 }
 0x1ce   : > { %v1761_v21 = vmul.f32 %v1707_v44, %v1707_v44  ;;  %v1775_v43 = vsel %vm1404_vm12, %v1757_v24, 0.0  ;;  %v1762_v6 = vmul.f32 %v1708_v54, %v1708_v54  ;;  %v1763_v19 = vmul.f32 %v1709_v45, %v1709_v45 }
 0x1cf   : > { %v1728_v60 = vadd.f32 %v1727_v1, %v1726_v7  ;;  %v1776_v53 = vadd.f32 %v1775_v43, %v1774_v18  ;;  %v1777_v14 = vsel %vm1404_vm12, %v1758_v12, 0.0  ;;  %v1779_v48 = vsel %vm1404_vm12, %v1759_v31, 0.0 }
 0x1d0   : > { %v1781_v46 = vsel %vm1404_vm12, %v1760_v28, 0.0  ;;  %v2565_v17 = vsub.f32 %v6734_v63, %v6751_v55  ;;  %v2566_v44 = vsub.f32 %v6766_v49, %v6751_v55  ;;  %v2698_v4 = vshrl.u32 %v6784_v35, 16 }
 0x1d1   : > { %v6829_v13 = vpop.f32.mrf.mxu1  ;;  %v1730_v37 = vadd.f32 %v1729_v56, %v1728_v60  ;;  %v1778_v42 = vadd.f32 %v1777_v14, %v1776_v53  ;;  %v2701_v54 = vshll.u32 %v6784_v35, 16  ;;  %v2464_v56 = vadd.f32 %v6764_v47, %v6721_v61  ;;  %v2854_v35 = vld [vmem:[#allocation3 + $0x74] sm:$0x1] }
 0x1d2   : > { %v2581_v25 = vsel %vm1404_vm12, %v2565_v17, 0.0  ;;  %v2619_v1 = vmul.f32 %v2565_v17, %v2565_v17  ;;  %v2582_v24 = vsel %vm1404_vm12, %v2566_v44, 0.0  ;;  %v2620_v39 = vmul.f32 %v2566_v44, %v2566_v44 }
 0x1d3   : > { %v1732_v26 = vadd.f32 %v1731_v20, %v1730_v37  ;;  %v1780_v7 = vadd.f32 %v1779_v48, %v1778_v42  ;;  %v2700_v63 = vrot.slane %v2698_v4, 7  ;;  %v6859_v12 = vadd.f32 %v2582_v24, %v2581_v25 }
 0x1d4   : > { %v2468_v57 = vpop.f32.mrf.mxu0  ;;  %v2635_v49 = vsel %vm1404_vm12, %v2619_v1, 0.0  ;;  %v2636_v60 = vsel %vm1404_vm12, %v2620_v39, 0.0  ;;  %v1783_v28 = vsel %vm1404_vm12, %v1761_v21, 0.0  ;;  %v2466_v43 = vadd.f32 %v6808_v50, %v6731_v51 }
 0x1d5   : > { %v1734_v45 = vadd.f32 %v1733_v5, %v1732_v26  ;;  %v6862_v5 = vadd.f32 %v6753_v32, %v2464_v56  ;;  %v1782_v9 = vadd.f32 %v1781_v46, %v1780_v7  ;;  %v2703_v61 = vor.u32 %v2701_v54, %v2700_v63 }
 0x1d6   : > { %v2705_v47 = vrot.slane %v2700_v63, 4  ;;  %v6866_v34 = vadd.f32 %v2636_v60, %v2635_v49  ;;  %v1764_v14 = vmul.f32 %v6797_v62, %v6797_v62  ;;  %v1785_v26 = vsel %vm1404_vm12, %v1762_v6, 0.0 }
 0x1d7   : > { %v1736_v20 = vadd.f32 %v1735_v0, %v1734_v45  ;;  %v2675_v0 = vpack.c.bf16 %v6862_v5, %v6862_v5  ;;  %v1784_v18 = vadd.f32 %v1783_v28, %v1782_v9  ;;  %v2704_v32 = vsel %vm5890_vm5, %v2696_v40, %v2703_v61 }
 0x1d8   : > { %v2855_v37 = vsel %vm5904_vm7, %v2705_v47, %v2854_v35  ;;  %2853 = vst.msk [vmem:[#allocation3 + $0x70] sm:$0xf] %vm680_vm2, %v2704_v32  ;;  %v1765_v40 = vmul.f32 %v6801_v2, %v6801_v2  ;;  %v1787_v46 = vsel %vm1404_vm12, %v1763_v19, 0.0  ;;  %v6888_v51 = vadd.f32 %v6777_v33, %v2466_v43  ;;  %v2857_v2 = vld [vmem:[#allocation3 + $0x78] sm:$0xf] }
 0x1d9   : > { %v6856_v11 = vpop.f32.mrf.mxu1  ;;  %v1738_v31 = vadd.f32 %v1737_v8, %v1736_v20  ;;  %v6878_v8 = vpop.f32.mrf.mxu3  ;;  %v2707_v29 = vshrl.u32 %v2675_v0, 16  ;;  %v1786_v48 = vadd.f32 %v1785_v26, %v1784_v18  ;;  %2856 = vst [vmem:[#allocation3 + $0x74] sm:$0x1] %v2855_v37  ;;  %v2710_v17 = vshll.u32 %v2675_v0, 16  ;;  %v2861_v35 = vld [vmem:[#allocation3 + $0x80] sm:$0x1] }
 0x1da   : > { %v2469_v62 = vadd.f32 %v2468_v57, %v6747_v41  ;;  %v1743_v6 = vsel %vm1404_vm12, %v6816_v36, 0.0  ;;  %v1766_v42 = vmul.f32 %v6805_v30, %v6805_v30  ;;  %v2676_v19 = vpack.c.bf16 %v6888_v51, %v6888_v51 }
 0x1db   : > { %v1740_v53 = vadd.f32 %v1739_v38, %v1738_v31  ;;  %v2709_v38 = vrot.slane %v2707_v29, 7  ;;  %v1788_v44 = vadd.f32 %v1787_v46, %v1786_v48  ;;  %v1789_v33 = vsel %vm1404_vm12, %v1764_v14, 0.0 }
 0x1dc   : > { %v2470_v21 = vpop.f32.mrf.mxu0  ;;  %v6899_v45 = vadd.f32 %v6829_v13, %v2469_v62  ;;  %v1745_v41 = vsel %vm1404_vm12, %v6820_v59, 0.0  ;;  %v2715_v25 = vshrl.u32 %v2676_v19, 16  ;;  %v1767_v30 = vmul.f32 %v6812_v22, %v6812_v22 }
 0x1dd   : > { %v1742_v50 = vadd.f32 %v1741_v52, %v1740_v53  ;;  %v2712_v52 = vor.u32 %v2710_v17, %v2709_v38  ;;  %v1790_v57 = vadd.f32 %v1789_v33, %v1788_v44  ;;  %v1791_v56 = vsel %vm1404_vm12, %v1765_v40, 0.0  ;;  %v2868_v33 = vld [vmem:[#allocation3 + $0x8c] sm:$0x1] }
 0x1de   : > { %v2717_v39 = vrot.slane %v2715_v25, 7  ;;  %v2718_v13 = vshll.u32 %v2676_v19, 16  ;;  %v1768_v20 = vmul.f32 %v6816_v36, %v6816_v36  ;;  %v1793_v49 = vsel %vm1404_vm12, %v1766_v42, 0.0 }
 0x1df   : > { %v1744_v54 = vadd.f32 %v1743_v6, %v1742_v50  ;;  %v2858_v7 = vsel %vm5898_vm6, %v2712_v52, %v2857_v2  ;;  %v1792_v24 = vadd.f32 %v1791_v56, %v1790_v57  ;;  %v2677_v9 = vpack.c.bf16 %v6899_v45, %v6899_v45 }
 0x1e0   : > { %2859 = vst [vmem:[#allocation3 + $0x78] sm:$0xf] %v2858_v7  ;;  %v2713_v60 = vrot.slane %v2709_v38, 4  ;;  %v2720_v61 = vor.u32 %v2718_v13, %v2717_v39  ;;  %v2722_v47 = vrot.slane %v2717_v39, 4  ;;  %v1769_v28 = vmul.f32 %v6820_v59, %v6820_v59  ;;  %v2864_v59 = vld [vmem:[#allocation3 + $0x84] sm:$0xf] }
 0x1e1   : > { %v2524_v4 = vpop.f32.mrf.mxu1  ;;  %v6903_v1 = vadd.f32 %v1745_v41, %v1744_v54  ;;  %v1794_v22 = vadd.f32 %v1793_v49, %v1792_v24  ;;  %v2427_v31 = vpop.f32.mrf.mxu3  ;;  %v1795_v0 = vsel %vm1404_vm12, %v1767_v30, 0.0  ;;  %v2724_v18 = vshrl.u32 %v2677_v9, 16  ;;  %v2871_v13 = vld [vmem:[#allocation3 + $0x90] sm:$0xf] }
 0x1e2   : > { %v2721_v36 = vsel %vm5890_vm5, %v2713_v60, %v2720_v61  ;;  %v2862_v37 = vsel %vm5904_vm7, %v2722_v47, %v2861_v35  ;;  %v1797_v53 = vsel %vm1404_vm12, %v1768_v20, 0.0  ;;  %v2727_v26 = vshll.u32 %v2677_v9, 16  ;;  %v2875_v47 = vld [vmem:[#allocation3 + $0x98] sm:$0x1] }
 0x1e3   : > { %v1796_v32 = vadd.f32 %v1795_v0, %v1794_v22  ;;  %2860 = vst.msk [vmem:[#allocation3 + $0x7c] sm:$0xf] %vm680_vm2, %v2721_v36  ;;  %v2726_v14 = vrot.slane %v2724_v18, 7  ;;  %v2471_v40 = vadd.f32 %v2470_v21, %v6775_v15  ;;  %v1799_v46 = vsel %vm1404_vm12, %v1769_v28, 0.0 }
 0x1e4   : > { %v2473_v63 = vpop.f32.mrf.mxu0  ;;  %2863 = vst [vmem:[#allocation3 + $0x80] sm:$0x1] %v2862_v37 }
 0x1e5   : > { %v1798_v29 = vadd.f32 %v1797_v53, %v1796_v32  ;;  %v2474_v48 = vadd.f32 %v2473_v63, %v6838_v58  ;;  %v2729_v50 = vor.u32 %v2727_v26, %v2726_v14  ;;  %v6930_v17 = vadd.f32 %v6856_v11, %v2471_v40 }
 0x1e6   : > { %v2730_v41 = vrot.slane %v2726_v14, 4 }
 0x1e7   : > { %v6927_v38 = vadd.f32 %v1799_v46, %v1798_v29  ;;  %v6932_v62 = vadd.f32 %v2524_v4, %v2474_v48  ;;  %v2865_v42 = vsel %vm5898_vm6, %v2729_v50, %v2864_v59  ;;  %v2678_v15 = vpack.c.bf16 %v6930_v17, %v6930_v17  ;;  %v2878_v46 = vld [vmem:[#allocation3 + $0x9c] sm:$0xf] }
 0x1e8   : > { %2866 = vst [vmem:[#allocation3 + $0x84] sm:$0xf] %v2865_v42 }
 0x1e9   : > { %v2526_v43 = vpop.f32.mrf.mxu1  ;;  %v2679_v58 = vpack.c.bf16 %v6932_v62, %v6932_v62  ;;  %v2732_v21 = vshrl.u32 %v2678_v15, 16  ;;  %v2429_v2 = vpop.f32.mrf.mxu3  ;;  %v2735_v54 = vshll.u32 %v2678_v15, 16 }
 0x1eb   : > { %v2734_v4 = vrot.slane %v2732_v21, 7  ;;  %v2741_v52 = vshrl.u32 %v2679_v58, 16  ;;  %v2744_v39 = vshll.u32 %v2679_v58, 16 }
 0x1ec   : > { %v2475_v6 = vpop.f32.mrf.mxu0 }
 0x1ed   : > { %v2476_v44 = vadd.f32 %v2475_v6, %v6878_v8  ;;  %v2737_v57 = vor.u32 %v2735_v54, %v2734_v4  ;;  %v2739_v25 = vrot.slane %v2734_v4, 4  ;;  %v2743_v30 = vrot.slane %v2741_v52, 7  ;;  %v2882_v54 = vld [vmem:[#allocation3 + $0xa4] sm:$0x1] }
 0x1ef   : > { %v6941_v11 = vadd.f32 %v2526_v43, %v2476_v44  ;;  %v2738_v7 = vsel %vm5890_vm5, %v2730_v41, %v2737_v57  ;;  %v2869_v24 = vsel %vm5904_vm7, %v2739_v25, %v2868_v33  ;;  %v2746_v49 = vor.u32 %v2744_v39, %v2743_v30 }
 0x1f0   : > { %2867 = vst.msk [vmem:[#allocation3 + $0x88] sm:$0xf] %vm680_vm2, %v2738_v7  ;;  %v2747_v0 = vrot.slane %v2743_v30, 4  ;;  %v2567_v7 = vsub.f32 %v6862_v5, %v6751_v55 }
 0x1f1   : > { %v2529_v19 = vpop.f32.mrf.mxu1  ;;  %v2680_v56 = vpack.c.bf16 %v6941_v11, %v6941_v11  ;;  %2870 = vst [vmem:[#allocation3 + $0x8c] sm:$0x1] %v2869_v24  ;;  %v2432_v60 = vpop.f32.mrf.mxu3  ;;  %v2872_v61 = vsel %vm5898_vm6, %v2746_v49, %v2871_v13  ;;  %v2885_v49 = vld [vmem:[#allocation3 + $0xa8] sm:$0xf] }
 0x1f2   : > { %2873 = vst [vmem:[#allocation3 + $0x90] sm:$0xf] %v2872_v61  ;;  %v2584_v61 = vsel %vm1404_vm12, %v2567_v7, 0.0 }
 0x1f3   : > { %v2749_v63 = vshrl.u32 %v2680_v56, 16  ;;  %v2752_v22 = vshll.u32 %v2680_v56, 16 }
 0x1f4   : > { %v2478_v8 = vpop.f32.mrf.mxu0 }
 0x1f5   : > { %v2479_v35 = vadd.f32 %v2478_v8, %v2427_v31  ;;  %v2751_v9 = vrot.slane %v2749_v63, 7  ;;  %v2568_v63 = vsub.f32 %v6888_v51, %v6751_v55  ;;  %v2570_v51 = vsub.f32 %v6930_v17, %v6751_v55 }
 0x1f6   : > { %v2572_v17 = vsub.f32 %v6941_v11, %v6751_v55 }
 0x1f7   : > { %v6952_v28 = vadd.f32 %v2529_v19, %v2479_v35  ;;  %v2754_v18 = vor.u32 %v2752_v22, %v2751_v9  ;;  %v2756_v32 = vrot.slane %v2751_v9, 4  ;;  %v2569_v22 = vsub.f32 %v6899_v45, %v6751_v55 }
 0x1f8   : > { %v2571_v45 = vsub.f32 %v6932_v62, %v6751_v55 }
 0x1f9   : > { %v2531_v20 = vpop.f32.mrf.mxu1  ;;  %v2681_v37 = vpack.c.bf16 %v6952_v28, %v6952_v28  ;;  %v2755_v31 = vsel %vm5890_vm5, %v2747_v0, %v2754_v18  ;;  %v2876_v53 = vsel %vm5904_vm7, %v2756_v32, %v2875_v47  ;;  %v2434_v42 = vpop.f32.mrf.mxu3  ;;  %v2621_v47 = vmul.f32 %v2567_v7, %v2567_v7 }
 0x1fa   : > { %2874 = vst.msk [vmem:[#allocation3 + $0x94] sm:$0xf] %vm680_vm2, %v2755_v31  ;;  %v2622_v18 = vmul.f32 %v2568_v63, %v2568_v63 }
 0x1fb   : > { %2877 = vst [vmem:[#allocation3 + $0x98] sm:$0x1] %v2876_v53  ;;  %v2758_v26 = vshrl.u32 %v2681_v37, 16  ;;  %v2761_v48 = vshll.u32 %v2681_v37, 16  ;;  %v2623_v37 = vmul.f32 %v2569_v22, %v2569_v22  ;;  %v2638_v31 = vsel %vm1404_vm12, %v2621_v47, 0.0 }
 0x1fc   : > { %v2480_v36 = vpop.f32.mrf.mxu0  ;;  %v2639_v62 = vadd.f32 %v2638_v31, %v6866_v34 }
 0x1fd   : > { %v2481_v43 = vadd.f32 %v2480_v36, %v2429_v2  ;;  %v2760_v40 = vrot.slane %v2758_v26, 7  ;;  %v2585_v36 = vadd.f32 %v2584_v61, %v6859_v12  ;;  %v2594_v61 = vsel %vm1404_vm12, %v2572_v17, 0.0 }
 0x1ff   : > { %v6961_v14 = vadd.f32 %v2531_v20, %v2481_v43  ;;  %v2763_v6 = vor.u32 %v2761_v48, %v2760_v40  ;;  %v2764_v19 = vrot.slane %v2760_v40, 4  ;;  %v2640_v40 = vsel %vm1404_vm12, %v2622_v18, 0.0 }
 0x200   : > { %v2624_v48 = vmul.f32 %v2570_v51, %v2570_v51 }
 0x201   : > { %v2534_v29 = vpop.f32.mrf.mxu1  ;;  %v2682_v59 = vpack.c.bf16 %v6961_v14, %v6961_v14  ;;  %v2879_v2 = vsel %vm5898_vm6, %v2763_v6, %v2878_v46  ;;  %v2437_v20 = vpop.f32.mrf.mxu3  ;;  %v2889_v46 = vld [vmem:[#allocation3 + $0xb0] sm:$0x1] }
 0x202   : > { %2880 = vst [vmem:[#allocation3 + $0x9c] sm:$0xf] %v2879_v2  ;;  %v2573_v2 = vsub.f32 %v6952_v28, %v6751_v55 }
 0x203   : > { %v2766_v50 = vshrl.u32 %v2682_v59, 16  ;;  %v2769_v58 = vshll.u32 %v2682_v59, 16  ;;  %v2586_v59 = vsel %vm1404_vm12, %v2568_v63, 0.0 }
 0x204   : > { %v2483_v44 = vpop.f32.mrf.mxu0 }
 0x205   : > { %v2768_v15 = vrot.slane %v2766_v50, 7  ;;  %v2484_v21 = vadd.f32 %v2483_v44, %v2432_v60  ;;  %v2588_v44 = vsel %vm1404_vm12, %v2569_v22, 0.0  ;;  %v2574_v22 = vsub.f32 %v6961_v14, %v6751_v55 }
 0x207   : > { %v2771_v4 = vor.u32 %v2769_v58, %v2768_v15  ;;  %v6967_v33 = vadd.f32 %v2534_v29, %v2484_v21  ;;  %v2773_v52 = vrot.slane %v2768_v15, 4  ;;  %v2642_v15 = vsel %vm1404_vm12, %v2623_v37, 0.0 }
 0x208   : > { %v2625_v58 = vmul.f32 %v2571_v45, %v2571_v45 }
 0x209   : > { %v2536_v41 = vpop.f32.mrf.mxu1  ;;  %v2772_v57 = vsel %vm5890_vm5, %v2764_v19, %v2771_v4  ;;  %v2683_v25 = vpack.c.bf16 %v6967_v33, %v6967_v33  ;;  %v2883_v8 = vsel %vm5904_vm7, %v2773_v52, %v2882_v54  ;;  %v2439_v21 = vpop.f32.mrf.mxu3  ;;  %v2587_v54 = vadd.f32 %v2586_v59, %v2585_v36 }
 0x20a   : > { %2881 = vst.msk [vmem:[#allocation3 + $0xa0] sm:$0xf] %vm680_vm2, %v2772_v57  ;;  %v2641_v52 = vadd.f32 %v2640_v40, %v2639_v62  ;;  %v2644_v57 = vsel %vm1404_vm12, %v2624_v48, 0.0  ;;  %v2646_v7 = vsel %vm1404_vm12, %v2625_v58, 0.0  ;;  %v2596_v36 = vsel %vm1404_vm12, %v2573_v2, 0.0 }
 0x20b   : > { %2884 = vst [vmem:[#allocation3 + $0xa4] sm:$0x1] %v2883_v8  ;;  %v2775_v30 = vshrl.u32 %v2683_v25, 16  ;;  %v2778_v39 = vshll.u32 %v2683_v25, 16  ;;  %v2626_v25 = vmul.f32 %v2572_v17, %v2572_v17  ;;  %v2589_v28 = vadd.f32 %v2588_v44, %v2587_v54 }
 0x20c   : > { %v2485_v56 = vpop.f32.mrf.mxu0 }
 0x20d   : > { %v2777_v24 = vrot.slane %v2775_v30, 7  ;;  %v2486_v13 = vadd.f32 %v2485_v56, %v2434_v42  ;;  %v2643_v30 = vadd.f32 %v2642_v15, %v2641_v52  ;;  %v2592_v56 = vsel %vm1404_vm12, %v2571_v45, 0.0 }
 0x20e   : > { %v2648_v47 = vsel %vm1404_vm12, %v2626_v25, 0.0 }
 0x20f   : > { %v2780_v35 = vor.u32 %v2778_v39, %v2777_v24  ;;  %v6980_v9 = vadd.f32 %v2536_v41, %v2486_v13  ;;  %v2781_v12 = vrot.slane %v2777_v24, 4  ;;  %v2590_v41 = vsel %vm1404_vm12, %v2570_v51, 0.0 }
 0x210   : > { %v2627_v39 = vmul.f32 %v2573_v2, %v2573_v2  ;;  %v2896_v2 = vld [vmem:[#allocation3 + $0xbc] sm:$0x1] }
 0x211   : > { %v2539_v60 = vpop.f32.mrf.mxu1  ;;  %v2886_v5 = vsel %vm5898_vm6, %v2780_v35, %v2885_v49  ;;  %v2684_v0 = vpack.c.bf16 %v6980_v9, %v6980_v9  ;;  %v2591_v49 = vadd.f32 %v2590_v41, %v2589_v28  ;;  %v2645_v35 = vadd.f32 %v2644_v57, %v2643_v30 }
 0x212   : > { %2887 = vst [vmem:[#allocation3 + $0xa8] sm:$0xf] %v2886_v5  ;;  %v2650_v37 = vsel %vm1404_vm12, %v2627_v39, 0.0  ;;  %v1747_v30 = vrot.slane %v6903_v1, 4 }
 0x213   : > { %v2783_v32 = vshrl.u32 %v2684_v0, 16  ;;  %v2786_v26 = vshll.u32 %v2684_v0, 16  ;;  %v2593_v18 = vadd.f32 %v2592_v56, %v2591_v49  ;;  %v2647_v51 = vadd.f32 %v2646_v7, %v2645_v35 }
 0x214   : > { %v2488_v43 = vpop.f32.mrf.mxu0 }
 0x215   : > { %v2785_v53 = vrot.slane %v2783_v32, 7  ;;  %v2489_v29 = vadd.f32 %v2488_v43, %v2437_v20  ;;  %v2575_v32 = vsub.f32 %v6967_v33, %v6751_v55  ;;  %v2595_v43 = vadd.f32 %v2594_v61, %v2593_v18 }
 0x216   : > { %v2649_v31 = vadd.f32 %v2648_v47, %v2647_v51  ;;  %v1801_v51 = vrot.slane %v6927_v38, 4 }
 0x217   : > { %v2788_v50 = vor.u32 %v2786_v26, %v2785_v53  ;;  %v2790_v6 = vrot.slane %v2785_v53, 4  ;;  %v2561_v42 = vadd.f32 %v2539_v60, %v2489_v29  ;;  %v2892_v60 = vld [vmem:[#allocation3 + $0xb4] sm:$0xf]  ;;  %v2628_v53 = vmul.f32 %v2574_v22, %v2574_v22  ;;  %v2442_v29 = vpop.f32.mrf.mxu3 }
 0x218   : > { %v2576_v26 = vsub.f32 %v6980_v9, %v6751_v55  ;;  %v2597_v40 = vadd.f32 %v2596_v36, %v2595_v43  ;;  %v2651_v48 = vadd.f32 %v2650_v37, %v2649_v31  ;;  %v2629_v33 = vmul.f32 %v2575_v32, %v2575_v32  ;;  %v2899_v37 = vld [vmem:[#allocation3 + $0xc0] sm:$0xf] }
 0x219   : > { %v2789_v19 = vsel %vm5890_vm5, %v2781_v12, %v2788_v50  ;;  %v2890_v11 = vsel %vm5904_vm7, %v2790_v6, %v2889_v46  ;;  %v2685_v4 = vpack.c.bf16 %v2561_v42, %v2561_v42  ;;  %v2541_v34 = vpop.f32.mrf.mxu1  ;;  %v2577_v17 = vsub.f32 %v2561_v42, %v6751_v55 }
 0x21a   : > { %2888 = vst.msk [vmem:[#allocation3 + $0xac] sm:$0xf] %vm680_vm2, %v2789_v19  ;;  %v2598_v50 = vsel %vm1404_vm12, %v2574_v22, 0.0  ;;  %v2652_v15 = vsel %vm1404_vm12, %v2628_v53, 0.0  ;;  %v2600_v58 = vsel %vm1404_vm12, %v2575_v32, 0.0  ;;  %v2630_v9 = vmul.f32 %v2576_v26, %v2576_v26 }
 0x21b   : > { %2891 = vst [vmem:[#allocation3 + $0xb0] sm:$0x1] %v2890_v11  ;;  %v2792_v8 = vshrl.u32 %v2685_v4, 16  ;;  %v2795_v63 = vshll.u32 %v2685_v4, 16  ;;  %v2599_v42 = vadd.f32 %v2598_v50, %v2597_v40  ;;  %v2654_v52 = vsel %vm1404_vm12, %v2629_v33, 0.0 }
 0x21c   : > { %v2490_v24 = vpop.f32.mrf.mxu0  ;;  %v2631_v41 = vmul.f32 %v2577_v17, %v2577_v17  ;;  %v2653_v56 = vadd.f32 %v2652_v15, %v2651_v48  ;;  %v2604_v39 = vsel %vm1404_vm12, %v2577_v17, 0.0 }
 0x21d   : > { %v2794_v13 = vrot.slane %v2792_v8, 7  ;;  %v2491_v20 = vadd.f32 %v2490_v24, %v2439_v21  ;;  %v2601_v7 = vadd.f32 %v2600_v58, %v2599_v42  ;;  %v2656_v24 = vsel %vm1404_vm12, %v2630_v9, 0.0 }
 0x21e   : > { %v2658_v35 = vsel %vm1404_vm12, %v2631_v41, 0.0 }
 0x21f   : > { %v2797_v5 = vor.u32 %v2795_v63, %v2794_v13  ;;  %v2562_v0 = vadd.f32 %v2541_v34, %v2491_v20  ;;  %v2798_v21 = vrot.slane %v2794_v13, 4  ;;  %v2602_v34 = vsel %vm1404_vm12, %v2576_v26, 0.0  ;;  %v2444_v22 = vpop.f32.mrf.mxu3 }
 0x220   : > { %v2655_v20 = vadd.f32 %v2654_v52, %v2653_v56  ;;  %v2603_v49 = vadd.f32 %v2602_v34, %v2601_v7  ;;  %v1748_v26 = vadd.f32 %v1747_v30, %v6903_v1 }
 0x221   : > { %v2893_v45 = vsel %vm5898_vm6, %v2797_v5, %v2892_v60  ;;  %v2686_v14 = vpack.c.bf16 %v2562_v0, %v2562_v0  ;;  %v2544_v12 = vpop.f32.mrf.mxu1  ;;  %v2578_v19 = vsub.f32 %v2562_v0, %v6751_v55 }
 0x222   : > { %2894 = vst [vmem:[#allocation3 + $0xb4] sm:$0xf] %v2893_v45  ;;  %v2657_v32 = vadd.f32 %v2656_v24, %v2655_v20  ;;  %v2605_v36 = vadd.f32 %v2604_v39, %v2603_v49  ;;  %v1749_v1 = vrot.slane %v1748_v26, 2 }
 0x223   : > { %v2800_v59 = vshrl.u32 %v2686_v14, 16  ;;  %v2803_v62 = vshll.u32 %v2686_v14, 16  ;;  %v2632_v13 = vmul.f32 %v2578_v19, %v2578_v19  ;;  %v2606_v60 = vsel %vm1404_vm12, %v2578_v19, 0.0 }
 0x224   : > { %v2493_v46 = vpop.f32.mrf.mxu0  ;;  %v1750_v34 = vadd.f32 %v1749_v1, %v1748_v26  ;;  %v7074_v26 = vld [vmem:[#allocation3 + $0x20] sm:$0x1] }
 0x225   : > { %v2802_v6 = vrot.slane %v2800_v59, 7  ;;  %v2494_v44 = vadd.f32 %v2493_v46, %v2442_v29  ;;  %v2660_v14 = vsel %vm1404_vm12, %v2632_v13, 0.0  ;;  %v2659_v29 = vadd.f32 %v2658_v35, %v2657_v32 }
 0x226   : > { %v2607_v59 = vadd.f32 %v2606_v60, %v2605_v36  ;;  %v1802_v46 = vadd.f32 %v1801_v51, %v6927_v38  ;;  %v1751_v7 = vrot.slane %v1750_v34, 1 }
 0x227   : > { %v2805_v11 = vor.u32 %v2803_v62, %v2802_v6  ;;  %v2807_v4 = vrot.slane %v2802_v6, 4  ;;  %v2563_v54 = vadd.f32 %v2544_v12, %v2494_v44  ;;  %v2661_v12 = vadd.f32 %v2660_v14, %v2659_v29  ;;  %v7067_v14 = vld [vmem:[#allocation3 + $0x10] sm:$0xf]  ;;  %v7076_v29 = vld [vmem:[#allocation3 + $0x24] sm:$0xf] }
 0x228   : > { %v1803_v19 = vrot.slane %v1802_v46, 2  ;;  %v1752_v49 = vadd.f32 %v1751_v7, %v1750_v34  ;;  %v7111_v34 = vld [vmem:[#allocation3 + $0x58] sm:$0xf]  ;;  %v7122_v7 = vld [vmem:[#allocation3 + $0x68] sm:$0x1] }
 0x229   : > { %v2806_v57 = vsel %vm5890_vm5, %v2798_v21, %v2805_v11  ;;  %v2897_v25 = vsel %vm5904_vm7, %v2807_v4, %v2896_v2  ;;  %v2579_v8 = vsub.f32 %v2563_v54, %v6751_v55  ;;  %v2687_v28 = vpack.c.bf16 %v2563_v54, %v2563_v54  ;;  %v2546_v45 = vpop.f32.mrf.mxu1  ;;  %v2903_v54 = vld [vmem:[#allocation3 + $0xc8] sm:$0x1] }
 0x22a   : > { %2895 = vst.msk [vmem:[#allocation3 + $0xb8] sm:$0xf] %vm680_vm2, %v2806_v57 }
 0x22b   : > { %2898 = vst [vmem:[#allocation3 + $0xbc] sm:$0x1] %v2897_v25  ;;  %v2809_v63 = vshrl.u32 %v2687_v28, 16  ;;  %v2633_v47 = vmul.f32 %v2579_v8, %v2579_v8  ;;  %v2812_v0 = vshll.u32 %v2687_v28, 16  ;;  %v2608_v43 = vsel %vm1404_vm12, %v2579_v8, 0.0 }
 0x22c   : > { %v2495_v61 = vpop.f32.mrf.mxu0  ;;  %v2609_v50 = vadd.f32 %v2608_v43, %v2607_v59  ;;  %v1804_v28 = vadd.f32 %v1803_v19, %v1802_v46  ;;  %v7069_v43 = vld [vmem:[#allocation3 + $0x14] sm:$0x1]  ;;  %v7078_v59 = vld [vmem:[#allocation3 + $0x28] sm:$0xf]  ;;  %v2953_v46 = vunpack.c.l.bf16 %v7067_v14 }
 0x22d   : > { %v2811_v5 = vrot.slane %v2809_v63, 7  ;;  %v2496_v18 = vadd.f32 %v2495_v61, %v2444_v22  ;;  %v2662_v40 = vsel %vm1404_vm12, %v2633_v47, 0.0 }
 0x22e   : > { %v2663_v15 = vadd.f32 %v2662_v40, %v2661_v12  ;;  %v1805_v13 = vrot.slane %v1804_v28, 1  ;;  %v7080_v40 = vld [vmem:[#allocation3 + $0x2c] sm:$0x1]  ;;  %v2954_v12 = vunpack.c.l.bf16 %v7069_v43 }
 0x22f   : > { %v2814_v31 = vor.u32 %v2812_v0, %v2811_v5  ;;  %v2564_v53 = vadd.f32 %v2546_v45, %v2496_v18  ;;  %v2815_v42 = vrot.slane %v2811_v5, 4  ;;  %v7065_v45 = vld [vmem:[#allocation3 + $0xc] sm:$0xf] }
 0x230   : > { %v1806_v16 = vadd.f32 %v1805_v13, %v1804_v28 }
 0x231   : > { %v2900_v48 = vsel %vm5898_vm6, %v2814_v31, %v2899_v37  ;;  %v2580_v33 = vsub.f32 %v2564_v53, %v6751_v55  ;;  %v2688_v17 = vpack.c.bf16 %v2564_v53, %v2564_v53  ;;  %v7072_v53 = vld [vmem:[#allocation3 + $0x18] sm:$0xff]  }
 0x232   : > { %2901 = vst [vmem:[#allocation3 + $0xc0] sm:$0xf] %v2900_v48  ;;  %v7082_v48 = vld [vmem:[#allocation3 + $0x30] sm:$0xff]  }
 0x233   : > { %v2610_v6 = vsel %vm1404_vm12, %v2580_v33, 0.0  ;;  %v2634_v62 = vmul.f32 %v2580_v33, %v2580_v33  ;;  %v2817_v44 = vshrl.u32 %v2688_v17, 16  ;;  %v2820_v2 = vshll.u32 %v2688_v17, 16 }
 0x234   : > { %v2611_v58 = vadd.f32 %v2610_v6, %v2609_v50  ;;  %v2952_v17 = vunpack.c.l.bf16 %v7065_v45  ;;  %v7088_v50 = vld [vmem:[#allocation3 + $0x38] sm:$0x1]  ;;  %v7090_v6 = vld [vmem:[#allocation3 + $0x3c] sm:$0xf] }
 0x235   : > { %v2664_v9 = vsel %vm1404_vm12, %v2634_v62, 0.0  ;;  %v2819_v21 = vrot.slane %v2817_v44, 7  ;;  %v5754_v62 = vunpack.c.l.bf16 %v7072_v53  ;;  %v5755_v44 = vunpack.c.h.bf16 %v7072_v53 }
 0x236   : > { %v2612_v11 = vrot.slane %v2611_v58, 4  ;;  %v2665_v4 = vadd.f32 %v2664_v9, %v2663_v15  ;;  %v7095_v15 = vld [vmem:[#allocation3 + $0x40] sm:$0xf]  ;;  %v7099_v9 = vld [vmem:[#allocation3 + $0x48] sm:$0xff]  }
 0x237   : > { %v2822_v38 = vor.u32 %v2820_v2, %v2819_v21  ;;  %v2824_v52 = vrot.slane %v2819_v21, 4 }
 0x238   : > { %v2613_v41 = vadd.f32 %v2612_v11, %v2611_v58  ;;  %v2666_v57 = vrot.slane %v2665_v4, 4  ;;  %v7097_v58 = vld [vmem:[#allocation3 + $0x44] sm:$0x1] }
 0x239   : > { %v2823_v25 = vsel %vm5890_vm5, %v2815_v42, %v2822_v38  ;;  %v2904_v8 = vsel %vm5904_vm7, %v2824_v52, %v2903_v54  ;;  %v7105_v54 = vld [vmem:[#allocation3 + $0x50] sm:$0x1]  ;;  %v7107_v42 = vld [vmem:[#allocation3 + $0x54] sm:$0xf]  ;;  %v7193_v52 = vld [vmem:[#allocation3 + $0xbc] sm:$0x1] }
 0x23a   : > { %v2614_v30 = vrot.slane %v2613_v41, 2  ;;  %v2667_v56 = vadd.f32 %v2666_v57, %v2665_v4  ;;  %2902 = vst.msk [vmem:[#allocation3 + $0xc4] sm:$0xf] %vm680_vm2, %v2823_v25  ;;  %v7115_v57 = vld [vmem:[#allocation3 + $0x60] sm:$0xff]  }
 0x23b   : > { %2905 = vst [vmem:[#allocation3 + $0xc8] sm:$0x1] %v2904_v8  ;;  %v7191_v8 = vld [vmem:[#allocation3 + $0xb8] sm:$0xf] }
 0x23c   : > { %v2615_v24 = vadd.f32 %v2614_v30, %v2613_v41  ;;  %v2668_v39 = vrot.slane %v2667_v56, 2  ;;  %v7113_v41 = vld [vmem:[#allocation3 + $0x5c] sm:$0x1]  ;;  %v7189_v30 = vld [vmem:[#allocation3 + $0xb4] sm:$0xf] }
 0x23e   : > { %v2616_v63 = vrot.slane %v2615_v24, 1  ;;  %v2669_v20 = vadd.f32 %v2668_v39, %v2667_v56  ;;  %v7126_v39 = vld [vmem:[#allocation3 + $0x70] sm:$0xf] }
 0x23f   : > { %v7187_v56 = vld [vmem:[#allocation3 + $0xb0] sm:$0x1] }
 0x240   : > { %v2617_v35 = vadd.f32 %v2616_v63, %v2615_v24  ;;  %v2670_v22 = vrot.slane %v2669_v20, 1  ;;  %v7124_v24 = vld [vmem:[#allocation3 + $0x6c] sm:$0xf]  ;;  %v8726_v63 = vunpack.c.l.bf16 %v7095_v15  ;;  %v8729_v15 = vunpack.c.h.bf16 %v7099_v9 }
 0x242   : > { %v2618_v60 = vadd.f32 %v2617_v35, %v1752_v49  ;;  %v2671_v61 = vadd.f32 %v2670_v22, %v2669_v20  ;;  %v7130_v20 = vld [vmem:[#allocation3 + $0x74] sm:$0x1]  ;;  %v7132_v49 = vld [vmem:[#allocation3 + $0x78] sm:$0xff]   ;;  %v2906_v35 = vld [vmem:[%s8699_s2] sm:$0x1] }
 0x243   : > { %v3156_v13 = vld [vmem:[#allocation3 + $0xc8] sm:$0x1] }
 0x244   : > { %v2672_v47 = vadd.f32 %v2671_v61, %v1806_v16  ;;  %v7059_v5 = vmul.f32 0.00390625, %v2618_v60  ;;  %v7158_v61 = vld [vmem:[#allocation3 + $0x90] sm:$0xff]   ;;  %v7160_v60 = vld [vmem:[#allocation3 + $0x98] sm:$0x1]  ;;  %v7162_v16 = vld [vmem:[#allocation3 + $0x9c] sm:$0xf]  ;;  %v3180_v4 = vunpack.c.l.bf16 %v3156_v13 }
 0x246   : > { %v2910_v0 = vmul.f32 0.00390625, %v2672_v47  ;;  %v2911_v18 = vmul.f32 %v7059_v5, %v7059_v5  ;;  %v2907_v47 = vld [vmem:[%s8700_s3] sm:$0x1] }
 0x248   : > { %v2912_v51 = vsub.f32 %v2910_v0, %v2911_v18  ;;  %v7142_v0 = vld [vmem:[#allocation3 + $0x80] sm:$0x1]  ;;  %v7144_v18 = vld [vmem:[#allocation3 + $0x84] sm:$0xf] }
 0x24a   : > { %v2913_v32 = vmax.f32 %v2912_v51, 0.0 }
 0x24c   : > { %v2914_v36 = vadd.f32 1e-05, %v2913_v32  ;;  %v2909_v32 = vadd.f32 %v7059_v5, %v6751_v55  ;;  %v7175_v55 = vld [vmem:[#allocation3 + $0xa0] sm:$0xf]  ;;  %v7177_v5 = vld [vmem:[#allocation3 + $0xa4] sm:$0x1] }
 0x24e   : > { %5805 = vrsqrt.f32 %v2914_v36  ;;  %vm2921_vm1 = vweird.f32 %v2914_v36 }
 0x254   : > { %v7063_v37 = vpop.eup %5805 }
 0x255   : > { %v2916_v31 = vmul.f32 %v7063_v37, %v2914_v36  ;;  %vm2922_vm0 = vweird.f32 %v7063_v37 }
 0x256   : > { %vm2923_vm3 = vmor %vm2921_vm1, %vm2922_vm0 }
 0x257   : > { %v2917_v33 = vmul.f32 %v7063_v37, %v2916_v31  ;;  %v7151_v31 = vld [vmem:[#allocation3 + $0x88] sm:$0xf] }
 0x259   : > { %v2918_v21 = vmul.f32 0.5, %v2917_v33  ;;  %v7153_v33 = vld [vmem:[#allocation3 + $0x8c] sm:$0x1] }
 0x25b   : > { %v2919_v25 = vsub.f32 1.5, %v2918_v21 }
 0x25d   : > { %v2920_v22 = vmul.f32 %v7063_v37, %v2919_v25  ;;  %v5791_v25 = vld [vmem:[#allocation3 + $0xc0] sm:$0xff]  }
 0x25f   : > { %v2924_v21 = vsel %vm2923_vm3, %v7063_v37, %v2920_v22  ;;  %v3170_v22 = vunpack.c.l.bf16 %v7175_v55  ;;  %v8753_v55 = vunpack.c.l.bf16 %v7187_v56 }
 0x260   : > { %v2925_v36 = vmul.f32 %v2924_v21, %v2906_v35  ;;  %v7179_v35 = vld [vmem:[#allocation3 + $0xa8] sm:$0xff]  }
 0x262   : > { %v2926_v21 = vmul.f32 %v2925_v36, %v2909_v32  ;;  %v7181_v37 = vperm.slane %v2925_v36, 0  ;;  %v5782_v32 = vunpack.c.l.bf16 %v5791_v25  ;;  %v5783_v36 = vunpack.c.h.bf16 %v5791_v25 }
 0x264   : > { %v2927_v38 = vsub.f32 %v2907_v47, %v2926_v21  ;;  %v3202_v19 = vmul.f32 %v5782_v32, %v7181_v37  ;;  %v3203_v2 = vmul.f32 %v5783_v36, %v7181_v37  ;;  %v3204_v1 = vmul.f32 %v3180_v4, %v7181_v37  ;;  %v3329_v47 = vld [vmem:[#allocation3 + $0xc8] sm:$0x1] }
 0x265   : > { %v2979_v32 = vmul.f32 %v7181_v37, %v2952_v17  ;;  %v2980_v4 = vmul.f32 %v7181_v37, %v2953_v46  ;;  %v2981_v36 = vmul.f32 %v7181_v37, %v2954_v12  ;;  %v8718_v17 = vunpack.c.l.bf16 %v7074_v26 }
 0x266   : > { %v7199_v11 = vperm.slane %v2927_v38, 0  ;;  %v8719_v46 = vunpack.c.l.bf16 %v7076_v29  ;;  %v8720_v12 = vunpack.c.l.bf16 %v7078_v59  ;;  %v8723_v29 = vunpack.c.h.bf16 %v7082_v48 }
 0x267   : > { %v2984_v14 = vmul.f32 %v7181_v37, %v8718_v17  ;;  %v8724_v59 = vunpack.c.l.bf16 %v7088_v50 }
 0x268   : > { %v3226_v51 = vadd.f32 %v3202_v19, %v7199_v11  ;;  %v3227_v28 = vadd.f32 %v3203_v2, %v7199_v11  ;;  %v3228_v38 = vadd.f32 %v3204_v1, %v7199_v11  ;;  %v2982_v19 = vmul.f32 %v5754_v62, %v7181_v37 }
 0x269   : > { %v2983_v1 = vmul.f32 %v5755_v44, %v7181_v37  ;;  %v2985_v43 = vmul.f32 %v7181_v37, %v8719_v46  ;;  %v2986_v13 = vmul.f32 %v7181_v37, %v8720_v12  ;;  %v8721_v62 = vunpack.c.l.bf16 %v7080_v40  ;;  %v3325_v46 = vld [vmem:[#allocation3 + $0xc0] sm:$0xf] }
 0x26a   : > { %v3250_v2 = vmax.f32 %v3226_v51, 0.0  ;;  %v3251_v21 = vmax.f32 %v3227_v28, 0.0  ;;  %v3252_v25 = vmax.f32 %v3228_v38, 0.0  ;;  %v8722_v44 = vunpack.c.l.bf16 %v7082_v48 }
 0x26b   : > { %v2987_v53 = vmul.f32 %v7181_v37, %v8721_v62  ;;  %v2989_v17 = vmul.f32 %v8723_v29, %v7181_v37  ;;  %v2990_v12 = vmul.f32 %v7181_v37, %v8724_v59  ;;  %v8725_v40 = vunpack.c.l.bf16 %v7090_v6 }
 0x26c   : > { %v2988_v28 = vmul.f32 %v8722_v44, %v7181_v37  ;;  %v3274_v51 = vpack.c.bf16 %v3250_v2, %v3250_v2  ;;  %v3275_v26 = vpack.c.bf16 %v3251_v21, %v3251_v21  ;;  %v3276_v38 = vpack.c.bf16 %v3252_v25, %v3252_v25 }
 0x26d   : > { %v2991_v62 = vmul.f32 %v7181_v37, %v8725_v40  ;;  %v2992_v2 = vmul.f32 %v7181_v37, %v8726_v63  ;;  %v8727_v25 = vunpack.c.l.bf16 %v7097_v58  ;;  %v8728_v6 = vunpack.c.l.bf16 %v7099_v9 }
 0x26e   : > { %v3326_v48 = vsel %vm5898_vm6, %v3274_v51, %v3325_v46  ;;  %3328 = vst.msk [vmem:[#allocation3 + $0xc4] sm:$0xf] %vm680_vm2, %v3275_v26  ;;  %v3330_v50 = vsel %vm5904_vm7, %v3276_v38, %v3329_v47  ;;  %v2995_v63 = vmul.f32 %v8729_v15, %v7181_v37  ;;  %v8730_v58 = vunpack.c.l.bf16 %v7105_v54 }
 0x26f   : > { %v2993_v21 = vmul.f32 %v7181_v37, %v8727_v25  ;;  %v2994_v44 = vmul.f32 %v8728_v6, %v7181_v37  ;;  %3327 = vst [vmem:[#allocation3 + $0xc0] sm:$0xf] %v3326_v48  ;;  %v8731_v51 = vunpack.c.l.bf16 %v7107_v42  ;;  %v8732_v46 = vunpack.c.l.bf16 %v7111_v34 }
 0x270   : > { %v2996_v29 = vmul.f32 %v7181_v37, %v8730_v58  ;;  %v8733_v38 = vunpack.c.l.bf16 %v7113_v41  ;;  %3331 = vst [vmem:[#allocation3 + $0xc8] sm:$0x1] %v3330_v50  ;;  %v8734_v9 = vunpack.c.l.bf16 %v7115_v57  ;;  %v8735_v54 = vunpack.c.h.bf16 %v7115_v57 }
 0x271   : > { %v2997_v26 = vmul.f32 %v7181_v37, %v8731_v51  ;;  %v2998_v47 = vmul.f32 %v7181_v37, %v8732_v46  ;;  %v8736_v42 = vunpack.c.l.bf16 %v7122_v7  ;;  %v8737_v34 = vunpack.c.l.bf16 %v7124_v24 }
 0x272   : > { %v2999_v59 = vmul.f32 %v7181_v37, %v8733_v38  ;;  %v3000_v40 = vmul.f32 %v8734_v9, %v7181_v37  ;;  %v3001_v25 = vmul.f32 %v8735_v54, %v7181_v37  ;;  %v8738_v41 = vunpack.c.l.bf16 %v7126_v39 }
 0x273   : > { %v3002_v48 = vmul.f32 %v7181_v37, %v8736_v42  ;;  %v7291_v6 = vmul.f32 %v8737_v34, %v7181_v37  ;;  %v8739_v15 = vunpack.c.l.bf16 %v7130_v20  ;;  %v8740_v57 = vunpack.c.l.bf16 %v7132_v49 }
 0x274   : > { %v7296_v50 = vmul.f32 %v8738_v41, %v7181_v37  ;;  %v8741_v51 = vunpack.c.h.bf16 %v7132_v49  ;;  %v8742_v39 = vunpack.c.l.bf16 %v7142_v0  ;;  %v8743_v20 = vunpack.c.l.bf16 %v7144_v18 }
 0x275   : > { %v7301_v58 = vmul.f32 %v8739_v15, %v7181_v37  ;;  %v7306_v7 = vmul.f32 %v8740_v57, %v7181_v37  ;;  %v8744_v54 = vunpack.c.l.bf16 %v7151_v31  ;;  %v8745_v49 = vunpack.c.l.bf16 %v7153_v33 }
 0x276   : > { %v7311_v46 = vmul.f32 %v8741_v51, %v7181_v37  ;;  %v7316_v38 = vmul.f32 %v8742_v39, %v7181_v37  ;;  %v7321_v9 = vmul.f32 %v8743_v20, %v7181_v37  ;;  %v8746_v0 = vunpack.c.l.bf16 %v7158_v61  ;;  %v3515_v20 = vld [vmem:[#allocation3 + $0xc4] sm:$0x8] }
 0x277   : > { %v7326_v42 = vmul.f32 %v8744_v54, %v7181_v37  ;;  %v7331_v34 = vmul.f32 %v8745_v49, %v7181_v37  ;;  %v7339_v15 = vadd.f32 %v7199_v11, %v2979_v32  ;;  %v3007_v18 = vadd.f32 %v7199_v11, %v2980_v4 }
 0x278   : > { %v7336_v41 = vmul.f32 %v8746_v0, %v7181_v37  ;;  %v7343_v57 = vadd.f32 %v7199_v11, %v2981_v36  ;;  %v7346_v31 = vadd.f32 %v7199_v11, %v2982_v19  ;;  %v3010_v33 = vadd.f32 %v7199_v11, %v2983_v1  ;;  %v3371_v19 = vld [vmem:[#allocation3 + $0xc0] sm:$0x2] }
 0x279   : > { %v7350_v51 = vadd.f32 %v7199_v11, %v2984_v14  ;;  %v7353_v39 = vadd.f32 %v7199_v11, %v2985_v43  ;;  %v3013_v32 = vadd.f32 %v7199_v11, %v2986_v13  ;;  %v7357_v54 = vadd.f32 %v7199_v11, %v2987_v53  ;;  %v3637_v13 = vld [vmem:[#allocation3 + $0xc8] sm:$0x1] }
 0x27a   : > { %v7360_v4 = vadd.f32 %v7199_v11, %v2988_v28  ;;  %v3016_v36 = vadd.f32 %v7199_v11, %v2989_v17  ;;  %v5496_v49 = vrot.slane %v3515_v20, 11  ;;  %v7364_v1 = vadd.f32 %v7199_v11, %v2990_v12  ;;  %v3493_v20 = vld [vmem:[#allocation3 + $0xc0] sm:$0x1] }
 0x27b   : > { %v7367_v14 = vadd.f32 %v7199_v11, %v2991_v62  ;;  %v3019_v43 = vadd.f32 %v7199_v11, %v2992_v2  ;;  %v5478_v0 = vrot.slane %v3371_v19, 9  ;;  %v7371_v53 = vadd.f32 %v7199_v11, %v2993_v21 }
 0x27c   : > { %v7374_v28 = vadd.f32 %v7199_v11, %v2994_v44  ;;  %v7377_v17 = vadd.f32 %v7199_v11, %v2995_v63  ;;  %v3638_v12 = vsel %vm5937_vm8, %v5496_v49, %v3637_v13  ;;  %v7382_v62 = vadd.f32 %v7199_v11, %v2996_v29 }
 0x27d   : > { %v7385_v2 = vadd.f32 %v7199_v11, %v2997_v26  ;;  %v7388_v19 = vadd.f32 %v7199_v11, %v2998_v47  ;;  %v3494_v21 = vsel %vm5904_vm7, %v5478_v0, %v3493_v20  ;;  %3639 = vst [vmem:[#allocation3 + $0xc8] sm:$0x1] %v3638_v12  ;;  %v7393_v44 = vadd.f32 %v7199_v11, %v2999_v59 }
 0x27e   : > { %v7396_v63 = vadd.f32 %v7199_v11, %v3000_v40  ;;  %v7399_v49 = vadd.f32 %v7199_v11, %v3001_v25  ;;  %3495 = vst [vmem:[#allocation3 + $0xc0] sm:$0x1] %v3494_v21  ;;  %v8747_v29 = vunpack.c.h.bf16 %v7158_v61  ;;  %v8748_v47 = vunpack.c.l.bf16 %v7160_v60 }
 0x27f   : > { %v8749_v59 = vunpack.c.l.bf16 %v7162_v16  ;;  %v7417_v40 = vadd.f32 %v7199_v11, %v3002_v48  ;;  %v7422_v25 = vmul.f32 %v3170_v22, %v7181_v37  ;;  %v8750_v61 = vunpack.c.l.bf16 %v7177_v5 }
 0x280   : > { %v7404_v26 = vmul.f32 %v8747_v29, %v7181_v37  ;;  %v7409_v0 = vmul.f32 %v8748_v47, %v7181_v37  ;;  %v8751_v60 = vunpack.c.l.bf16 %v7179_v35  ;;  %v8752_v16 = vunpack.c.h.bf16 %v7179_v35 }
 0x281   : > { %v7414_v13 = vmul.f32 %v8749_v59, %v7181_v37  ;;  %v7427_v20 = vmul.f32 %v8750_v61, %v7181_v37  ;;  %v7442_v22 = vmul.f32 %v8753_v55, %v7181_v37  ;;  %v8754_v5 = vunpack.c.l.bf16 %v7189_v30 }
 0x282   : > { %v7432_v12 = vmul.f32 %v8751_v60, %v7181_v37  ;;  %v7437_v48 = vmul.f32 %v8752_v16, %v7181_v37  ;;  %v8755_v29 = vunpack.c.l.bf16 %v7191_v8  ;;  %v3031_v59 = vmax.f32 %v3007_v18, 0.0 }
 0x283   : > { %v7447_v21 = vmul.f32 %v8754_v5, %v7181_v37  ;;  %v8756_v35 = vunpack.c.l.bf16 %v7193_v52  ;;  %v3030_v56 = vmax.f32 %v7339_v15, 0.0  ;;  %v3032_v60 = vmax.f32 %v7343_v57, 0.0 }
 0x284   : > { %v7452_v47 = vmul.f32 %v8755_v29, %v7181_v37  ;;  %v3034_v16 = vmax.f32 %v3010_v33, 0.0  ;;  %v3033_v30 = vmax.f32 %v7346_v31, 0.0  ;;  %v3035_v55 = vmax.f32 %v7350_v51, 0.0 }
 0x285   : > { %v7457_v61 = vmul.f32 %v8756_v35, %v7181_v37  ;;  %v3037_v5 = vmax.f32 %v3013_v32, 0.0  ;;  %v3040_v3 = vmax.f32 %v3016_v36, 0.0  ;;  %v3036_v8 = vmax.f32 %v7353_v39, 0.0 }
 0x286   : > { %v3038_v18 = vmax.f32 %v7357_v54, 0.0  ;;  %v3039_v29 = vmax.f32 %v7360_v4, 0.0  ;;  %v3043_v52 = vmax.f32 %v3019_v43, 0.0  ;;  %v3041_v37 = vmax.f32 %v7364_v1, 0.0  ;;  %v3081_v4 = vld [vmem:[#allocation3 + $0x14] sm:$0x1] }
 0x287   : > { %v3042_v15 = vmax.f32 %v7367_v14, 0.0  ;;  %v3044_v57 = vmax.f32 %v7371_v53, 0.0  ;;  %v3055_v33 = vpack.c.bf16 %v3031_v59, %v3031_v59  ;;  %v3045_v31 = vmax.f32 %v7374_v28, 0.0  ;;  %v3084_v28 = vld [vmem:[#allocation3 + $0x18] sm:$0xf] }
 0x288   : > { %v3046_v51 = vmax.f32 %v7377_v17, 0.0  ;;  %v3054_v32 = vpack.c.bf16 %v3030_v56, %v3030_v56  ;;  %v3058_v36 = vpack.c.bf16 %v3034_v16, %v3034_v16  ;;  %v3056_v35 = vpack.c.bf16 %v3032_v60, %v3032_v60  ;;  %v3091_v16 = vld [vmem:[#allocation3 + $0x24] sm:$0xf] }
 0x289   : > { %v3057_v39 = vpack.c.bf16 %v3033_v30, %v3033_v30  ;;  %v3061_v10 = vpack.c.bf16 %v3037_v5, %v3037_v5  ;;  %v3064_v54 = vpack.c.bf16 %v3040_v3, %v3040_v3  ;;  %3080 = vst.msk [vmem:[#allocation3 + $0x10] sm:$0xf] %vm680_vm2, %v3055_v33  ;;  %v3047_v1 = vmax.f32 %v7382_v62, 0.0  ;;  %v3088_v3 = vld [vmem:[#allocation3 + $0x20] sm:$0x1] }
 0x28a   : > { %v3048_v14 = vmax.f32 %v7385_v2, 0.0  ;;  %v3059_v43 = vpack.c.bf16 %v3035_v55, %v3035_v55  ;;  %v3067_v53 = vpack.c.bf16 %v3043_v52, %v3043_v52  ;;  %3087 = vst.msk [vmem:[#allocation3 + $0x1c] sm:$0xf] %vm680_vm2, %v3058_v36  ;;  %v3049_v17 = vmax.f32 %v7388_v19, 0.0  ;;  %v3095_v2 = vld [vmem:[#allocation3 + $0x2c] sm:$0x1] }
 0x28b   : > { %v3050_v59 = vmax.f32 %v7393_v44, 0.0  ;;  %v3060_v56 = vpack.c.bf16 %v3036_v8, %v3036_v8  ;;  %v3062_v60 = vpack.c.bf16 %v3038_v18, %v3038_v18  ;;  %3094 = vst.msk [vmem:[#allocation3 + $0x28] sm:$0xf] %vm680_vm2, %v3061_v10  ;;  %v3063_v30 = vpack.c.bf16 %v3039_v29, %v3039_v29  ;;  %v3098_v55 = vld [vmem:[#allocation3 + $0x30] sm:$0xf] }
 0x28c   : > { %v3065_v5 = vpack.c.bf16 %v3041_v37, %v3041_v37  ;;  %v3066_v62 = vpack.c.bf16 %v3042_v15, %v3042_v15  ;;  %v3068_v33 = vpack.c.bf16 %v3044_v57, %v3044_v57  ;;  %3101 = vst.msk [vmem:[#allocation3 + $0x34] sm:$0xf] %vm680_vm2, %v3064_v54  ;;  %v3069_v52 = vpack.c.bf16 %v3045_v31, %v3045_v31  ;;  %v3102_v8 = vld [vmem:[#allocation3 + $0x38] sm:$0x1]  ;;  %v3105_v57 = vld [vmem:[#allocation3 + $0x3c] sm:$0xf] }
 0x28d   : > { %v3078_v36 = vsel %vm5898_vm6, %v3054_v32, %v7065_v45  ;;  %v3082_v44 = vsel %vm5904_vm7, %v3056_v35, %v3081_v4  ;;  %v3085_v10 = vsel %vm5898_vm6, %v3057_v39, %v3084_v28  ;;  %3108 = vst.msk [vmem:[#allocation3 + $0x40] sm:$0xf] %vm680_vm2, %v3067_v53  ;;  %v3051_v18 = vmax.f32 %v7396_v63, 0.0  ;;  %v3109_v45 = vld [vmem:[#allocation3 + $0x44] sm:$0x1] }
 0x28e   : > { %v3053_v29 = vmax.f32 %v7417_v40, 0.0  ;;  %v3070_v37 = vpack.c.bf16 %v3046_v51, %v3046_v51  ;;  %3079 = vst [vmem:[#allocation3 + $0xc] sm:$0xf] %v3078_v36  ;;  %v3089_v15 = vsel %vm5904_vm7, %v3059_v43, %v3088_v3  ;;  %v3071_v31 = vpack.c.bf16 %v3047_v1, %v3047_v1  ;;  %v3112_v54 = vld [vmem:[#allocation3 + $0x48] sm:$0xf] }
 0x28f   : > { %v3072_v32 = vpack.c.bf16 %v3048_v14, %v3048_v14  ;;  %3083 = vst [vmem:[#allocation3 + $0x14] sm:$0x1] %v3082_v44  ;;  %v3092_v35 = vsel %vm5898_vm6, %v3060_v56, %v3091_v16  ;;  %v3096_v39 = vsel %vm5904_vm7, %v3062_v60, %v3095_v2  ;;  %v3099_v63 = vsel %vm5898_vm6, %v3063_v30, %v3098_v55  ;;  %v3123_v30 = vld [vmem:[#allocation3 + $0x5c] sm:$0x1]  ;;  %v3130_v55 = vld [vmem:[#allocation3 + $0x68] sm:$0x1] }
 0x290   : > { %3086 = vst [vmem:[#allocation3 + $0x18] sm:$0xf] %v3085_v10  ;;  %v3103_v40 = vsel %vm5904_vm7, %v3065_v5, %v3102_v8  ;;  %v3106_v51 = vsel %vm5898_vm6, %v3066_v62, %v3105_v57  ;;  %v3110_v4 = vsel %vm5904_vm7, %v3068_v33, %v3109_v45  ;;  %v3113_v1 = vsel %vm5898_vm6, %v3069_v52, %v3112_v54  ;;  %v3126_v33 = vld [vmem:[#allocation3 + $0x60] sm:$0xf]  ;;  %v3280_v57 = vld [vmem:[#allocation3 + $0x74] sm:$0x1] }
 0x291   : > { %3090 = vst [vmem:[#allocation3 + $0x20] sm:$0x1] %v3089_v15  ;;  %v3205_v14 = vadd.f32 %v7291_v6, %v7199_v11  ;;  %v3206_v43 = vadd.f32 %v7296_v50, %v7199_v11  ;;  %v3207_v53 = vadd.f32 %v7301_v58, %v7199_v11  ;;  %v3208_v28 = vadd.f32 %v7306_v7, %v7199_v11 }
 0x292   : > { %3093 = vst [vmem:[#allocation3 + $0x24] sm:$0xf] %v3092_v35  ;;  %v7515_v56 = vadd.f32 %v7311_v46, %v7199_v11  ;;  %v3210_v60 = vadd.f32 %v7316_v38, %v7199_v11  ;;  %v7521_v6 = vadd.f32 %v7321_v9, %v7199_v11  ;;  %v7525_v50 = vadd.f32 %v7326_v42, %v7199_v11 }
 0x293   : > { %3097 = vst [vmem:[#allocation3 + $0x2c] sm:$0x1] %v3096_v39  ;;  %v7529_v58 = vadd.f32 %v7331_v34, %v7199_v11  ;;  %v7533_v7 = vadd.f32 %v7336_v41, %v7199_v11  ;;  %v7537_v46 = vadd.f32 %v7404_v26, %v7199_v11  ;;  %v7541_v38 = vadd.f32 %v7409_v0, %v7199_v11 }
 0x294   : > { %3100 = vst [vmem:[#allocation3 + $0x30] sm:$0xf] %v3099_v63  ;;  %v7545_v9 = vadd.f32 %v7414_v13, %v7199_v11  ;;  %v7549_v42 = vadd.f32 %v7422_v25, %v7199_v11  ;;  %v7553_v34 = vadd.f32 %v7427_v20, %v7199_v11  ;;  %v7557_v41 = vadd.f32 %v7432_v12, %v7199_v11  ;;  %v3116_v25 = vld [vmem:[#allocation3 + $0x50] sm:$0x1] }
 0x295   : > { %3104 = vst [vmem:[#allocation3 + $0x38] sm:$0x1] %v3103_v40  ;;  %v7561_v26 = vadd.f32 %v7437_v48, %v7199_v11  ;;  %v7565_v0 = vadd.f32 %v7442_v22, %v7199_v11  ;;  %v7569_v13 = vadd.f32 %v7447_v21, %v7199_v11  ;;  %v3074_v20 = vpack.c.bf16 %v3050_v59, %v3050_v59  ;;  %v3119_v48 = vld [vmem:[#allocation3 + $0x54] sm:$0xf] }
 0x296   : > { %3107 = vst [vmem:[#allocation3 + $0x3c] sm:$0xf] %v3106_v51  ;;  %v7573_v3 = vadd.f32 %v7452_v47, %v7199_v11  ;;  %v7577_v12 = vadd.f32 %v7457_v61, %v7199_v11  ;;  %v3052_v16 = vmax.f32 %v7399_v49, 0.0  ;;  %v3075_v22 = vpack.c.bf16 %v3051_v18, %v3051_v18 }
 0x297   : > { %3111 = vst [vmem:[#allocation3 + $0x44] sm:$0x1] %v3110_v4  ;;  %v3117_v21 = vsel %vm5904_vm7, %v3071_v31, %v3116_v25  ;;  %v3073_v59 = vpack.c.bf16 %v3049_v17, %v3049_v17  ;;  %v3077_v5 = vpack.c.bf16 %v3053_v29, %v3053_v29  ;;  %v3120_v47 = vsel %vm5898_vm6, %v3072_v32, %v3119_v48  ;;  %v3283_v32 = vld [vmem:[#allocation3 + $0x78] sm:$0xf] }
 0x298   : > { %3114 = vst [vmem:[#allocation3 + $0x48] sm:$0xf] %v3113_v1  ;;  %v3229_v11 = vmax.f32 %v3205_v14, 0.0  ;;  %v3230_v61 = vmax.f32 %v3206_v43, 0.0  ;;  %v3231_v49 = vmax.f32 %v3207_v53, 0.0  ;;  %v3232_v62 = vmax.f32 %v3208_v28, 0.0 }
 0x299   : > { %3115 = vst.msk [vmem:[#allocation3 + $0x4c] sm:$0xf] %vm680_vm2, %v3070_v37  ;;  %v3124_v2 = vsel %vm5904_vm7, %v3074_v20, %v3123_v30  ;;  %v3076_v19 = vpack.c.bf16 %v3052_v16, %v3052_v16  ;;  %v3127_v17 = vsel %vm5898_vm6, %v3075_v22, %v3126_v33  ;;  %v3234_v52 = vmax.f32 %v3210_v60, 0.0  ;;  %v3287_v1 = vld [vmem:[#allocation3 + $0x80] sm:$0x1] }
 0x29a   : > { %3118 = vst [vmem:[#allocation3 + $0x50] sm:$0x1] %v3117_v21  ;;  %v3131_v36 = vsel %vm5904_vm7, %v3077_v5, %v3130_v55  ;;  %v3233_v44 = vmax.f32 %v7515_v56, 0.0  ;;  %v3235_v10 = vmax.f32 %v7521_v6, 0.0  ;;  %v3253_v8 = vpack.c.bf16 %v3229_v11, %v3229_v11  ;;  %v3290_v53 = vld [vmem:[#allocation3 + $0x84] sm:$0xf] }
 0x29b   : > { %3121 = vst [vmem:[#allocation3 + $0x54] sm:$0xf] %v3120_v47  ;;  %v3254_v18 = vpack.c.bf16 %v3230_v61, %v3230_v61  ;;  %v3255_v29 = vpack.c.bf16 %v3231_v49, %v3231_v49  ;;  %v3256_v37 = vpack.c.bf16 %v3232_v62, %v3232_v62  ;;  %v3237_v15 = vmax.f32 %v7529_v58, 0.0  ;;  %v3294_v58 = vld [vmem:[#allocation3 + $0x8c] sm:$0x1] }
 0x29c   : > { %3122 = vst.msk [vmem:[#allocation3 + $0x58] sm:$0xf] %vm680_vm2, %v3073_v59  ;;  %v3238_v45 = vmax.f32 %v7533_v7, 0.0  ;;  %v3258_v31 = vpack.c.bf16 %v3234_v52, %v3234_v52  ;;  %v3236_v35 = vmax.f32 %v7525_v50, 0.0  ;;  %v3240_v39 = vmax.f32 %v7541_v38, 0.0 }
 0x29d   : > { %3125 = vst [vmem:[#allocation3 + $0x5c] sm:$0x1] %v3124_v2  ;;  %v3259_v54 = vpack.c.bf16 %v3235_v10, %v3235_v10  ;;  %v3257_v63 = vpack.c.bf16 %v3233_v44, %v3233_v44  ;;  %v3277_v40 = vsel %vm5898_vm6, %v3253_v8, %v7124_v24  ;;  %v3281_v51 = vsel %vm5904_vm7, %v3255_v29, %v3280_v57  ;;  %v3301_v22 = vld [vmem:[#allocation3 + $0x98] sm:$0x1]  ;;  %v3304_v30 = vld [vmem:[#allocation3 + $0x9c] sm:$0xf] }
 0x29e   : > { %3128 = vst [vmem:[#allocation3 + $0x60] sm:$0xf] %v3127_v17  ;;  %v3284_v4 = vsel %vm5898_vm6, %v3256_v37, %v3283_v32  ;;  %v3241_v14 = vmax.f32 %v7545_v9, 0.0  ;;  %v3261_v43 = vpack.c.bf16 %v3237_v15, %v3237_v15  ;;  %v3239_v28 = vmax.f32 %v7537_v46, 0.0  ;;  %v3297_v9 = vld [vmem:[#allocation3 + $0x90] sm:$0xf] }
 0x29f   : > { %3129 = vst.msk [vmem:[#allocation3 + $0x64] sm:$0xf] %vm680_vm2, %v3076_v19  ;;  %v3262_v56 = vpack.c.bf16 %v3238_v45, %v3238_v45  ;;  %v3288_v24 = vsel %vm5904_vm7, %v3258_v31, %v3287_v1  ;;  %v3243_v60 = vmax.f32 %v7553_v34, 0.0  ;;  %v3260_v6 = vpack.c.bf16 %v3236_v35, %v3236_v35  ;;  %v3308_v61 = vld [vmem:[#allocation3 + $0xa4] sm:$0x1] }
 0x2a0   : > { %3132 = vst [vmem:[#allocation3 + $0x68] sm:$0x1] %v3131_v36  ;;  %v3291_v50 = vsel %vm5898_vm6, %v3259_v54, %v3290_v53  ;;  %v3244_v7 = vmax.f32 %v7557_v41, 0.0  ;;  %v3264_v38 = vpack.c.bf16 %v3240_v39, %v3240_v39  ;;  %v3242_v46 = vmax.f32 %v7549_v42, 0.0  ;;  %v3315_v62 = vld [vmem:[#allocation3 + $0xb0] sm:$0x1] }
 0x2a1   : > { %3279 = vst.msk [vmem:[#allocation3 + $0x70] sm:$0xf] %vm680_vm2, %v3254_v18  ;;  %v3265_v25 = vpack.c.bf16 %v3241_v14, %v3241_v14  ;;  %v3295_v20 = vsel %vm5904_vm7, %v3261_v43, %v3294_v58  ;;  %v3246_v34 = vmax.f32 %v7565_v0, 0.0  ;;  %v3263_v48 = vpack.c.bf16 %v3239_v28, %v3239_v28  ;;  %v3356_v55 = vld [vmem:[#allocation3 + $0xc] sm:$0x2] }
 0x2a2   : > { %3278 = vst [vmem:[#allocation3 + $0x6c] sm:$0xf] %v3277_v40  ;;  %v3298_v16 = vsel %vm5898_vm6, %v3262_v56, %v3297_v9  ;;  %v3247_v41 = vmax.f32 %v7569_v13, 0.0  ;;  %v3267_v21 = vpack.c.bf16 %v3243_v60, %v3243_v60  ;;  %v3245_v42 = vmax.f32 %v7561_v26, 0.0  ;;  %v3311_v13 = vld [vmem:[#allocation3 + $0xa8] sm:$0xf] }
 0x2a3   : > { %3282 = vst [vmem:[#allocation3 + $0x74] sm:$0x1] %v3281_v51  ;;  %v3268_v59 = vpack.c.bf16 %v3244_v7, %v3244_v7  ;;  %v3302_v5 = vsel %vm5904_vm7, %v3264_v38, %v3301_v22  ;;  %v3249_v0 = vmax.f32 %v7577_v12, 0.0  ;;  %v3266_v47 = vpack.c.bf16 %v3242_v46, %v3242_v46  ;;  %v3318_v12 = vld [vmem:[#allocation3 + $0xb4] sm:$0xf] }
 0x2a4   : > { %3285 = vst [vmem:[#allocation3 + $0x78] sm:$0xf] %v3284_v4  ;;  %v3305_v11 = vsel %vm5898_vm6, %v3265_v25, %v3304_v30  ;;  %v3270_v49 = vpack.c.bf16 %v3246_v34, %v3246_v34  ;;  %v3248_v26 = vmax.f32 %v7573_v3, 0.0  ;;  %v3271_v33 = vpack.c.bf16 %v3247_v41, %v3247_v41  ;;  %v3357_v52 = vld [vmem:[#allocation3 + $0x18] sm:$0x2] }
 0x2a5   : > { %3286 = vst.msk [vmem:[#allocation3 + $0x7c] sm:$0xf] %vm680_vm2, %v3257_v63  ;;  %v3309_v2 = vsel %vm5904_vm7, %v3267_v21, %v3308_v61  ;;  %v3269_v19 = vpack.c.bf16 %v3245_v42, %v3245_v42  ;;  %v3312_v17 = vsel %vm5898_vm6, %v3268_v59, %v3311_v13  ;;  %v3358_v36 = vld [vmem:[#allocation3 + $0x24] sm:$0x2]  ;;  %v3273_v44 = vpack.c.bf16 %v3249_v0, %v3249_v0  ;;  %v3359_v10 = vld [vmem:[#allocation3 + $0x30] sm:$0x2] }
 0x2a6   : > { %3289 = vst [vmem:[#allocation3 + $0x80] sm:$0x1] %v3288_v24  ;;  %v3360_v8 = vld [vmem:[#allocation3 + $0x3c] sm:$0x2]  ;;  %v3322_v3 = vld [vmem:[#allocation3 + $0xbc] sm:$0x1]  ;;  %v3316_v18 = vsel %vm5904_vm7, %v3270_v49, %v3315_v62  ;;  %v3272_v15 = vpack.c.bf16 %v3248_v26, %v3248_v26  ;;  %v3319_v57 = vsel %vm5898_vm6, %v3271_v33, %v3318_v12 }
 0x2a7   : > { %3292 = vst [vmem:[#allocation3 + $0x84] sm:$0xf] %v3291_v50  ;;  %v3361_v29 = vld [vmem:[#allocation3 + $0x48] sm:$0x2]  ;;  %v5463_v37 = vrot.slane %v3356_v55, 9  ;;  %v5464_v45 = vrot.slane %v3357_v52, 9  ;;  %v3323_v63 = vsel %vm5904_vm7, %v3273_v44, %v3322_v3 }
 0x2a8   : > { %3293 = vst.msk [vmem:[#allocation3 + $0x88] sm:$0xf] %vm680_vm2, %v3260_v6  ;;  %v3448_v31 = vld [vmem:[#allocation3 + $0xc] sm:$0x1]  ;;  %v5465_v32 = vrot.slane %v3358_v36, 9  ;;  %v5466_v51 = vrot.slane %v3359_v10, 9 }
 0x2a9   : > { %3296 = vst [vmem:[#allocation3 + $0x8c] sm:$0x1] %v3295_v20  ;;  %v3451_v35 = vld [vmem:[#allocation3 + $0x18] sm:$0x1]  ;;  %v5540_v39 = vld [vmem:[%s8701_s4 + $0x8] sm:$0xf]  ;;  %v3449_v14 = vsel %vm5904_vm7, %v5463_v37, %v3448_v31 }
 0x2aa   : > { %3299 = vst [vmem:[#allocation3 + $0x90] sm:$0xf] %v3298_v16  ;;  %v5710_v54 = vld [vmem:[%s8701_s4 + $0x8] sm:$0x30]  ;;  %v3454_v4 = vld [vmem:[#allocation3 + $0x24] sm:$0x1]  ;;  %v3452_v24 = vsel %vm5904_vm7, %v5464_v45, %v3451_v35 }
 0x2ab   : > { %3300 = vst.msk [vmem:[#allocation3 + $0x94] sm:$0xf] %vm680_vm2, %v3263_v48  ;;  %v3362_v40 = vld [vmem:[#allocation3 + $0x54] sm:$0x2]  ;;  %v5467_v1 = vrot.slane %v3360_v8, 9  ;;  %v5468_v56 = vrot.slane %v3361_v29, 9  ;;  %v3455_v58 = vsel %vm5904_vm7, %v5465_v32, %v3454_v4  ;;  %v5541_v22 = vor.u32 %v5710_v54, %v5540_v39 }
 0x2ac   : > { %3303 = vst [vmem:[#allocation3 + $0x98] sm:$0x1] %v3302_v5  ;;  %v3457_v43 = vld [vmem:[#allocation3 + $0x30] sm:$0x1]  ;;  %v7656_v53 = vld [vmem:[#allocation3 + $0x18] sm:$0xf] }
 0x2ad   : > { %3306 = vst [vmem:[#allocation3 + $0x9c] sm:$0xf] %v3305_v11  ;;  %v3363_v28 = vld [vmem:[#allocation3 + $0x60] sm:$0x2]  ;;  %v3460_v60 = vld [vmem:[#allocation3 + $0x3c] sm:$0x1]  ;;  %v3458_v25 = vsel %vm5904_vm7, %v5466_v51, %v3457_v43 }
 0x2ae   : > { %3307 = vst.msk [vmem:[#allocation3 + $0xa0] sm:$0xf] %vm680_vm2, %v3266_v47  ;;  %v3364_v6 = vld [vmem:[#allocation3 + $0x6c] sm:$0x2]  ;;  %v5469_v50 = vrot.slane %v3362_v40, 9  ;;  %v5470_v20 = vrot.slane %v3363_v28, 9  ;;  %v3461_v34 = vsel %vm5904_vm7, %v5467_v1, %v3460_v60 }
 0x2af   : > { %3310 = vst [vmem:[#allocation3 + $0xa4] sm:$0x1] %v3309_v2  ;;  %v3463_v7 = vld [vmem:[#allocation3 + $0x48] sm:$0x1]  ;;  %v3348_v38 = vld [vmem:[#allocation3 + $0xcc] sm:$0xf] }
 0x2b0   : > { %3313 = vst [vmem:[#allocation3 + $0xa8] sm:$0xf] %v3312_v17  ;;  %v3365_v9 = vld [vmem:[#allocation3 + $0x78] sm:$0x2]  ;;  %v3366_v46 = vld [vmem:[#allocation3 + $0x84] sm:$0x2]  ;;  %v3464_v30 = vsel %vm5904_vm7, %v5468_v56, %v3463_v7 }
 0x2b1   : > { %3314 = vst.msk [vmem:[#allocation3 + $0xac] sm:$0xf] %vm680_vm2, %v3269_v19  ;;  %v3466_v48 = vld [vmem:[#allocation3 + $0x54] sm:$0x1]  ;;  %v7666_v16 = vld [vmem:[#allocation3 + $0x10] sm:$0x8] }
 0x2b2   : > { %3317 = vst [vmem:[#allocation3 + $0xb0] sm:$0x1] %v3316_v18  ;;  %v3352_v41 = vld [vmem:[#allocation3 + $0xd4] sm:$0x1]  ;;  %v3367_v21 = vld [vmem:[#allocation3 + $0x90] sm:$0x2]  ;;  %v3467_v62 = vsel %vm5904_vm7, %v5469_v50, %v3466_v48 }
 0x2b3   : > { %3320 = vst [vmem:[#allocation3 + $0xb4] sm:$0xf] %v3319_v57  ;;  %v7670_v42 = vld [vmem:[#allocation3 + $0x1c] sm:$0x8]  ;;  %v5471_v59 = vrot.slane %v3364_v6, 9  ;;  %v5472_v5 = vrot.slane %v3365_v9, 9 }
 0x2b4   : > { %3321 = vst.msk [vmem:[#allocation3 + $0xb8] sm:$0xf] %vm680_vm2, %v3272_v15  ;;  %v5473_v0 = vrot.slane %v3366_v46, 9  ;;  %v3469_v47 = vld [vmem:[#allocation3 + $0x60] sm:$0x1]  ;;  %v4005_v61 = vsel %vm1468_vm11, %v5541_v22, 0 }
 0x2b5   : > { %3324 = vst [vmem:[#allocation3 + $0xbc] sm:$0x1] %v3323_v63  ;;  %v7672_v11 = vld [vmem:[#allocation3 + $0x28] sm:$0x8]  ;;  %v3368_v49 = vld [vmem:[#allocation3 + $0x9c] sm:$0x2]  ;;  %4014 = vmatpush.bf16.msrb.mxu2 %v4005_v61  ;;  %4716 = vmatpush.bf16.msra.mxu1 %v4005_v61  ;;  %v3470_v29 = vsel %vm5904_vm7, %v5470_v20, %v3469_v47 }
 0x2b6   : > { %3450 = vst [vmem:[#allocation3 + $0xc] sm:$0x1] %v3449_v14  ;;  %v3472_v26 = vld [vmem:[#allocation3 + $0x6c] sm:$0x1]  ;;  %v7677_v33 = vld [vmem:[#allocation3 + $0x34] sm:$0x8] }
 0x2b7   : > { %3453 = vst [vmem:[#allocation3 + $0x18] sm:$0x1] %v3452_v24  ;;  %v7679_v2 = vld [vmem:[#allocation3 + $0x40] sm:$0x8]  ;;  %v7681_v55 = vld [vmem:[#allocation3 + $0x4c] sm:$0x8]  ;;  %v3473_v45 = vsel %vm5904_vm7, %v5471_v59, %v3472_v26 }
 0x2b8   : > { %3456 = vst [vmem:[#allocation3 + $0x24] sm:$0x1] %v3455_v58  ;;  %v3369_v19 = vld [vmem:[#allocation3 + $0xa8] sm:$0x2]  ;;  %v5474_v17 = vrot.slane %v3367_v21, 9  ;;  %v5481_v8 = vrot.slane %v7666_v16, 11 }
 0x2b9   : > { %3459 = vst [vmem:[#allocation3 + $0x30] sm:$0x1] %v3458_v25  ;;  %v3475_v52 = vld [vmem:[#allocation3 + $0x78] sm:$0x1]  ;;  %v3478_v36 = vld [vmem:[#allocation3 + $0x84] sm:$0x1] }
 0x2ba   : > { %v3344_v13 = vld [vmem:[#allocation3 + $0xb4] sm:$0xf]  ;;  %3462 = vst [vmem:[#allocation3 + $0x3c] sm:$0x1] %v3461_v34  ;;  %v7685_v44 = vld [vmem:[#allocation3 + $0x58] sm:$0x8]  ;;  %v3476_v39 = vsel %vm5904_vm7, %v5472_v5, %v3475_v52  ;;  %v3479_v54 = vsel %vm5904_vm7, %v5473_v0, %v3478_v36 }
 0x2bb   : > { %v3349_v12 = vsel %vm5898_vm6, %v3344_v13, %v3348_v38  ;;  %3465 = vst [vmem:[#allocation3 + $0x48] sm:$0x1] %v3464_v30  ;;  %v7687_v10 = vld [vmem:[#allocation3 + $0x64] sm:$0x8]  ;;  %v3370_v18 = vld [vmem:[#allocation3 + $0xb4] sm:$0x2] }
 0x2bc   : > { %v3346_v3 = vld [vmem:[#allocation3 + $0xbc] sm:$0x1]  ;;  %3350 = vst [vmem:[#allocation3 + $0xcc] sm:$0xf] %v3349_v12  ;;  %v7692_v37 = vld [vmem:[#allocation3 + $0x70] sm:$0x8] }
 0x2bd   : > { %v3353_v15 = vsel %vm5904_vm7, %v3346_v3, %v3352_v41  ;;  %v5475_v57 = vrot.slane %v3368_v49, 9  ;;  %3468 = vst [vmem:[#allocation3 + $0x54] sm:$0x1] %v3467_v62  ;;  %v7698_v31 = vld [vmem:[#allocation3 + $0x7c] sm:$0x8]  ;;  %v5482_v32 = vrot.slane %v7670_v42, 11 }
 0x2be   : > { %3354 = vst [vmem:[#allocation3 + $0xd4] sm:$0x1] %v3353_v15  ;;  %v5476_v35 = vrot.slane %v3369_v19, 9  ;;  %v3481_v63 = vld [vmem:[#allocation3 + $0x90] sm:$0x1]  ;;  %v5483_v40 = vrot.slane %v7672_v11, 11 }
 0x2bf   : > { %v5477_v51 = vrot.slane %v3370_v18, 9  ;;  %3471 = vst [vmem:[#allocation3 + $0x60] sm:$0x1] %v3470_v29  ;;  %v7706_v4 = vld [vmem:[#allocation3 + $0x88] sm:$0x8]  ;;  %v5484_v1 = vrot.slane %v7677_v33, 11  ;;  %v3482_v28 = vsel %vm5904_vm7, %v5474_v17, %v3481_v63 }
 0x2c0   : > { %v5485_v14 = vrot.slane %v7679_v2, 11  ;;  %v5486_v43 = vrot.slane %v7681_v55, 11  ;;  %3474 = vst [vmem:[#allocation3 + $0x6c] sm:$0x1] %v3473_v45  ;;  %v3484_v56 = vld [vmem:[#allocation3 + $0x9c] sm:$0x1] }
 0x2c1   : > { %v5487_v24 = vrot.slane %v7685_v44, 11  ;;  %v5488_v60 = vrot.slane %v7687_v10, 11  ;;  %3477 = vst [vmem:[#allocation3 + $0x78] sm:$0x1] %v3476_v39  ;;  %v3485_v6 = vsel %vm5904_vm7, %v5475_v57, %v3484_v56  ;;  %v3487_v50 = vld [vmem:[#allocation3 + $0xa8] sm:$0x1] }
 0x2c2   : > { %v5489_v58 = vrot.slane %v7692_v37, 11  ;;  %v5490_v7 = vrot.slane %v7698_v31, 11  ;;  %3480 = vst [vmem:[#allocation3 + $0x84] sm:$0x1] %v3479_v54  ;;  %v3488_v38 = vsel %vm5904_vm7, %v5476_v35, %v3487_v50  ;;  %v3490_v9 = vld [vmem:[#allocation3 + $0xb4] sm:$0x1] }
 0x2c3   : > { %v3592_v46 = vld [vmem:[#allocation3 + $0x14] sm:$0x1]  ;;  %v3372_v25 = vld [vmem:[#allocation3 + $0xcc] sm:$0x2]  ;;  %3483 = vst [vmem:[#allocation3 + $0x90] sm:$0x1] %v3482_v28  ;;  %v3491_v20 = vsel %vm5904_vm7, %v5477_v51, %v3490_v9 }
 0x2c4   : > { %v7723_v34 = vld [vmem:[#allocation3 + $0x94] sm:$0x8]  ;;  %v3595_v48 = vld [vmem:[#allocation3 + $0x20] sm:$0x1]  ;;  %v5479_v16 = vrot.slane %v3372_v25, 9  ;;  %v5491_v22 = vrot.slane %v7706_v4, 11  ;;  %v3593_v59 = vsel %vm5937_vm8, %v5481_v8, %v3592_v46 }
 0x2c5   : > { %3486 = vst [vmem:[#allocation3 + $0x9c] sm:$0x1] %v3485_v6  ;;  %v3598_v41 = vld [vmem:[#allocation3 + $0x2c] sm:$0x1]  ;;  %v3512_v30 = vld [vmem:[#allocation3 + $0xa0] sm:$0x8]  ;;  %v3596_v11 = vsel %vm5937_vm8, %v5482_v32, %v3595_v48 }
 0x2c6   : > { %3489 = vst [vmem:[#allocation3 + $0xa8] sm:$0x1] %v3488_v38  ;;  %v3496_v21 = vld [vmem:[#allocation3 + $0xcc] sm:$0x1]  ;;  %v3601_v5 = vld [vmem:[#allocation3 + $0x38] sm:$0x1]  ;;  %v3599_v49 = vsel %vm5937_vm8, %v5483_v40, %v3598_v41 }
 0x2c7   : > { %v7728_v0 = vld [vmem:[#allocation3 + $0x20] sm:$0x1]  ;;  %3492 = vst [vmem:[#allocation3 + $0xb4] sm:$0x1] %v3491_v20  ;;  %v3497_v47 = vsel %vm5904_vm7, %v5479_v16, %v3496_v21  ;;  %v3604_v61 = vld [vmem:[#allocation3 + $0x44] sm:$0x1]  ;;  %v3602_v2 = vsel %vm5937_vm8, %v5484_v1, %v3601_v5 }
 0x2c8   : > { %v5552_v13 = vld [vmem:[%s8701_s4] sm:$0xf]  ;;  %3498 = vst [vmem:[#allocation3 + $0xcc] sm:$0x1] %v3497_v47  ;;  %v3607_v62 = vld [vmem:[#allocation3 + $0x50] sm:$0x1]  ;;  %v3605_v52 = vsel %vm5937_vm8, %v5485_v14, %v3604_v61 }
 0x2c9   : > { %v5709_v26 = vld [vmem:[%s8701_s4] sm:$0x30]  ;;  %v5492_v33 = vrot.slane %v7723_v34, 11  ;;  %3594 = vst [vmem:[#allocation3 + $0x14] sm:$0x1] %v3593_v59  ;;  %v5493_v44 = vrot.slane %v3512_v30, 11  ;;  %v3608_v10 = vsel %vm5937_vm8, %v5486_v43, %v3607_v62 }
 0x2ca   : > { %v3610_v55 = vld [vmem:[#allocation3 + $0x5c] sm:$0x1]  ;;  %v7745_v12 = vld [vmem:[#allocation3 + $0xc] sm:$0xff]  ;;  %v5553_v19 = vor.u32 %v5709_v26, %v5552_v13  ;;  %3597 = vst [vmem:[#allocation3 + $0x20] sm:$0x1] %v3596_v11 }
 0x2cb   : > { %v3513_v17 = vld [vmem:[#allocation3 + $0xac] sm:$0x8]  ;;  %v3613_v36 = vld [vmem:[#allocation3 + $0x68] sm:$0x1]  ;;  %3600 = vst [vmem:[#allocation3 + $0x2c] sm:$0x1] %v3599_v49  ;;  %v3611_v29 = vsel %vm5937_vm8, %v5487_v24, %v3610_v55 }
 0x2cc   : > { %v3616_v8 = vld [vmem:[#allocation3 + $0x74] sm:$0x1]  ;;  %v4064_v3 = vsel %vm1468_vm11, %v5553_v19, 0  ;;  %v3514_v18 = vld [vmem:[#allocation3 + $0xb8] sm:$0x8]  ;;  %v5494_v15 = vrot.slane %v3513_v17, 11  ;;  %v3614_v57 = vsel %vm5937_vm8, %v5488_v60, %v3613_v36 }
 0x2cd   : > { %3603 = vst [vmem:[#allocation3 + $0x38] sm:$0x1] %v3602_v2  ;;  %v3619_v37 = vld [vmem:[#allocation3 + $0x80] sm:$0x1]  ;;  %4073 = vmatpush.bf16.msrb.mxu3 %v4064_v3  ;;  %4767 = vmatpush.bf16.msra.mxu2 %v4064_v3  ;;  %v3622_v45 = vld [vmem:[#allocation3 + $0x8c] sm:$0x1]  ;;  %v3617_v32 = vsel %vm5937_vm8, %v5489_v58, %v3616_v8 }
 0x2ce   : > { %3606 = vst [vmem:[#allocation3 + $0x44] sm:$0x1] %v3605_v52  ;;  %v3768_v31 = vshll.u32 %v7745_v12, 16  ;;  %v3625_v35 = vld [vmem:[#allocation3 + $0x98] sm:$0x1]  ;;  %v5495_v54 = vrot.slane %v3514_v18, 11  ;;  %v3620_v63 = vsel %vm5937_vm8, %v5490_v7, %v3619_v37  ;;  %v3623_v4 = vsel %vm5937_vm8, %v5491_v22, %v3622_v45 }
 0x2cf   : > { %3609 = vst [vmem:[#allocation3 + $0x50] sm:$0x1] %v3608_v10  ;;  %v3628_v39 = vld [vmem:[#allocation3 + $0xa4] sm:$0x1]  ;;  %v3631_v40 = vld [vmem:[#allocation3 + $0xb0] sm:$0x1]  ;;  %v3626_v43 = vsel %vm5937_vm8, %v5492_v33, %v3625_v35 }
 0x2d0   : > { %3612 = vst [vmem:[#allocation3 + $0x5c] sm:$0x1] %v3611_v29  ;;  %v7761_v51 = vld [vmem:[#allocation3 + $0x18] sm:$0xff]  ;;  %v3648_v14 = vld [vmem:[#allocation3 + $0x14] sm:$0x1]  ;;  %v3770_v56 = vrot.slane %v3768_v31, 1  ;;  %v3629_v60 = vsel %vm5937_vm8, %v5493_v44, %v3628_v39  ;;  %v3632_v50 = vsel %vm5937_vm8, %v5494_v15, %v3631_v40 }
 0x2d1   : > { %3615 = vst [vmem:[#allocation3 + $0x68] sm:$0x1] %v3614_v57  ;;  %v3634_v1 = vld [vmem:[#allocation3 + $0xbc] sm:$0x1]  ;;  %v3734_v28 = vunpack.c.l.b16 %v3648_v14  ;;  %v3651_v24 = vld [vmem:[#allocation3 + $0x20] sm:$0x1] }
 0x2d2   : > { %3618 = vst [vmem:[#allocation3 + $0x74] sm:$0x1] %v3617_v32  ;;  %v3735_v6 = vunpack.c.l.b16 %v3651_v24  ;;  %v3766_v7 = vshrl.u32 %v7745_v12, 16  ;;  %v3780_v38 = vshll.u32 %v7761_v51, 16  ;;  %v3336_v9 = vld [vmem:[#allocation3] sm:$0xf]  ;;  %v3635_v25 = vsel %vm5937_vm8, %v5495_v54, %v3634_v1 }
 0x2d3   : > { %3621 = vst [vmem:[#allocation3 + $0x80] sm:$0x1] %v3620_v63  ;;  %v3744_v58 = vpack.c.b16 %v3734_v28, %v3734_v28  ;;  %v3345_v46 = vld [vmem:[#allocation3 + $0xb8] sm:$0xf]  ;;  %v3896_v20 = vrot.slane %v7745_v12, 1  ;;  %v3337_v30 = vsel %vm5898_vm6, %v7656_v53, %v3336_v9  ;;  %v3778_v23 = vshrl.u32 %v7761_v51, 16 }
 0x2d4   : > { %3624 = vst [vmem:[#allocation3 + $0x8c] sm:$0x1] %v3623_v4  ;;  %v7776_v34 = vpack.c.b16 %v3735_v6, %v3735_v6  ;;  %v3771_v16 = vor.u32 %v3770_v56, %v3766_v7  ;;  %v3340_v41 = vld [vmem:[#allocation3 + $0x8] sm:$0x1]  ;;  %v3334_v21 = vld [vmem:[#allocation3 + $0x1c] sm:$0xf] }
 0x2d5   : > { %3627 = vst [vmem:[#allocation3 + $0x98] sm:$0x1] %v3626_v43  ;;  %v3897_v48 = vrot.slane %v3744_v58, 1  ;;  %v3773_v22 = vshll.u32 %v3744_v58, 16  ;;  %v3782_v47 = vrot.slane %v3780_v38, 1  ;;  %v3341_v61 = vsel %vm5904_vm7, %v7728_v0, %v3340_v41  ;;  %v7792_v2 = vld [vmem:[#allocation3 + $0x3c] sm:$0xff] }
 0x2d6   : > { %3630 = vst [vmem:[#allocation3 + $0xa4] sm:$0x1] %v3629_v60  ;;  %v3785_v11 = vshll.u32 %v7776_v34, 16  ;;  %v3654_v13 = vld [vmem:[#allocation3 + $0x2c] sm:$0x1]  ;;  %v7796_v44 = vld [vmem:[#allocation3 + $0x24] sm:$0xff] }
 0x2d7   : > { %3633 = vst [vmem:[#allocation3 + $0xb0] sm:$0x1] %v3632_v50  ;;  %v3898_v59 = vsel %vm1353_vm10, %v3896_v20, %v3897_v48  ;;  %v3775_v5 = vrot.slane %v3773_v22, 1  ;;  %v3783_v53 = vor.u32 %v3782_v47, %v3778_v23  ;;  %v3736_v26 = vunpack.c.l.b16 %v3654_v13  ;;  %v3660_v33 = vld [vmem:[#allocation3 + $0x44] sm:$0x1]  ;;  %v7822_v48 = vld [vmem:[#allocation3 + $0x48] sm:$0xff] }
 0x2d8   : > { %3636 = vst [vmem:[#allocation3 + $0xbc] sm:$0x1] %v3635_v25  ;;  %3925 = vrot.lane.b32.xlu2 %v3898_v59, %s5822_s8  ;;  %v3787_v62 = vrot.slane %v3785_v11, 1  ;;  %v3738_v55 = vunpack.c.l.b16 %v3660_v33  ;;  %v3816_v29 = vshll.u32 %v7792_v2, 16  ;;  %v3902_v45 = vrot.slane %v7796_v44, 1  ;;  %v7817_v6 = vld [vmem:[#allocation3 + $0x60] sm:$0xff] }
 0x2d9   : > { %3351 = vst.msk [vmem:[#allocation3 + $0xd0] sm:$0xf] %vm680_vm2, %v3345_v46  ;;  %v3776_v49 = vsel %vm1212_vm9, %v3771_v16, %v3775_v5  ;;  %v3746_v19 = vpack.c.b16 %v3736_v26, %v3736_v26  ;;  %v3663_v39 = vld [vmem:[#allocation3 + $0x50] sm:$0x1]  ;;  %v3814_v54 = vshrl.u32 %v7792_v2, 16  ;;  %v3792_v56 = vshll.u32 %v7796_v44, 16 }
 0x2da   : > { %3338 = vst [vmem:[#allocation3] sm:$0xf] %v3337_v30  ;;  %3875 = vrot.lane.b32.xlu1 %v3776_v49, %s5821_s30  ;;  %v3788_v0 = vsel %vm1212_vm9, %v3783_v53, %v3787_v62  ;;  %v7798_v18 = vpack.c.b16 %v3738_v55, %v3738_v55  ;;  %v3818_v31 = vrot.slane %v3816_v29, 1  ;;  %v3739_v40 = vunpack.c.l.b16 %v3663_v39  ;;  %v3669_v1 = vld [vmem:[#allocation3 + $0x68] sm:$0x1]  ;;  %v7832_v13 = vld [vmem:[#allocation3 + $0x30] sm:$0xff] }
 0x2db   : > { %3339 = vst.msk [vmem:[#allocation3 + $0x4] sm:$0xf] %vm680_vm2, %v3334_v21  ;;  %v3903_v15 = vrot.slane %v3746_v19, 1  ;;  %v3741_v50 = vunpack.c.l.b16 %v3669_v1  ;;  %v3794_v16 = vrot.slane %v3792_v56, 1  ;;  %v3797_v22 = vshll.u32 %v3746_v19, 16 }
 0x2dc   : > { %3342 = vst [vmem:[#allocation3 + $0x8] sm:$0x1] %v3341_v61  ;;  %v3821_v32 = vshll.u32 %v7798_v18, 16  ;;  %v3819_v27 = vor.u32 %v3818_v31, %v3814_v54  ;;  %v7815_v60 = vpack.c.b16 %v3739_v40, %v3739_v40  ;;  %v3657_v41 = vld [vmem:[#allocation3 + $0x38] sm:$0x1]  ;;  %v3852_v21 = vshll.u32 %v7817_v6, 16 }
 0x2dd   : > { %v3904_v35 = vsel %vm1353_vm10, %v3902_v45, %v3903_v15  ;;  %v7827_v47 = vpack.c.b16 %v3741_v50, %v3741_v50  ;;  %v3790_v11 = vshrl.u32 %v7796_v44, 16  ;;  %v3737_v49 = vunpack.c.l.b16 %v3657_v41  ;;  %v4358_v15 = vld [vmem:[#allocation3 + $0x74] sm:$0x1]  ;;  %v3666_v50 = vld [vmem:[#allocation3 + $0x5c] sm:$0x1] }
 0x2de   : > { %v3823_v63 = vrot.slane %v3821_v32, 1  ;;  %v3912_v5 = vrot.slane %v7815_v60, 1  ;;  %v3911_v23 = vrot.slane %v7822_v48, 1  ;;  %v3799_v62 = vrot.slane %v3797_v22, 1  ;;  %v7867_v22 = vld [vmem:[#allocation3 + $0x54] sm:$0xff] }
 0x2df   : > { %v3795_v53 = vor.u32 %v3794_v16, %v3790_v11  ;;  %v3854_v33 = vrot.slane %v3852_v21, 1  ;;  %v3857_v55 = vshll.u32 %v7827_v47, 16  ;;  %v3900_v19 = vrot.slane %v7776_v34, 1 }
 0x2e0   : > { %3877 = vrot.lane.b32.xlu2 %v3788_v0, %s5821_s30  ;;  %v3824_v24 = vsel %vm1212_vm9, %v3819_v27, %v3823_v63  ;;  %v3913_v26 = vsel %vm1353_vm10, %v3911_v23, %v3912_v5  ;;  %v4355_v0 = vld [vmem:[#allocation3 + $0x68] sm:$0x1]  ;;  %v3828_v32 = vshll.u32 %v7822_v48, 16  ;;  %v7852_v27 = vld [vmem:[#allocation3 + $0x6c] sm:$0xff]  ;;  %v4444_v63 = vunpack.c.l.b16 %v4358_v15  ;;  %v7889_v15 = vld [vmem:[#allocation3 + $0x9c] sm:$0xff] }
 0x2e1   : > { %v3355_v17 = vld [vmem:[#allocation3] sm:$0x2]  ;;  %v3445_v10 = vld [vmem:[#allocation3] sm:$0x1]  ;;  %v3859_v29 = vrot.slane %v3857_v55, 1  ;;  %v3905_v40 = vrot.slane %v7832_v13, 1  ;;  %v3740_v41 = vunpack.c.l.b16 %v3666_v50 }
 0x2e2   : > { %v5462_v52 = vrot.slane %v3355_v17, 9  ;;  %v3499_v36 = vld [vmem:[#allocation3 + $0x4] sm:$0x8]  ;;  %v3747_v17 = vpack.c.b16 %v3737_v49, %v3737_v49  ;;  %v4364_v49 = vld [vmem:[#allocation3 + $0x8c] sm:$0x1]  ;;  %v3909_v23 = vrot.slane %v7798_v18, 1 }
 0x2e3   : > { %v5480_v8 = vrot.slane %v3499_v36, 11  ;;  %v3589_v3 = vld [vmem:[#allocation3 + $0x8] sm:$0x1]  ;;  %v3850_v36 = vshrl.u32 %v7817_v6, 16  ;;  %v3908_v42 = vrot.slane %v7792_v2, 1  ;;  %v7904_v50 = vld [vmem:[#allocation3 + $0x78] sm:$0xff] }
 0x2e4   : > { %v3446_v37 = vsel %vm5904_vm7, %v5462_v52, %v3445_v10  ;;  %v3804_v52 = vshll.u32 %v7832_v13, 16  ;;  %v3899_v10 = vrot.slane %v7761_v51, 1  ;;  %v3809_v31 = vshll.u32 %v3747_v17, 16 }
 0x2e5   : > { %3447 = vst [vmem:[#allocation3] sm:$0x1] %v3446_v37  ;;  %v3590_v57 = vsel %vm5937_vm8, %v5480_v8, %v3589_v3  ;;  %v3800_v8 = vsel %vm1212_vm9, %v3795_v53, %v3799_v62  ;;  %v3855_v3 = vor.u32 %v3854_v33, %v3850_v36  ;;  %v4443_v37 = vunpack.c.l.b16 %v4355_v0 }
 0x2e6   : > { %3591 = vst [vmem:[#allocation3 + $0x8] sm:$0x1] %v3590_v57  ;;  %v3901_v57 = vsel %vm1353_vm10, %v3899_v10, %v3900_v19  ;;  %v3806_v45 = vrot.slane %v3804_v52, 1  ;;  %v3906_v34 = vrot.slane %v3747_v17, 1  ;;  %v3750_v53 = vpack.c.b16 %v3740_v41, %v3740_v41  ;;  %v4370_v17 = vld [vmem:[#allocation3 + $0xa4] sm:$0x1] }
 0x2e7   : > { %v3860_v39 = vsel %vm1212_vm9, %v3855_v3, %v3859_v29  ;;  %v7850_v54 = vpack.c.b16 %v4443_v37, %v4443_v37  ;;  %v3840_v62 = vshll.u32 %v7867_v22, 16  ;;  %v4446_v19 = vunpack.c.l.b16 %v4364_v49 }
 0x2e8   : > { %3929 = vrot.lane.b32.xlu2 %v3904_v35, %s5822_s8  ;;  %v3802_v35 = vshrl.u32 %v7832_v13, 16  ;;  %v3907_v56 = vsel %vm1353_vm10, %v3905_v40, %v3906_v34  ;;  %v3910_v52 = vsel %vm1353_vm10, %v3908_v42, %v3909_v23  ;;  %v3845_v10 = vshll.u32 %v3750_v53, 16  ;;  %v4376_v23 = vld [vmem:[#allocation3 + $0xbc] sm:$0x1] }
 0x2e9   : > { %v3842_v36 = vrot.slane %v3840_v62, 1  ;;  %v3915_v18 = vrot.slane %v3750_v53, 1  ;;  %v7887_v37 = vpack.c.b16 %v4446_v19, %v4446_v19  ;;  %v3918_v41 = vrot.slane %v7827_v47, 1 }
 0x2ea   : > { %v3807_v1 = vor.u32 %v3806_v45, %v3802_v35  ;;  %v3914_v45 = vrot.slane %v7867_v22, 1  ;;  %v3847_v34 = vrot.slane %v3845_v10, 1  ;;  %v4488_v62 = vshrl.u32 %v7904_v50, 16 }
 0x2ec   : > { %v7810_v4 = vld [vmem:[#allocation3] sm:$0xff]  ;;  %v3916_v35 = vsel %vm1353_vm10, %v3914_v45, %v3915_v18  ;;  %v4609_v18 = vrot.slane %v7904_v50, 1 }
 0x2ed   : > { %v3645_v14 = vld [vmem:[#allocation3 + $0x8] sm:$0x1]  ;;  %v3756_v28 = vshll.u32 %v7810_v4, 16  ;;  %v3893_v7 = vrot.slane %v7810_v4, 1  ;;  %v3754_v38 = vshrl.u32 %v7810_v4, 16 }
 0x2ee   : > { %v3733_v43 = vunpack.c.l.b16 %v3645_v14  ;;  %v3811_v14 = vrot.slane %v3809_v31, 1 }
 0x2ef   : > { %v3758_v9 = vrot.slane %v3756_v28, 1  ;;  %v3516_v28 = vld [vmem:[#allocation3 + $0xd0] sm:$0x8] }
 0x2f0   : > { %v3743_v58 = vpack.c.b16 %v3733_v43, %v3733_v43  ;;  %3883 = vrot.lane.b32.xlu2 %v3824_v24, %s5821_s30  ;;  %v7856_v43 = vld [vmem:[#allocation3 + $0x60] sm:$0xff]  ;;  %v3830_v24 = vrot.slane %v3828_v32, 1  ;;  %v3812_v16 = vsel %vm1212_vm9, %v3807_v1, %v3811_v14  ;;  %v4613_v1 = vrot.slane %v7887_v37, 1 }
 0x2f1   : > { %v3759_v25 = vor.u32 %v3758_v9, %v3754_v38  ;;  %v7861_v38 = vpack.c.b16 %v4444_v63, %v4444_v63  ;;  %v4478_v9 = vshll.u32 %v7852_v27, 16  ;;  %v4603_v21 = vrot.slane %v7856_v43, 1  ;;  %v7893_v32 = vld [vmem:[#allocation3 + $0x84] sm:$0xff]  ;;  %v4361_v63 = vld [vmem:[#allocation3 + $0x80] sm:$0x1] }
 0x2f2   : > { %v3894_v46 = vrot.slane %v3743_v58, 1  ;;  %v3761_v20 = vshll.u32 %v3743_v58, 16  ;;  %v3833_v58 = vshll.u32 %v7815_v60, 16  ;;  %v4466_v3 = vshll.u32 %v7856_v43, 16 }
 0x2f3   : > { %v4480_v11 = vrot.slane %v4478_v9, 1 }
 0x2f4   : > { %v3895_v30 = vsel %vm1353_vm10, %v3893_v7, %v3894_v46  ;;  %v3763_v59 = vrot.slane %v3761_v20, 1  ;;  %v4604_v7 = vrot.slane %v7850_v54, 1  ;;  %v3640_v46 = vld [vmem:[#allocation3 + $0xd4] sm:$0x1]  ;;  %v5497_v20 = vrot.slane %v3516_v28, 11 }
 0x2f5   : > { %3923 = vrot.lane.b32.xlu1 %v3895_v30, %s5822_s8  ;;  %v4468_v40 = vrot.slane %v4466_v3, 1  ;;  %v4526_v28 = vshll.u32 %v7889_v15, 16 }
 0x2f6   : > { %v3764_v61 = vsel %vm1212_vm9, %v3759_v25, %v3763_v59  ;;  %v3826_v25 = vshrl.u32 %v7822_v48, 16  ;;  %v3641_v30 = vsel %vm5937_vm8, %v5497_v20, %v3640_v46  ;;  %v3835_v59 = vrot.slane %v3833_v58, 1 }
 0x2f7   : > { %3873 = vrot.lane.b32.xlu0 %v3764_v61, %s5821_s30  ;;  %v4605_v5 = vsel %vm1353_vm10, %v4603_v21, %v4604_v7  ;;  %v4483_v61 = vshll.u32 %v7861_v38, 16  ;;  %3642 = vst [vmem:[#allocation3 + $0xd4] sm:$0x1] %v3641_v30  ;;  %v4445_v58 = vunpack.c.l.b16 %v4361_v63  ;;  %v4612_v7 = vrot.slane %v7893_v32, 1 }
 0x2f8   : > { %3935 = vrot.lane.b32.xlu2 %v3913_v26, %s5822_s8  ;;  %v3831_v60 = vor.u32 %v3830_v24, %v3826_v25  ;;  %v4476_v26 = vshrl.u32 %v7852_v27, 16  ;;  %v4464_v24 = vshrl.u32 %v7856_v43, 16  ;;  %v4528_v25 = vrot.slane %v4526_v28, 1 }
 0x2f9   : > { %v4485_v0 = vrot.slane %v4483_v61, 1  ;;  %v4614_v46 = vsel %vm1353_vm10, %v4612_v7, %v4613_v1  ;;  %v4455_v21 = vpack.c.b16 %v4445_v58, %v4445_v58  ;;  %v4524_v30 = vshrl.u32 %v7889_v15, 16 }
 0x2fa   : > { %v3836_v33 = vsel %vm1212_vm9, %v3831_v60, %v3835_v59  ;;  %v4481_v55 = vor.u32 %v4480_v11, %v4476_v26  ;;  %v4469_v9 = vor.u32 %v4468_v40, %v4464_v24  ;;  %v4490_v60 = vshll.u32 %v7904_v50, 16 }
 0x2fb   : > { %v3917_v59 = vrot.slane %v7817_v6, 1  ;;  %v4529_v11 = vor.u32 %v4528_v25, %v4524_v30  ;;  %v4495_v26 = vshll.u32 %v4455_v21, 16  ;;  %v4610_v42 = vrot.slane %v4455_v21, 1  ;;  %v4379_v25 = vld [vmem:[#allocation3 + $0xc8] sm:$0x1] }
 0x2fc   : > { %v4486_v29 = vsel %vm1212_vm9, %v4481_v55, %v4485_v0  ;;  %v4492_v47 = vrot.slane %v4490_v60, 1  ;;  %v5564_v55 = vld [vmem:[%s8701_s4 + $0x10] sm:$0xf]  ;;  %v5711_v0 = vld [vmem:[%s8701_s4 + $0x10] sm:$0x30]  ;;  %v4500_v1 = vshrl.u32 %v7893_v32, 16 }
 0x2fd   : > { %3879 = vrot.lane.b32.xlu1 %v3800_v8, %s5821_s30  ;;  %v3838_v8 = vshrl.u32 %v7867_v22, 16  ;;  %v3919_v53 = vsel %vm1353_vm10, %v3917_v59, %v3918_v41  ;;  %v5565_v10 = vor.u32 %v5711_v0, %v5564_v55  ;;  %v4497_v3 = vrot.slane %v4495_v26, 1  ;;  %v7966_v0 = vld [vmem:[#allocation3 + $0xc0] sm:$0xff] }
 0x2fe   : > { %v4611_v45 = vsel %vm1353_vm10, %v4609_v18, %v4610_v42  ;;  %v4606_v60 = vrot.slane %v7852_v27, 1 }
 0x2ff   : > { %3927 = vrot.lane.b32.xlu0 %v3901_v57, %s5822_s8  ;;  %v4448_v57 = vunpack.c.l.b16 %v4370_v17  ;;  %v3843_v31 = vor.u32 %v3842_v36, %v3838_v8  ;;  %v4450_v36 = vunpack.c.l.b16 %v4376_v23  ;;  %v4493_v8 = vor.u32 %v4492_v47, %v4488_v62 }
 0x300   : > { %3889 = vrot.lane.b32.xlu2 %v3860_v39, %s5821_s30  ;;  %v4471_v39 = vshll.u32 %v7850_v54, 16 }
 0x301   : > { %v7898_v14 = vpack.c.b16 %v4448_v57, %v4448_v57  ;;  %v4123_v57 = vsel %vm1468_vm11, %v5565_v10, 0  ;;  %v7940_v63 = vpack.c.b16 %v4450_v36, %v4450_v36  ;;  %v4498_v28 = vsel %vm1212_vm9, %v4493_v8, %v4497_v3 }
 0x302   : > { %v4473_v54 = vrot.slane %v4471_v39, 1  ;;  %4132 = vmatpush.bf16.msra.mxu0 %v4123_v57  ;;  %4818 = vmatpush.bf16.msra.mxu3 %v4123_v57 }
 0x303   : > { %v4531_v20 = vshll.u32 %v7898_v14, 16 }
 0x305   : > { %3931 = vrot.lane.b32.xlu1 %v3907_v56, %s5822_s8  ;;  %v3848_v56 = vsel %vm1212_vm9, %v3843_v31, %v3847_v34  ;;  %v4533_v61 = vrot.slane %v4531_v20, 1  ;;  %v4367_v34 = vld [vmem:[#allocation3 + $0x98] sm:$0x1]  ;;  %v4607_v20 = vrot.slane %v7861_v38, 1 }
 0x306   : > { %v4447_v24 = vunpack.c.l.b16 %v4367_v34  ;;  %v4627_v34 = vrot.slane %v7966_v0, 1 }
 0x307   : > { %3881 = vrot.lane.b32.xlu0 %v3812_v16, %s5821_s30  ;;  %v4373_v16 = vld [vmem:[#allocation3 + $0xb0] sm:$0x1]  ;;  %v4534_v19 = vsel %vm1212_vm9, %v4529_v11, %v4533_v61  ;;  %v4451_v11 = vunpack.c.l.b16 %v4379_v25  ;;  %v4608_v61 = vsel %vm1353_vm10, %v4606_v60, %v4607_v20 }
 0x308   : > { %4633 = vrot.lane.b32.xlu2 %v4605_v5, %s5822_s8  ;;  %v4474_v5 = vsel %vm1212_vm9, %v4469_v9, %v4473_v54  ;;  %v4449_v49 = vunpack.c.l.b16 %v4373_v16  ;;  %v4457_v16 = vpack.c.b16 %v4447_v24, %v4447_v24 }
 0x309   : > { %v4461_v26 = vpack.c.b16 %v4451_v11, %v4451_v11  ;;  %v7993_v11 = vld [vmem:[#allocation3 + $0xcc] sm:$0xff] }
 0x30a   : > { %v7928_v17 = vpack.c.b16 %v4449_v49, %v4449_v49  ;;  %v4519_v23 = vshll.u32 %v4457_v16, 16 }
 0x30b   : > { %v4628_v8 = vrot.slane %v4461_v26, 1 }
 0x30c   : > { %v4622_v39 = vrot.slane %v7928_v17, 1  ;;  %v4521_v55 = vrot.slane %v4519_v23, 1  ;;  %v4543_v18 = vshll.u32 %v7928_v17, 16  ;;  %v4619_v17 = vrot.slane %v7898_v14, 1 }
 0x30d   : > { %3885 = vrot.lane.b32.xlu1 %v3836_v33, %s5821_s30  ;;  %v4502_v33 = vshll.u32 %v7893_v32, 16  ;;  %v4562_v14 = vshll.u32 %v7966_v0, 16 }
 0x30f   : > { %3933 = vrot.lane.b32.xlu0 %v3910_v52, %s5822_s8  ;;  %v7930_v52 = vld [vmem:[#allocation3 + $0xb4] sm:$0xff]  ;;  %v4504_v31 = vrot.slane %v4502_v33, 1  ;;  %v4564_v60 = vrot.slane %v4562_v14, 1 }
 0x310   : > { %4585 = vrot.lane.b32.xlu2 %v4486_v29, %s5821_s30  ;;  %v7934_v29 = vld [vmem:[#allocation3 + $0xa8] sm:$0xff]  ;;  %v4550_v40 = vshll.u32 %v7930_v52, 16  ;;  %v4548_v21 = vshrl.u32 %v7930_v52, 16 }
 0x311   : > { %v4621_v58 = vrot.slane %v7934_v29, 1  ;;  %v4538_v62 = vshll.u32 %v7934_v29, 16  ;;  %v4536_v57 = vshrl.u32 %v7934_v29, 16 }
 0x312   : > { %v4552_v9 = vrot.slane %v4550_v40, 1  ;;  %v4629_v40 = vsel %vm1353_vm10, %v4627_v34, %v4628_v8 }
 0x313   : > { %v4623_v54 = vsel %vm1353_vm10, %v4621_v58, %v4622_v39  ;;  %v4540_v10 = vrot.slane %v4538_v62, 1  ;;  %v4545_v39 = vrot.slane %v4543_v18, 1  ;;  %v4618_v58 = vrot.slane %v7889_v15, 1 }
 0x314   : > { %v4553_v59 = vor.u32 %v4552_v9, %v4548_v21  ;;  %v4574_v62 = vshll.u32 %v7993_v11, 16  ;;  %v4630_v18 = vrot.slane %v7993_v11, 1 }
 0x315   : > { %3937 = vrot.lane.b32.xlu1 %v3916_v35, %s5822_s8  ;;  %v4507_v35 = vshll.u32 %v7887_v37, 16  ;;  %v4505_v37 = vor.u32 %v4504_v31, %v4500_v1 }
 0x317   : > { %3887 = vrot.lane.b32.xlu0 %v3848_v56, %s5821_s30  ;;  %v7946_v56 = vld [vmem:[#allocation3 + $0x90] sm:$0xff]  ;;  %v4509_v7 = vrot.slane %v4507_v35, 1  ;;  %v4541_v35 = vor.u32 %v4540_v10, %v4536_v57 }
 0x318   : > { %4639 = vrot.lane.b32.xlu2 %v4614_v46, %s5822_s8  ;;  %v4555_v46 = vshll.u32 %v7940_v63, 16  ;;  %v4514_v41 = vshll.u32 %v7946_v56, 16  ;;  %v4512_v38 = vshrl.u32 %v7946_v56, 16  ;;  %v4615_v42 = vrot.slane %v7946_v56, 1 }
 0x319   : > { %v4510_v30 = vsel %vm1212_vm9, %v4505_v37, %v4509_v7  ;;  %v4546_v24 = vsel %vm1212_vm9, %v4541_v35, %v4545_v39  ;;  %v4620_v37 = vsel %vm1353_vm10, %v4618_v58, %v4619_v17 }
 0x31a   : > { %v4516_v49 = vrot.slane %v4514_v41, 1  ;;  %v4382_v41 = vld [vmem:[#allocation3 + $0xd4] sm:$0x1] }
 0x31c   : > { %v4517_v33 = vor.u32 %v4516_v49, %v4512_v38  ;;  %v4625_v38 = vrot.slane %v7940_v63, 1 }
 0x31d   : > { %4583 = vrot.lane.b32.xlu1 %v4474_v5, %s5821_s30  ;;  %v4557_v5 = vrot.slane %v4555_v46, 1 }
 0x31e   : > { %v4522_v3 = vsel %vm1212_vm9, %v4517_v33, %v4521_v55 }
 0x31f   : > { %3939 = vrot.lane.b32.xlu0 %v3919_v53, %s5822_s8  ;;  %v4616_v53 = vrot.slane %v4457_v16, 1  ;;  %v4558_v47 = vsel %vm1212_vm9, %v4553_v59, %v4557_v5  ;;  %v4560_v5 = vshrl.u32 %v7966_v0, 16 }
 0x320   : > { %4593 = vrot.lane.b32.xlu2 %v4534_v19, %s5821_s30  ;;  %v3672_v19 = vld [vmem:[#allocation3 + $0x74] sm:$0x1] }
 0x321   : > { %v4617_v36 = vsel %vm1353_vm10, %v4615_v42, %v4616_v53  ;;  %v3742_v31 = vunpack.c.l.b16 %v3672_v19  ;;  %v4565_v49 = vor.u32 %v4564_v60, %v4560_v5  ;;  %v4576_v19 = vrot.slane %v4574_v62, 1 }
 0x323   : > { %v3752_v1 = vpack.c.b16 %v3742_v31, %v3742_v31 }
 0x325   : > { %4637 = vrot.lane.b32.xlu1 %v4611_v45, %s5822_s8  ;;  %v7973_v45 = vld [vmem:[#allocation3 + $0x6c] sm:$0xff]  ;;  %v3921_v9 = vrot.slane %v3752_v1, 1 }
 0x326   : > { %v3862_v46 = vshrl.u32 %v7973_v45, 16  ;;  %v3920_v25 = vrot.slane %v7973_v45, 1 }
 0x327   : > { %4587 = vrot.lane.b32.xlu0 %v4498_v28, %s5821_s30  ;;  %v3864_v28 = vshll.u32 %v7973_v45, 16 }
 0x328   : > { %4645 = vrot.lane.b32.xlu2 %v4623_v54, %s5822_s8  ;;  %v3869_v54 = vshll.u32 %v3752_v1, 16  ;;  %v3922_v21 = vsel %vm1353_vm10, %v3920_v25, %v3921_v9 }
 0x329   : > { %v3866_v7 = vrot.slane %v3864_v28, 1 }
 0x32a   : > { %v3871_v16 = vrot.slane %v3869_v54, 1 }
 0x32b   : > { %v3867_v20 = vor.u32 %v3866_v7, %v3862_v46 }
 0x32d   : > { %4589 = vrot.lane.b32.xlu1 %v4510_v30, %s5821_s30  ;;  %v4567_v30 = vshll.u32 %v4461_v26, 16  ;;  %v3872_v59 = vsel %vm1212_vm9, %v3867_v20, %v3871_v16  ;;  %v4624_v26 = vrot.slane %v7930_v52, 1 }
 0x32f   : > { %4635 = vrot.lane.b32.xlu0 %v4608_v61, %s5822_s8  ;;  %v4452_v61 = vunpack.c.l.b16 %v4382_v41  ;;  %v4569_v23 = vrot.slane %v4567_v30, 1  ;;  %v4626_v55 = vsel %vm1353_vm10, %v4624_v26, %v4625_v38 }
 0x330   : > { %4597 = vrot.lane.b32.xlu2 %v4558_v47, %s5821_s30 }
 0x331   : > { %v4462_v53 = vpack.c.b16 %v4452_v61, %v4452_v61  ;;  %v4570_v47 = vsel %vm1212_vm9, %v4565_v49, %v4569_v23 }
 0x332   : > { %v3926_v33 = vpop.permute.xlu2 %3925 }
 0x333   : > { %v4631_v8 = vrot.slane %v4462_v53, 1 }
 0x335   : > { %4641 = vrot.lane.b32.xlu1 %v4617_v36, %s5822_s8  ;;  %v4579_v36 = vshll.u32 %v4462_v53, 16  ;;  %v4632_v34 = vsel %vm1353_vm10, %v4630_v18, %v4631_v8 }
 0x337   : > { %4591 = vrot.lane.b32.xlu0 %v4522_v3, %s5821_s30  ;;  %v4572_v3 = vshrl.u32 %v7993_v11, 16  ;;  %v4581_v31 = vrot.slane %v4579_v36, 1 }
 0x338   : > { %4649 = vrot.lane.b32.xlu2 %v4629_v40, %s5822_s8 }
 0x339   : > { %v4577_v57 = vor.u32 %v4576_v19, %v4572_v3 }
 0x33b   : > { %v4582_v35 = vsel %vm1212_vm9, %v4577_v57, %v4581_v31 }
 0x33d   : > { %4595 = vrot.lane.b32.xlu1 %v4546_v24, %s5821_s30 }
 0x33f   : > { %4643 = vrot.lane.b32.xlu0 %v4620_v37, %s5822_s8 }
 0x345   : > { %3941 = vrot.lane.b32.xlu1 %v3922_v21, %s5822_s8 }
 0x347   : > { %3891 = vrot.lane.b32.xlu0 %v3872_v59, %s5821_s30 }
 0x34c   : > { %v3876_v42 = vpop.permute.xlu1 %3875 }
 0x34d   : > { %4599 = vrot.lane.b32.xlu1 %v4570_v47, %s5821_s30  ;;  %v3946_v10 = vsel %vm1404_vm12, %v7745_v12, %v3876_v42  ;;  %v3878_v12 = vpop.permute.xlu2 %3877 }
 0x34e   : > { %v3966_v63 = vsel %vm1425_vm13, %v3946_v10, %v3926_v33  ;;  %v3948_v24 = vsel %vm1404_vm12, %v7761_v51, %v3878_v12 }
 0x34f   : > { %4647 = vrot.lane.b32.xlu0 %v4626_v55, %s5822_s8  ;;  %5542 = vmatmul.msk.bf16.vlgmr.msrb.gmra.mxu2 %vm1451_vm14, %v3966_v63 }
 0x355   : > { %4651 = vrot.lane.b32.xlu1 %v4632_v34, %s5822_s8  ;;  %v3930_v28 = vpop.permute.xlu2 %3929 }
 0x357   : > { %4601 = vrot.lane.b32.xlu0 %v4582_v35, %s5821_s30 }
 0x35d   : > { %v3884_v7 = vpop.permute.xlu2 %3883 }
 0x35e   : > { %v3954_v49 = vsel %vm1404_vm12, %v7792_v2, %v3884_v7 }
 0x365   : > { %v3936_v46 = vpop.permute.xlu2 %3935 }
 0x367   : > { %v3924_v40 = vpop.permute.xlu1 %3923 }
 0x369   : > { %v3874_v39 = vpop.permute.xlu0 %3873 }
 0x36a   : > { %v3944_v17 = vsel %vm1404_vm12, %v7810_v4, %v3874_v39 }
 0x36b   : > { %v3964_v1 = vsel %vm1425_vm13, %v3944_v17, %v3924_v40 }
 0x36c   : > { %5554 = vmatmul.msk.bf16.vlgmr.msrb.gmra.mxu3 %vm1451_vm14, %v3964_v1 }
 0x36d   : > { %v3890_v20 = vpop.permute.xlu2 %3889 }
 0x36f   : > { %v3880_v9 = vpop.permute.xlu1 %3879 }
 0x370   : > { %v3950_v4 = vsel %vm1404_vm12, %v7796_v44, %v3880_v9 }
 0x371   : > { %v3928_v58 = vpop.permute.xlu0 %3927  ;;  %v3970_v25 = vsel %vm1425_vm13, %v3950_v4, %v3930_v28 }
 0x372   : > { %v3968_v37 = vsel %vm1425_vm13, %v3948_v24, %v3928_v58 }
 0x373   : > { %5543 = vmatmul.msk.bf16.gmra.mxu2 %vm1451_vm14, %v3968_v37  ;;  %5566 = vmatmul.msk.bf16.vlgmr.msra.gmra.mxu0 %vm1451_vm14, %v3968_v37 }
 0x375   : > { %v4634_v44 = vpop.permute.xlu2 %4633 }
 0x377   : > { %v3932_v16 = vpop.permute.xlu1 %3931 }
 0x379   : > { %v3882_v54 = vpop.permute.xlu0 %3881 }
 0x37a   : > { %v3952_v41 = vsel %vm1404_vm12, %v7832_v13, %v3882_v54 }
 0x37b   : > { %v3972_v60 = vsel %vm1425_vm13, %v3952_v41, %v3932_v16 }
 0x37c   : > { %5555 = vmatmul.msk.bf16.gmra.mxu3 %vm1451_vm14, %v3966_v63  ;;  %v3960_v63 = vsel %vm1404_vm12, %v7817_v6, %v3890_v20 }
 0x37d   : > { %v4586_v5 = vpop.permute.xlu2 %4585 }
 0x37e   : > { %v4656_v13 = vsel %vm1404_vm12, %v7852_v27, %v4586_v5 }
 0x37f   : > { %v3886_v30 = vpop.permute.xlu1 %3885 }
 0x380   : > { %v3956_v2 = vsel %vm1404_vm12, %v7822_v48, %v3886_v30 }
 0x381   : > { %v3934_v14 = vpop.permute.xlu0 %3933  ;;  %v3976_v26 = vsel %vm1425_vm13, %v3956_v2, %v3936_v46 }
 0x382   : > { %v3974_v38 = vsel %vm1425_vm13, %v3954_v49, %v3934_v14 }
 0x383   : > { %5544 = vmatmul.msk.bf16.gmra.mxu2 %vm1451_vm14, %v3970_v25  ;;  %5567 = vmatmul.msk.bf16.gmra.mxu0 %vm1451_vm14, %v3970_v25 }
 0x385   : > { %v4640_v55 = vpop.permute.xlu2 %4639 }
 0x387   : > { %v3938_v61 = vpop.permute.xlu1 %3937 }
 0x389   : > { %v3888_v51 = vpop.permute.xlu0 %3887 }
 0x38a   : > { %v3958_v48 = vsel %vm1404_vm12, %v7867_v22, %v3888_v51 }
 0x38b   : > { %v3978_v19 = vsel %vm1425_vm13, %v3958_v48, %v3938_v61 }
 0x38c   : > { %5556 = vmatmul.msk.bf16.gmra.mxu3 %vm1451_vm14, %v3968_v37 }
 0x38f   : > { %v4584_v62 = vpop.permute.xlu1 %4583 }
 0x390   : > { %v4654_v6 = vsel %vm1404_vm12, %v7856_v43, %v4584_v62 }
 0x391   : > { %v3940_v21 = vpop.permute.xlu0 %3939  ;;  %v4674_v39 = vsel %vm1425_vm13, %v4654_v6, %v4634_v44 }
 0x392   : > { %v3980_v18 = vsel %vm1425_vm13, %v3960_v63, %v3940_v21 }
 0x393   : > { %5545 = vmatmul.msk.bf16.gmra.mxu2 %vm1451_vm14, %v3972_v60  ;;  %5568 = vmatmul.msk.bf16.gmra.mxu0 %vm1451_vm14, %v3972_v60 }
 0x397   : > { %v4638_v47 = vpop.permute.xlu1 %4637 }
 0x399   : > { %v4588_v59 = vpop.permute.xlu0 %4587 }
 0x39a   : > { %v4658_v27 = vsel %vm1404_vm12, %v7904_v50, %v4588_v59 }
 0x39b   : > { %v8053_v42 = vsel %vm1425_vm13, %v4658_v27, %v4638_v47 }
 0x39c   : > { %5557 = vmatmul.msk.bf16.gmra.mxu3 %vm1451_vm14, %v3970_v25 }
 0x39f   : > { %v4590_v33 = vpop.permute.xlu1 %4589 }
 0x3a0   : > { %v4660_v50 = vsel %vm1404_vm12, %v7893_v32, %v4590_v33 }
 0x3a1   : > { %v4636_v23 = vpop.permute.xlu0 %4635  ;;  %v8066_v36 = vsel %vm1425_vm13, %v4660_v50, %v4640_v55 }
 0x3a2   : > { %v4676_v53 = vsel %vm1425_vm13, %v4656_v13, %v4636_v23 }
 0x3a3   : > { %5546 = vmatmul.msk.bf16.gmra.mxu2 %vm1451_vm14, %v3974_v38  ;;  %5569 = vmatmul.msk.bf16.gmra.mxu0 %vm1451_vm14, %v3974_v38 }
 0x3a4   : > { %5614 = vmatmul.msk.bf16.vlgmr.msra.gmra.mxu1 %vm1451_vm14, %v4676_v53 }
 0x3a7   : > { %v4642_v22 = vpop.permute.xlu1 %4641 }
 0x3a9   : > { %v4592_v10 = vpop.permute.xlu0 %4591 }
 0x3aa   : > { %v4662_v32 = vsel %vm1404_vm12, %v7946_v56, %v4592_v10  ;;  %v4594_v56 = vpop.permute.xlu2 %4593 }
 0x3ab   : > { %v8079_v3 = vsel %vm1425_vm13, %v4662_v32, %v4642_v22  ;;  %v4664_v12 = vsel %vm1404_vm12, %v7889_v15, %v4594_v56 }
 0x3ac   : > { %5558 = vmatmul.msk.bf16.gmra.mxu3 %vm1451_vm14, %v3972_v60 }
 0x3af   : > { %v4596_v57 = vpop.permute.xlu1 %4595 }
 0x3b1   : > { %v4644_v8 = vpop.permute.xlu0 %4643 }
 0x3b2   : > { %v8093_v1 = vsel %vm1425_vm13, %v4664_v12, %v4644_v8  ;;  %v4646_v58 = vpop.permute.xlu2 %4645 }
 0x3b3   : > { %5547 = vmatmul.msk.bf16.gmra.mxu2 %vm1451_vm14, %v3976_v26  ;;  %5570 = vmatmul.msk.bf16.gmra.mxu0 %vm1451_vm14, %v3976_v26 }
 0x3b4   : > { %5615 = vmatmul.msk.bf16.gmra.mxu1 %vm1451_vm14, %v8053_v42 }
 0x3b7   : > { %v3942_v35 = vpop.permute.xlu1 %3941 }
 0x3b9   : > { %v3892_v31 = vpop.permute.xlu0 %3891 }
 0x3ba   : > { %v3962_v34 = vsel %vm1404_vm12, %v7973_v45, %v3892_v31  ;;  %v4666_v45 = vsel %vm1404_vm12, %v7934_v29, %v4596_v57  ;;  %v4598_v25 = vpop.permute.xlu2 %4597 }
 0x3bb   : > { %v3982_v40 = vsel %vm1425_vm13, %v3962_v34, %v3942_v35  ;;  %v8113_v7 = vsel %vm1425_vm13, %v4666_v45, %v4646_v58  ;;  %v4668_v21 = vsel %vm1404_vm12, %v7930_v52, %v4598_v25 }
 0x3bc   : > { %5559 = vmatmul.msk.bf16.gmra.mxu3 %vm1451_vm14, %v3974_v38 }
 0x3bf   : > { %v4600_v49 = vpop.permute.xlu1 %4599 }
 0x3c0   : > { %v4670_v38 = vsel %vm1404_vm12, %v7966_v0, %v4600_v49 }
 0x3c1   : > { %v4648_v20 = vpop.permute.xlu0 %4647 }
 0x3c2   : > { %v8133_v44 = vsel %vm1425_vm13, %v4668_v21, %v4648_v20  ;;  %v4650_v2 = vpop.permute.xlu2 %4649 }
 0x3c3   : > { %5548 = vmatmul.msk.bf16.gmra.mxu2 %vm1451_vm14, %v3978_v19  ;;  %5571 = vmatmul.msk.bf16.gmra.mxu0 %vm1451_vm14, %v3978_v19  ;;  %v8154_v47 = vsel %vm1425_vm13, %v4670_v38, %v4650_v2 }
 0x3c4   : > { %5616 = vmatmul.msk.bf16.gmra.mxu1 %vm1451_vm14, %v8066_v36 }
 0x3cc   : > { %5560 = vmatmul.msk.bf16.gmra.mxu3 %vm1451_vm14, %v3976_v26 }
 0x3d2   : > { %v4016_v17 = vpop.f32.mrf.mxu2 }
 0x3d3   : > { %5549 = vmatmul.msk.bf16.gmra.mxu2 %vm1451_vm14, %v3980_v18  ;;  %5572 = vmatmul.msk.bf16.gmra.mxu0 %vm1451_vm14, %v3980_v18 }
 0x3d4   : > { %5617 = vmatmul.msk.bf16.gmra.mxu1 %vm1451_vm14, %v8079_v3 }
 0x3da   : > { %v4018_v43 = vpop.f32.mrf.mxu2 }
 0x3dc   : > { %5561 = vmatmul.msk.bf16.gmra.mxu3 %vm1451_vm14, %v3978_v19 }
 0x3e3   : > { %5573 = vmatmul.msk.bf16.gmra.mxu0 %vm1451_vm14, %v3982_v40  ;;  %5622 = vmatmul.msk.bf16.vlgmr.msra.gmra.mxu2 %vm1451_vm14, %v4674_v39 }
 0x3e4   : > { %5618 = vmatmul.msk.bf16.gmra.mxu1 %vm1451_vm14, %v8093_v1 }
 0x3ec   : > { %5630 = vmatmul.msk.bf16.vlgmr.msra.gmra.mxu3 %vm1451_vm14, %v8053_v42 }
 0x3ef   : > { %v4075_v15 = vpop.f32.mrf.mxu3 }
 0x3f0   : > { %v4076_v28 = vadd.f32 %v4075_v15, %v4016_v17  ;;  %v4134_v24 = vpop.f32.mrf.mxu0 }
 0x3f2   : > { %v8110_v37 = vadd.f32 %v4134_v24, %v4076_v28 }
 0x3f3   : > { %5623 = vmatmul.msk.bf16.gmra.mxu2 %vm1451_vm14, %v4676_v53 }
 0x3f4   : > { %4336 = vst.msk [vmem:[%s8108_s20] sm:$0xff] %vm1404_vm12, %v8110_v37  ;;  %5619 = vmatmul.msk.bf16.gmra.mxu1 %vm1451_vm14, %v8113_v7  ;;  %v4190_v39 = vsel %vm1404_vm12, %v8110_v37, 0.0 }
 0x3f6   : > { %v4021_v29 = vpop.f32.mrf.mxu2 }
 0x3f7   : > { %v4077_v54 = vpop.f32.mrf.mxu3 }
 0x3f8   : > { %v4078_v9 = vadd.f32 %v4077_v54, %v4018_v43  ;;  %v4136_v4 = vpop.f32.mrf.mxu0 }
 0x3fa   : > { %v8121_v46 = vadd.f32 %v4136_v4, %v4078_v9 }
 0x3fc   : > { %4337 = vst.msk [vmem:[%s8108_s20 + $0x8] sm:$0xff] %vm1404_vm12, %v8121_v46  ;;  %5631 = vmatmul.msk.bf16.gmra.mxu3 %vm1451_vm14, %v8066_v36  ;;  %v4191_v34 = vsel %vm1404_vm12, %v8121_v46, 0.0 }
 0x3fd   : > { %v4192_v15 = vadd.f32 %v4191_v34, %v4190_v39 }
 0x3fe   : > { %v4023_v14 = vpop.f32.mrf.mxu2 }
 0x3ff   : > { %v4080_v51 = vpop.f32.mrf.mxu3 }
 0x400   : > { %v4081_v16 = vadd.f32 %v4080_v51, %v4021_v29  ;;  %v4139_v41 = vpop.f32.mrf.mxu0 }
 0x402   : > { %v8130_v60 = vadd.f32 %v4139_v41, %v4081_v16 }
 0x403   : > { %5624 = vmatmul.msk.bf16.gmra.mxu2 %vm1451_vm14, %v8053_v42 }
 0x404   : > { %4338 = vst.msk [vmem:[%s8108_s20 + $0x10] sm:$0xff] %vm1404_vm12, %v8130_v60  ;;  %5620 = vmatmul.msk.bf16.gmra.mxu1 %vm1451_vm14, %v8133_v44  ;;  %v4193_v40 = vsel %vm1404_vm12, %v8130_v60, 0.0 }
 0x405   : > { %v4194_v28 = vadd.f32 %v4193_v40, %v4192_v15 }
 0x406   : > { %v4026_v30 = vpop.f32.mrf.mxu2 }
 0x407   : > { %v4082_v59 = vpop.f32.mrf.mxu3 }
 0x408   : > { %v4083_v5 = vadd.f32 %v4082_v59, %v4023_v14  ;;  %v4141_v61 = vpop.f32.mrf.mxu0 }
 0x40a   : > { %v8142_v52 = vadd.f32 %v4141_v61, %v4083_v5 }
 0x40c   : > { %4339 = vst.msk [vmem:[%s8108_s20 + $0x18] sm:$0xff] %vm1404_vm12, %v8142_v52  ;;  %5632 = vmatmul.msk.bf16.gmra.mxu3 %vm1451_vm14, %v8079_v3 }
 0x40e   : > { %v4028_v13 = vpop.f32.mrf.mxu2 }
 0x40f   : > { %v4085_v23 = vpop.f32.mrf.mxu3 }
 0x410   : > { %v4086_v53 = vadd.f32 %v4085_v23, %v4026_v30  ;;  %v4144_v62 = vpop.f32.mrf.mxu0 }
 0x412   : > { %v8151_v27 = vadd.f32 %v4144_v62, %v4086_v53 }
 0x413   : > { %5625 = vmatmul.msk.bf16.gmra.mxu2 %vm1451_vm14, %v8066_v36 }
 0x414   : > { %4340 = vst.msk [vmem:[%s8108_s20 + $0x20] sm:$0xff] %vm1404_vm12, %v8151_v27  ;;  %5621 = vmatmul.msk.bf16.gmra.mxu1 %vm1451_vm14, %v8154_v47  ;;  %v4197_v24 = vsel %vm1404_vm12, %v8151_v27, 0.0 }
 0x416   : > { %v4031_v26 = vpop.f32.mrf.mxu2 }
 0x417   : > { %v4087_v0 = vpop.f32.mrf.mxu3 }
 0x418   : > { %v4088_v42 = vadd.f32 %v4087_v0, %v4028_v13  ;;  %v4146_v33 = vpop.f32.mrf.mxu0 }
 0x41a   : > { %v8163_v48 = vadd.f32 %v4146_v33, %v4088_v42 }
 0x41c   : > { %4341 = vst.msk [vmem:[%s8108_s20 + $0x28] sm:$0xff] %vm1404_vm12, %v8163_v48  ;;  %5633 = vmatmul.msk.bf16.gmra.mxu3 %vm1451_vm14, %v8093_v1  ;;  %v4199_v29 = vsel %vm1404_vm12, %v8163_v48, 0.0 }
 0x41e   : > { %v4033_v50 = vpop.f32.mrf.mxu2 }
 0x41f   : > { %v4090_v55 = vpop.f32.mrf.mxu3 }
 0x420   : > { %v4091_v19 = vadd.f32 %v4090_v55, %v4031_v26  ;;  %v4149_v36 = vpop.f32.mrf.mxu0 }
 0x422   : > { %v8170_v10 = vadd.f32 %v4149_v36, %v4091_v19  ;;  %v4718_v19 = vpop.f32.mrf.mxu1 }
 0x423   : > { %5626 = vmatmul.msk.bf16.gmra.mxu2 %vm1451_vm14, %v8079_v3 }
 0x424   : > { %4342 = vst.msk [vmem:[%s8108_s20 + $0x30] sm:$0xff] %vm1404_vm12, %v8170_v10  ;;  %v4201_v14 = vsel %vm1404_vm12, %v8170_v10, 0.0 }
 0x426   : > { %v4036_v22 = vpop.f32.mrf.mxu2 }
 0x427   : > { %v4092_v32 = vpop.f32.mrf.mxu3 }
 0x428   : > { %v4093_v63 = vadd.f32 %v4092_v32, %v4033_v50  ;;  %v4151_v18 = vpop.f32.mrf.mxu0  ;;  %v4602_v32 = vpop.permute.xlu0 %4601 }
 0x42a   : > { %v8177_v8 = vadd.f32 %v4151_v18, %v4093_v63 }
 0x42c   : > { %4343 = vst.msk [vmem:[%s8108_s20 + $0x38] sm:$0xff] %vm1404_vm12, %v8177_v8  ;;  %5634 = vmatmul.msk.bf16.gmra.mxu3 %vm1451_vm14, %v8113_v7  ;;  %v4203_v16 = vsel %vm1404_vm12, %v8177_v8, 0.0 }
 0x42e   : > { %v4038_v57 = vpop.f32.mrf.mxu2 }
 0x42f   : > { %v4095_v31 = vpop.f32.mrf.mxu3 }
 0x430   : > { %v4096_v56 = vadd.f32 %v4095_v31, %v4036_v22  ;;  %v4154_v6 = vpop.f32.mrf.mxu0 }
 0x432   : > { %v8184_v3 = vadd.f32 %v4154_v6, %v4096_v56  ;;  %v4652_v6 = vpop.permute.xlu1 %4651 }
 0x433   : > { %5627 = vmatmul.msk.bf16.gmra.mxu2 %vm1451_vm14, %v8093_v1  ;;  %v4195_v1 = vsel %vm1404_vm12, %v8142_v52, 0.0 }
 0x434   : > { %4344 = vst.msk [vmem:[%s8108_s20 + $0x40] sm:$0xff] %vm1404_vm12, %v8184_v3  ;;  %v4196_v58 = vadd.f32 %v4195_v1, %v4194_v28  ;;  %v4205_v30 = vsel %vm1404_vm12, %v8184_v3, 0.0 }
 0x436   : > { %v4041_v35 = vpop.f32.mrf.mxu2  ;;  %v4198_v9 = vadd.f32 %v4197_v24, %v4196_v58 }
 0x437   : > { %v4097_v12 = vpop.f32.mrf.mxu3 }
 0x438   : > { %v4098_v17 = vadd.f32 %v4097_v12, %v4038_v57  ;;  %v4156_v43 = vpop.f32.mrf.mxu0  ;;  %v4200_v20 = vadd.f32 %v4199_v29, %v4198_v9  ;;  %v4672_v57 = vsel %vm1404_vm12, %v7993_v11, %v4602_v32 }
 0x43a   : > { %v8199_v45 = vadd.f32 %v4156_v43, %v4098_v17  ;;  %v4202_v21 = vadd.f32 %v4201_v14, %v4200_v20 }
 0x43c   : > { %4345 = vst.msk [vmem:[%s8108_s20 + $0x48] sm:$0xff] %vm1404_vm12, %v8199_v45  ;;  %5635 = vmatmul.msk.bf16.gmra.mxu3 %vm1451_vm14, %v8133_v44  ;;  %v4204_v59 = vadd.f32 %v4203_v16, %v4202_v21  ;;  %v4207_v5 = vsel %vm1404_vm12, %v8199_v45, 0.0 }
 0x43e   : > { %v4043_v54 = vpop.f32.mrf.mxu2  ;;  %v4206_v49 = vadd.f32 %v4205_v30, %v4204_v59 }
 0x43f   : > { %v4100_v4 = vpop.f32.mrf.mxu3 }
 0x440   : > { %v4101_v25 = vadd.f32 %v4100_v4, %v4041_v35  ;;  %v4159_v51 = vpop.f32.mrf.mxu0  ;;  %v4720_v35 = vpop.f32.mrf.mxu1 }
 0x442   : > { %v8214_v41 = vadd.f32 %v4159_v51, %v4101_v25 }
 0x443   : > { %5628 = vmatmul.msk.bf16.gmra.mxu2 %vm1451_vm14, %v8113_v7  ;;  %v4208_v7 = vadd.f32 %v4207_v5, %v4206_v49 }
 0x444   : > { %4346 = vst.msk [vmem:[%s8108_s20 + $0x50] sm:$0xff] %vm1404_vm12, %v8214_v41  ;;  %v4209_v23 = vsel %vm1404_vm12, %v8214_v41, 0.0 }
 0x445   : > { %v4210_v2 = vadd.f32 %v4209_v23, %v4208_v7 }
 0x446   : > { %v4046_v61 = vpop.f32.mrf.mxu2 }
 0x447   : > { %v4102_v13 = vpop.f32.mrf.mxu3 }
 0x448   : > { %v4103_v38 = vadd.f32 %v4102_v13, %v4043_v54  ;;  %v4161_v53 = vpop.f32.mrf.mxu0  ;;  %v4723_v24 = vpop.f32.mrf.mxu1 }
 0x44a   : > { %v8227_v62 = vadd.f32 %v4161_v53, %v4103_v38 }
 0x44c   : > { %v4211_v26 = vsel %vm1404_vm12, %v8227_v62, 0.0  ;;  %4347 = vst.msk [vmem:[%s8108_s20 + $0x58] sm:$0xff] %vm1404_vm12, %v8227_v62  ;;  %5636 = vmatmul.msk.bf16.gmra.mxu3 %vm1451_vm14, %v8154_v47 }
 0x44d   : > { %v4212_v0 = vadd.f32 %v4211_v26, %v4210_v2  ;;  %v8758_v26 = vld [vmem:[#allocation5_spill] sm:$0xff] }
 0x44e   : > { %v4048_v42 = vpop.f32.mrf.mxu2 }
 0x44f   : > { %v4105_v33 = vpop.f32.mrf.mxu3 }
 0x450   : > { %v4106_v50 = vadd.f32 %v4105_v33, %v4046_v61  ;;  %v4164_v55 = vpop.f32.mrf.mxu0  ;;  %v8262_v20 = vpop.f32.mrf.mxu1 }
 0x452   : > { %v8236_v36 = vadd.f32 %v4164_v55, %v4106_v50 }
 0x453   : > { %5629 = vmatmul.msk.bf16.gmra.mxu2 %vm1451_vm14, %v8133_v44  ;;  %v4692_v44 = vsel %vm1425_vm13, %v4672_v57, %v4652_v6 }
 0x454   : > { %v4213_v22 = vsel %vm1404_vm12, %v8236_v36, 0.0  ;;  %4348 = vst.msk [vmem:[%s8108_s20 + $0x60] sm:$0xff] %vm1404_vm12, %v8236_v36 }
 0x455   : > { %v4214_v47 = vadd.f32 %v4213_v22, %v4212_v0 }
 0x456   : > { %v4051_v63 = vpop.f32.mrf.mxu2 }
 0x457   : > { %v4107_v18 = vpop.f32.mrf.mxu3 }
 0x458   : > { %v4108_v31 = vadd.f32 %v4107_v18, %v4048_v42  ;;  %v4166_v56 = vpop.f32.mrf.mxu0  ;;  %v8269_v7 = vpop.f32.mrf.mxu1 }
 0x45a   : > { %v8247_v34 = vadd.f32 %v4166_v56, %v4108_v31 }
 0x45c   : > { %v4215_v12 = vsel %vm1404_vm12, %v8247_v34, 0.0  ;;  %4349 = vst.msk [vmem:[%s8108_s20 + $0x68] sm:$0xff] %vm1404_vm12, %v8247_v34  ;;  %5637 = vmatmul.msk.bf16.gmra.mxu3 %vm1451_vm14, %v4692_v44 }
 0x45d   : > { %v4216_v39 = vadd.f32 %v4215_v12, %v4214_v47 }
 0x45e   : > { %v4053_v11 = vpop.f32.mrf.mxu2 }
 0x45f   : > { %v4110_v40 = vpop.f32.mrf.mxu3 }
 0x460   : > { %v4111_v17 = vadd.f32 %v4110_v40, %v4051_v63  ;;  %v4169_v43 = vpop.f32.mrf.mxu0  ;;  %v8300_v56 = vpop.f32.mrf.mxu1 }
 0x462   : > { %v4188_v15 = vadd.f32 %v4169_v43, %v4111_v17 }
 0x464   : > { %v4217_v1 = vsel %vm1404_vm12, %v4188_v15, 0.0  ;;  %4350 = vst.msk [vmem:[%s8108_s20 + $0x70] sm:$0xff] %vm1404_vm12, %v4188_v15 }
 0x465   : > { %v4218_v28 = vadd.f32 %v4217_v1, %v4216_v39 }
 0x466   : > { %v4769_v58 = vpop.f32.mrf.mxu2 }
 0x467   : > { %v4112_v29 = vpop.f32.mrf.mxu3  ;;  %v4770_v16 = vadd.f32 %v4769_v58, %v4718_v19 }
 0x468   : > { %v4113_v54 = vadd.f32 %v4112_v29, %v4053_v11  ;;  %v4171_v9 = vpop.f32.mrf.mxu0 }
 0x46a   : > { %v4189_v4 = vadd.f32 %v4171_v9, %v4113_v54 }
 0x46c   : > { %v4219_v14 = vsel %vm1404_vm12, %v4189_v4, 0.0  ;;  %4351 = vst.msk [vmem:[%s8108_s20 + $0x78] sm:$0xff] %vm1404_vm12, %v4189_v4 }
 0x46d   : > { %v4220_v25 = vadd.f32 %v4219_v14, %v4218_v28 }
 0x46e   : > { %v4771_v30 = vpop.f32.mrf.mxu2 }
 0x46f   : > { %v4221_v51 = vrot.slane %v4220_v25, 4  ;;  %v4820_v59 = vpop.f32.mrf.mxu3  ;;  %v4772_v38 = vadd.f32 %v4771_v30, %v4720_v35 }
 0x470   : > { %v8264_v61 = vadd.f32 %v4820_v59, %v4770_v16 }
 0x471   : > { %v4222_v21 = vadd.f32 %v4221_v51, %v4220_v25 }
 0x472   : > { %5638 = vst.msk [vmem:[%s8108_s20 + $0x80] sm:$0xff] %vm1404_vm12, %v8264_v61 }
 0x473   : > { %v4223_v5 = vrot.slane %v4222_v21, 2 }
 0x475   : > { %v4224_v49 = vadd.f32 %v4223_v5, %v4222_v21 }
 0x476   : > { %v4774_v53 = vpop.f32.mrf.mxu2 }
 0x477   : > { %v4225_v13 = vrot.slane %v4224_v49, 1  ;;  %v4822_v2 = vpop.f32.mrf.mxu3 }
 0x478   : > { %v8274_v42 = vadd.f32 %v4822_v2, %v4772_v38 }
 0x479   : > { %v4226_v23 = vadd.f32 %v4225_v13, %v4224_v49 }
 0x47a   : > { %5639 = vst.msk [vmem:[%s8108_s20 + $0x88] sm:$0xff] %vm1404_vm12, %v8274_v42 }
 0x47b   : > { %v8272_v0 = vmul.f32 %v4226_v23, %v8758_v26  ;;  %v8344_v26 = vpop.f32.mrf.mxu1 }
 0x47d   : > { %v4228_v33 = vsub.f32 %v8110_v37, %v8272_v0  ;;  %v4229_v50 = vsub.f32 %v8121_v46, %v8272_v0  ;;  %v4230_v55 = vsub.f32 %v8130_v60, %v8272_v0  ;;  %v4231_v19 = vsub.f32 %v8142_v52, %v8272_v0 }
 0x47e   : > { %v8289_v47 = vpop.f32.mrf.mxu2  ;;  %v4232_v37 = vsub.f32 %v8151_v27, %v8272_v0  ;;  %v4775_v46 = vadd.f32 %v4774_v53, %v4723_v24  ;;  %v4233_v57 = vsub.f32 %v8163_v48, %v8272_v0  ;;  %v4234_v60 = vsub.f32 %v8170_v10, %v8272_v0 }
 0x47f   : > { %v4244_v22 = vsel %vm1404_vm12, %v4228_v33, 0.0  ;;  %v4245_v32 = vsel %vm1404_vm12, %v4229_v50, 0.0  ;;  %v4825_v18 = vpop.f32.mrf.mxu3  ;;  %v4235_v52 = vsub.f32 %v8177_v8, %v8272_v0  ;;  %v4247_v31 = vsel %vm1404_vm12, %v4230_v55, 0.0 }
 0x480   : > { %v4246_v63 = vadd.f32 %v4245_v32, %v4244_v22  ;;  %v4236_v6 = vsub.f32 %v8184_v3, %v8272_v0  ;;  %v4237_v27 = vsub.f32 %v8199_v45, %v8272_v0  ;;  %v4238_v44 = vsub.f32 %v8214_v41, %v8272_v0 }
 0x481   : > { %v4239_v10 = vsub.f32 %v8227_v62, %v8272_v0  ;;  %v8312_v8 = vsub.f32 %v8236_v36, %v8272_v0  ;;  %v8316_v35 = vsub.f32 %v8247_v34, %v8272_v0  ;;  %v4249_v3 = vsel %vm1404_vm12, %v4231_v19, 0.0 }
 0x482   : > { %v4248_v48 = vadd.f32 %v4247_v31, %v4246_v63  ;;  %v8320_v12 = vsub.f32 %v4188_v15, %v8272_v0  ;;  %v4282_v39 = vmul.f32 %v4228_v33, %v4228_v33  ;;  %v4283_v41 = vmul.f32 %v4229_v50, %v4229_v50 }
 0x483   : > { %v8323_v11 = vsub.f32 %v4189_v4, %v8272_v0  ;;  %v4251_v62 = vsel %vm1404_vm12, %v4232_v37, 0.0  ;;  %v4253_v36 = vsel %vm1404_vm12, %v4233_v57, 0.0  ;;  %v4255_v40 = vsel %vm1404_vm12, %v4234_v60, 0.0 }
 0x484   : > { %v4250_v45 = vadd.f32 %v4249_v3, %v4248_v48  ;;  %v4257_v34 = vsel %vm1404_vm12, %v4235_v52, 0.0  ;;  %v4259_v43 = vsel %vm1404_vm12, %v4236_v6, 0.0  ;;  %v4284_v1 = vmul.f32 %v4230_v55, %v4230_v55 }
 0x485   : > { %v4261_v15 = vsel %vm1404_vm12, %v4237_v27, 0.0  ;;  %v4263_v28 = vsel %vm1404_vm12, %v4238_v44, 0.0  ;;  %v4265_v24 = vsel %vm1404_vm12, %v4239_v10, 0.0  ;;  %v4285_v58 = vmul.f32 %v4231_v19, %v4231_v19 }
 0x486   : > { %v4252_v17 = vadd.f32 %v4251_v62, %v4250_v45  ;;  %v4779_v29 = vpop.f32.mrf.mxu2  ;;  %v4286_v9 = vmul.f32 %v4232_v37, %v4232_v37  ;;  %v4298_v4 = vsel %vm1404_vm12, %v4282_v39, 0.0  ;;  %v4299_v14 = vsel %vm1404_vm12, %v4283_v41, 0.0 }
 0x487   : > { %v4827_v25 = vpop.f32.mrf.mxu3  ;;  %v4267_v51 = vsel %vm1404_vm12, %v8312_v8, 0.0  ;;  %v8339_v16 = vsel %vm1404_vm12, %v8316_v35, 0.0  ;;  %v4287_v21 = vmul.f32 %v4233_v57, %v4233_v57  ;;  %v4300_v30 = vadd.f32 %v4299_v14, %v4298_v4  ;;  %v4735_v14 = vpop.f32.mrf.mxu1 }
 0x488   : > { %v4254_v54 = vadd.f32 %v4253_v36, %v4252_v17  ;;  %v4288_v5 = vmul.f32 %v4234_v60, %v4234_v60  ;;  %v4289_v49 = vmul.f32 %v4235_v52, %v4235_v52  ;;  %v4301_v13 = vsel %vm1404_vm12, %v4284_v1, 0.0 }
 0x489   : > { %v4290_v23 = vmul.f32 %v4236_v6, %v4236_v6  ;;  %v4291_v38 = vmul.f32 %v4237_v27, %v4237_v27  ;;  %v8342_v53 = vmul.f32 %v4238_v44, %v4238_v44  ;;  %v4302_v2 = vadd.f32 %v4301_v13, %v4300_v30 }
 0x48a   : > { %v4256_v59 = vadd.f32 %v4255_v40, %v4254_v54  ;;  %v8346_v50 = vmul.f32 %v4239_v10, %v4239_v10  ;;  %v4303_v55 = vsel %vm1404_vm12, %v4285_v58, 0.0  ;;  %v4305_v19 = vsel %vm1404_vm12, %v4286_v9, 0.0 }
 0x48b   : > { %v4304_v22 = vadd.f32 %v4303_v55, %v4302_v2  ;;  %v4307_v32 = vsel %vm1404_vm12, %v4287_v21, 0.0  ;;  %v4876_v37 = vsub.f32 %v8264_v61, %v8272_v0  ;;  %v4877_v63 = vsub.f32 %v8274_v42, %v8272_v0 }
 0x48c   : > { %v4258_v33 = vadd.f32 %v4257_v34, %v4256_v59  ;;  %v4309_v60 = vsel %vm1404_vm12, %v4288_v5, 0.0  ;;  %v4777_v52 = vadd.f32 %v8289_v47, %v8262_v20  ;;  %v4862_v31 = vadd.f32 %v4825_v18, %v4775_v46 }
 0x48d   : > { %v4306_v6 = vadd.f32 %v4305_v19, %v4304_v22  ;;  %v4892_v27 = vsel %vm1404_vm12, %v4876_v37, 0.0  ;;  %v4930_v44 = vmul.f32 %v4876_v37, %v4876_v37  ;;  %v4893_v48 = vsel %vm1404_vm12, %v4877_v63, 0.0 }
 0x48e   : > { %v4260_v57 = vadd.f32 %v4259_v43, %v4258_v33  ;;  %v4781_v10 = vpop.f32.mrf.mxu2  ;;  %v4894_v45 = vadd.f32 %v4893_v48, %v4892_v27  ;;  %v4931_v61 = vmul.f32 %v4877_v63, %v4877_v63  ;;  %v4878_v42 = vsub.f32 %v4862_v31, %v8272_v0  ;;  %5640 = vst.msk [vmem:[%s8108_s20 + $0x90] sm:$0xff] %vm1404_vm12, %v4862_v31 }
 0x48f   : > { %v4830_v39 = vpop.f32.mrf.mxu3  ;;  %v4308_v41 = vadd.f32 %v4307_v32, %v4306_v6  ;;  %v4946_v20 = vsel %vm1404_vm12, %v4930_v44, 0.0  ;;  %v4780_v47 = vadd.f32 %v4779_v29, %v8269_v7  ;;  %v4863_v46 = vadd.f32 %v4827_v25, %v4777_v52 }
 0x490   : > { %v4262_v3 = vadd.f32 %v4261_v15, %v4260_v57  ;;  %v4947_v62 = vsel %vm1404_vm12, %v4931_v61, 0.0  ;;  %v4895_v36 = vsel %vm1404_vm12, %v4878_v42, 0.0  ;;  %v4932_v40 = vmul.f32 %v4878_v42, %v4878_v42 }
 0x491   : > { %v4310_v17 = vadd.f32 %v4309_v60, %v4308_v41  ;;  %v4948_v34 = vadd.f32 %v4947_v62, %v4946_v20  ;;  %v4896_v43 = vadd.f32 %v4895_v36, %v4894_v45  ;;  %v4879_v1 = vsub.f32 %v4863_v46, %v8272_v0  ;;  %5641 = vst.msk [vmem:[%s8108_s20 + $0x98] sm:$0xff] %vm1404_vm12, %v4863_v46  ;;  %v4738_v20 = vpop.f32.mrf.mxu1 }
 0x492   : > { %v4264_v18 = vadd.f32 %v4263_v28, %v4262_v3  ;;  %v4311_v58 = vsel %vm1404_vm12, %v4289_v49, 0.0  ;;  %v4949_v7 = vsel %vm1404_vm12, %v4932_v40, 0.0  ;;  %v4864_v29 = vadd.f32 %v4830_v39, %v4780_v47 }
 0x493   : > { %v4312_v28 = vadd.f32 %v4311_v58, %v4310_v17  ;;  %v4950_v54 = vadd.f32 %v4949_v7, %v4948_v34  ;;  %v4897_v9 = vsel %vm1404_vm12, %v4879_v1, 0.0  ;;  %v4933_v4 = vmul.f32 %v4879_v1, %v4879_v1 }
 0x494   : > { %v4266_v15 = vadd.f32 %v4265_v24, %v4264_v18  ;;  %v4313_v21 = vsel %vm1404_vm12, %v4290_v23, 0.0  ;;  %v4898_v30 = vadd.f32 %v4897_v9, %v4896_v43  ;;  %v4880_v59 = vsub.f32 %v4864_v29, %v8272_v0  ;;  %5642 = vst.msk [vmem:[%s8108_s20 + $0xa0] sm:$0xff] %vm1404_vm12, %v4864_v29 }
 0x495   : > { %v4314_v24 = vadd.f32 %v4313_v21, %v4312_v28  ;;  %v4315_v5 = vsel %vm1404_vm12, %v4291_v38, 0.0  ;;  %v4951_v49 = vsel %vm1404_vm12, %v4933_v4, 0.0  ;;  %v4782_v13 = vadd.f32 %v4781_v10, %v8300_v56 }
 0x496   : > { %v4268_v25 = vadd.f32 %v4267_v51, %v4266_v15  ;;  %v4784_v2 = vpop.f32.mrf.mxu2  ;;  %v4952_v55 = vadd.f32 %v4951_v49, %v4950_v54  ;;  %v4899_v51 = vsel %vm1404_vm12, %v4880_v59, 0.0  ;;  %v4934_v23 = vmul.f32 %v4880_v59, %v4880_v59 }
 0x497   : > { %v4832_v19 = vpop.f32.mrf.mxu3  ;;  %v4271_v22 = vsel %vm1404_vm12, %v8320_v12, 0.0  ;;  %v4316_v32 = vadd.f32 %v4315_v5, %v4314_v24  ;;  %v4900_v37 = vadd.f32 %v4899_v51, %v4898_v30  ;;  %v4294_v57 = vmul.f32 %v8312_v8, %v8312_v8 }
 0x498   : > { %v4270_v33 = vadd.f32 %v8339_v16, %v4268_v25  ;;  %v4865_v63 = vadd.f32 %v4832_v19, %v4782_v13  ;;  %v4317_v56 = vsel %vm1404_vm12, %v8342_v53, 0.0  ;;  %v4953_v16 = vsel %vm1404_vm12, %v4934_v23, 0.0 }
 0x499   : > { %v4273_v60 = vsel %vm1404_vm12, %v8323_v11, 0.0  ;;  %v4318_v52 = vadd.f32 %v4317_v56, %v4316_v32  ;;  %v4954_v31 = vadd.f32 %v4953_v16, %v4952_v55  ;;  %v4295_v44 = vmul.f32 %v8316_v35, %v8316_v35  ;;  %v4740_v15 = vpop.f32.mrf.mxu1 }
 0x49a   : > { %v4272_v38 = vadd.f32 %v4271_v22, %v4270_v33  ;;  %v4881_v6 = vsub.f32 %v4865_v63, %v8272_v0  ;;  %5643 = vst.msk [vmem:[%s8108_s20 + $0xa8] sm:$0xff] %vm1404_vm12, %v4865_v63  ;;  %v4319_v8 = vsel %vm1404_vm12, %v8346_v50, 0.0  ;;  %v4296_v3 = vmul.f32 %v8320_v12, %v8320_v12 }
 0x49b   : > { %v4320_v53 = vadd.f32 %v4319_v8, %v4318_v52  ;;  %v4321_v45 = vsel %vm1404_vm12, %v4294_v57, 0.0  ;;  %v4785_v39 = vadd.f32 %v4784_v2, %v8344_v26  ;;  %v4297_v50 = vmul.f32 %v8323_v11, %v8323_v11 }
 0x49c   : > { %v8394_v27 = vadd.f32 %v4273_v60, %v4272_v38  ;;  %v4901_v48 = vsel %vm1404_vm12, %v4881_v6, 0.0  ;;  %v4935_v10 = vmul.f32 %v4881_v6, %v4881_v6  ;;  %v4323_v47 = vsel %vm1404_vm12, %v4295_v44, 0.0 }
 0x49d   : > { %v8404_v61 = vadd.f32 %v4901_v48, %v4900_v37  ;;  %v4322_v42 = vadd.f32 %v4321_v45, %v4320_v53  ;;  %v4325_v36 = vsel %vm1404_vm12, %v4296_v3, 0.0  ;;  %v4327_v26 = vsel %vm1404_vm12, %v4297_v50, 0.0 }
 0x49e   : > { %v4955_v35 = vsel %vm1404_vm12, %v4935_v10, 0.0  ;;  %v4786_v41 = vpop.f32.mrf.mxu2 }
 0x49f   : > { %v8411_v46 = vadd.f32 %v4955_v35, %v4954_v31  ;;  %v4835_v12 = vpop.f32.mrf.mxu3  ;;  %v4324_v18 = vadd.f32 %v4323_v47, %v4322_v42  ;;  %v4787_v34 = vadd.f32 %v4786_v41, %v4735_v14 }
 0x4a0   : > { %v4866_v62 = vadd.f32 %v4835_v12, %v4785_v39 }
 0x4a1   : > { %v4326_v40 = vadd.f32 %v4325_v36, %v4324_v18  ;;  %v4743_v54 = vpop.f32.mrf.mxu1 }
 0x4a2   : > { %5644 = vst.msk [vmem:[%s8108_s20 + $0xb0] sm:$0xff] %vm1404_vm12, %v4866_v62  ;;  %v4882_v37 = vsub.f32 %v4866_v62, %v8272_v0 }
 0x4a3   : > { %v8417_v17 = vadd.f32 %v4327_v26, %v4326_v40 }
 0x4a4   : > { %v4936_v57 = vmul.f32 %v4882_v37, %v4882_v37  ;;  %v4903_v52 = vsel %vm1404_vm12, %v4882_v37, 0.0 }
 0x4a5   : > { %v4904_v45 = vadd.f32 %v4903_v52, %v8404_v61 }
 0x4a6   : > { %v4789_v11 = vpop.f32.mrf.mxu2  ;;  %v4957_v53 = vsel %vm1404_vm12, %v4936_v57, 0.0 }
 0x4a7   : > { %v4837_v43 = vpop.f32.mrf.mxu3  ;;  %v4790_v58 = vadd.f32 %v4789_v11, %v4738_v20  ;;  %v4958_v20 = vadd.f32 %v4957_v53, %v8411_v46 }
 0x4a8   : > { %v4867_v1 = vadd.f32 %v4837_v43, %v4787_v34 }
 0x4a9   : > { %v4745_v21 = vpop.f32.mrf.mxu1 }
 0x4aa   : > { %5645 = vst.msk [vmem:[%s8108_s20 + $0xb8] sm:$0xff] %vm1404_vm12, %v4867_v1  ;;  %v4883_v63 = vsub.f32 %v4867_v1, %v8272_v0 }
 0x4ac   : > { %v4937_v31 = vmul.f32 %v4883_v63, %v4883_v63  ;;  %v4905_v48 = vsel %vm1404_vm12, %v4883_v63, 0.0 }
 0x4ad   : > { %v4906_v50 = vadd.f32 %v4905_v48, %v4904_v45 }
 0x4ae   : > { %v4791_v7 = vpop.f32.mrf.mxu2  ;;  %v4959_v39 = vsel %vm1404_vm12, %v4937_v31, 0.0 }
 0x4af   : > { %v4840_v29 = vpop.f32.mrf.mxu3  ;;  %v4792_v9 = vadd.f32 %v4791_v7, %v4740_v15  ;;  %v4960_v61 = vadd.f32 %v4959_v39, %v4958_v20 }
 0x4b0   : > { %v4868_v28 = vadd.f32 %v4840_v29, %v4790_v58 }
 0x4b1   : > { %v4748_v2 = vpop.f32.mrf.mxu1 }
 0x4b2   : > { %5646 = vst.msk [vmem:[%s8108_s20 + $0xc0] sm:$0xff] %vm1404_vm12, %v4868_v28  ;;  %v4884_v38 = vsub.f32 %v4868_v28, %v8272_v0 }
 0x4b4   : > { %v4938_v44 = vmul.f32 %v4884_v38, %v4884_v38  ;;  %v4907_v35 = vsel %vm1404_vm12, %v4884_v38, 0.0 }
 0x4b5   : > { %v4908_v40 = vadd.f32 %v4907_v35, %v4906_v50 }
 0x4b6   : > { %v4794_v4 = vpop.f32.mrf.mxu2  ;;  %v4961_v47 = vsel %vm1404_vm12, %v4938_v44, 0.0 }
 0x4b7   : > { %v4842_v25 = vpop.f32.mrf.mxu3  ;;  %v4795_v30 = vadd.f32 %v4794_v4, %v4743_v54  ;;  %v4962_v15 = vadd.f32 %v4961_v47, %v4960_v61 }
 0x4b8   : > { %v4869_v14 = vadd.f32 %v4842_v25, %v4792_v9 }
 0x4b9   : > { %v4750_v32 = vpop.f32.mrf.mxu1 }
 0x4ba   : > { %5647 = vst.msk [vmem:[%s8108_s20 + $0xc8] sm:$0xff] %vm1404_vm12, %v4869_v14  ;;  %v4885_v16 = vsub.f32 %v4869_v14, %v8272_v0 }
 0x4bc   : > { %v4939_v42 = vmul.f32 %v4885_v16, %v4885_v16  ;;  %v4909_v12 = vsel %vm1404_vm12, %v4885_v16, 0.0 }
 0x4bd   : > { %v4910_v58 = vadd.f32 %v4909_v12, %v4908_v40 }
 0x4be   : > { %v4796_v59 = vpop.f32.mrf.mxu2  ;;  %v4963_v26 = vsel %vm1404_vm12, %v4939_v42, 0.0 }
 0x4bf   : > { %v4845_v24 = vpop.f32.mrf.mxu3  ;;  %v4797_v49 = vadd.f32 %v4796_v59, %v4745_v21  ;;  %v4964_v9 = vadd.f32 %v4963_v26, %v4962_v15  ;;  %v4275_v59 = vrot.slane %v8394_v27, 4 }
 0x4c0   : > { %v4870_v5 = vadd.f32 %v4845_v24, %v4795_v30 }
 0x4c1   : > { %v4753_v3 = vpop.f32.mrf.mxu1  ;;  %v4276_v38 = vadd.f32 %v4275_v59, %v8394_v27 }
 0x4c2   : > { %5648 = vst.msk [vmem:[%s8108_s20 + $0xd0] sm:$0xff] %vm1404_vm12, %v4870_v5  ;;  %v4886_v10 = vsub.f32 %v4870_v5, %v8272_v0 }
 0x4c3   : > { %v4277_v53 = vrot.slane %v4276_v38, 2 }
 0x4c4   : > { %v4940_v18 = vmul.f32 %v4886_v10, %v4886_v10  ;;  %v4911_v11 = vsel %vm1404_vm12, %v4886_v10, 0.0 }
 0x4c5   : > { %v4912_v4 = vadd.f32 %v4911_v11, %v4910_v58  ;;  %v4278_v39 = vadd.f32 %v4277_v53, %v4276_v38  ;;  %v5031_v38 = vld [vmem:[%s8108_s20 + $0x40] sm:$0xff] }
 0x4c6   : > { %v4799_v13 = vpop.f32.mrf.mxu2  ;;  %v4965_v7 = vsel %vm1404_vm12, %v4940_v18, 0.0 }
 0x4c7   : > { %v4847_v33 = vpop.f32.mrf.mxu3  ;;  %v4800_v51 = vadd.f32 %v4799_v13, %v4748_v2  ;;  %v4966_v5 = vadd.f32 %v4965_v7, %v4964_v9 }
 0x4c8   : > { %v4871_v55 = vadd.f32 %v4847_v33, %v4797_v49 }
 0x4c9   : > { %v4755_v24 = vpop.f32.mrf.mxu1 }
 0x4ca   : > { %5649 = vst.msk [vmem:[%s8108_s20 + $0xd8] sm:$0xff] %vm1404_vm12, %v4871_v55  ;;  %v4887_v41 = vsub.f32 %v4871_v55, %v8272_v0 }
 0x4cc   : > { %v4941_v43 = vmul.f32 %v4887_v41, %v4887_v41  ;;  %v4913_v29 = vsel %vm1404_vm12, %v4887_v41, 0.0 }
 0x4cd   : > { %v4914_v49 = vadd.f32 %v4913_v29, %v4912_v4 }
 0x4ce   : > { %v4801_v23 = vpop.f32.mrf.mxu2  ;;  %v4967_v14 = vsel %vm1404_vm12, %v4941_v43, 0.0 }
 0x4cf   : > { %v4850_v19 = vpop.f32.mrf.mxu3  ;;  %v4802_v56 = vadd.f32 %v4801_v23, %v4750_v32  ;;  %v4968_v23 = vadd.f32 %v4967_v14, %v4966_v5 }
 0x4d0   : > { %v4872_v22 = vadd.f32 %v4850_v19, %v4800_v51  ;;  %v4329_v51 = vrot.slane %v8417_v17, 4 }
 0x4d2   : > { %5650 = vst.msk [vmem:[%s8108_s20 + $0xe0] sm:$0xff] %vm1404_vm12, %v4872_v22  ;;  %v4888_v62 = vsub.f32 %v4872_v22, %v8272_v0  ;;  %v4330_v52 = vadd.f32 %v4329_v51, %v8417_v17  ;;  %v4279_v17 = vrot.slane %v4278_v39, 1  ;;  %v5024_v51 = vld [vmem:[%s8108_s20 + $0x8] sm:$0xff] }
 0x4d4   : > { %v4942_v28 = vmul.f32 %v4888_v62, %v4888_v62  ;;  %v4915_v21 = vsel %vm1404_vm12, %v4888_v62, 0.0  ;;  %v4280_v40 = vadd.f32 %v4279_v17, %v4278_v39 }
 0x4d5   : > { %v4916_v19 = vadd.f32 %v4915_v21, %v4914_v49 }
 0x4d6   : > { %v4804_v8 = vpop.f32.mrf.mxu2  ;;  %v4969_v13 = vsel %vm1404_vm12, %v4942_v28, 0.0 }
 0x4d7   : > { %v4852_v60 = vpop.f32.mrf.mxu3  ;;  %v4805_v36 = vadd.f32 %v4804_v8, %v4753_v3  ;;  %v4970_v57 = vadd.f32 %v4969_v13, %v4968_v23  ;;  %v4331_v3 = vrot.slane %v4330_v52, 2  ;;  %v5002_v13 = vld [vmem:[%s8703_s6] sm:$0x1]  ;;  %v5025_v23 = vld [vmem:[%s8108_s20 + $0x10] sm:$0xff] }
 0x4d8   : > { %v4873_v6 = vadd.f32 %v4852_v60, %v4802_v56 }
 0x4d9   : > { %v4332_v20 = vadd.f32 %v4331_v3, %v4330_v52  ;;  %v5033_v52 = vld [vmem:[%s8108_s20 + $0x50] sm:$0xff] }
 0x4da   : > { %5651 = vst.msk [vmem:[%s8108_s20 + $0xe8] sm:$0xff] %vm1404_vm12, %v4873_v6  ;;  %v4889_v46 = vsub.f32 %v4873_v6, %v8272_v0 }
 0x4db   : > { %v4333_v62 = vrot.slane %v4332_v20, 1 }
 0x4dc   : > { %v4943_v30 = vmul.f32 %v4889_v46, %v4889_v46  ;;  %v4917_v2 = vsel %vm1404_vm12, %v4889_v46, 0.0 }
 0x4dd   : > { %v4918_v56 = vadd.f32 %v4917_v2, %v4916_v19  ;;  %v4334_v11 = vadd.f32 %v4333_v62, %v4332_v20  ;;  %v5026_v19 = vld [vmem:[%s8108_s20 + $0x18] sm:$0xff]  ;;  %v5655_v20 = vld [vmem:[%s8108_s20 + $0x88] sm:$0xff] }
 0x4de   : > { %v4806_v25 = vpop.f32.mrf.mxu2  ;;  %v4971_v32 = vsel %vm1404_vm12, %v4943_v30, 0.0  ;;  %v5001_v30 = vld [vmem:[%s8702_s5] sm:$0x1] }
 0x4df   : > { %v4855_v34 = vpop.f32.mrf.mxu3  ;;  %v4807_v33 = vadd.f32 %v4806_v25, %v4755_v24  ;;  %v4972_v31 = vadd.f32 %v4971_v32, %v4970_v57  ;;  %v5028_v32 = vld [vmem:[%s8108_s20 + $0x28] sm:$0xff] }
 0x4e0   : > { %v4874_v1 = vadd.f32 %v4855_v34, %v4805_v36 }
 0x4e2   : > { %v4890_v54 = vsub.f32 %v4874_v1, %v8272_v0  ;;  %5652 = vst.msk [vmem:[%s8108_s20 + $0xf0] sm:$0xff] %vm1404_vm12, %v4874_v1 }
 0x4e4   : > { %v4944_v55 = vmul.f32 %v4890_v54, %v4890_v54  ;;  %v4919_v37 = vsel %vm1404_vm12, %v4890_v54, 0.0 }
 0x4e5   : > { %v4920_v6 = vadd.f32 %v4919_v37, %v4918_v56  ;;  %v5029_v37 = vld [vmem:[%s8108_s20 + $0x30] sm:$0xff] }
 0x4e6   : > { %v4973_v16 = vsel %vm1404_vm12, %v4944_v55, 0.0  ;;  %v5023_v55 = vld [vmem:[%s8108_s20] sm:$0xff] }
 0x4e7   : > { %v4857_v22 = vpop.f32.mrf.mxu3  ;;  %v4974_v48 = vadd.f32 %v4973_v16, %v4972_v31  ;;  %v5034_v31 = vld [vmem:[%s8108_s20 + $0x58] sm:$0xff] }
 0x4e8   : > { %v4875_v63 = vadd.f32 %v4857_v22, %v4807_v33  ;;  %v5027_v22 = vld [vmem:[%s8108_s20 + $0x20] sm:$0xff] }
 0x4ea   : > { %v4891_v60 = vsub.f32 %v4875_v63, %v8272_v0  ;;  %5653 = vst.msk [vmem:[%s8108_s20 + $0xf8] sm:$0xff] %vm1404_vm12, %v4875_v63  ;;  %v5030_v63 = vld [vmem:[%s8108_s20 + $0x38] sm:$0xff] }
 0x4ec   : > { %v4921_v44 = vsel %vm1404_vm12, %v4891_v60, 0.0  ;;  %v4945_v8 = vmul.f32 %v4891_v60, %v4891_v60  ;;  %v5032_v60 = vld [vmem:[%s8108_s20 + $0x48] sm:$0xff] }
 0x4ed   : > { %v4922_v10 = vadd.f32 %v4921_v44, %v4920_v6 }
 0x4ee   : > { %v4975_v27 = vsel %vm1404_vm12, %v4945_v8, 0.0 }
 0x4ef   : > { %v4923_v45 = vrot.slane %v4922_v10, 4  ;;  %v4976_v42 = vadd.f32 %v4975_v27, %v4974_v48  ;;  %v5035_v48 = vld [vmem:[%s8108_s20 + $0x60] sm:$0xff]  ;;  %v5037_v27 = vld [vmem:[%s8108_s20 + $0x70] sm:$0xff] }
 0x4f1   : > { %v4924_v35 = vadd.f32 %v4923_v45, %v4922_v10  ;;  %v4977_v41 = vrot.slane %v4976_v42, 4  ;;  %v5036_v10 = vld [vmem:[%s8108_s20 + $0x68] sm:$0xff] }
 0x4f3   : > { %v4925_v50 = vrot.slane %v4924_v35, 2  ;;  %v4978_v47 = vadd.f32 %v4977_v41, %v4976_v42  ;;  %v5654_v41 = vld [vmem:[%s8108_s20 + $0x80] sm:$0xff] }
 0x4f5   : > { %v4926_v12 = vadd.f32 %v4925_v50, %v4924_v35  ;;  %v4979_v18 = vrot.slane %v4978_v47, 2  ;;  %v5038_v35 = vld [vmem:[%s8108_s20 + $0x78] sm:$0xff] }
 0x4f7   : > { %v4927_v36 = vrot.slane %v4926_v12, 1  ;;  %v4980_v61 = vadd.f32 %v4979_v18, %v4978_v47 }
 0x4f9   : > { %v4928_v26 = vadd.f32 %v4927_v36, %v4926_v12  ;;  %v4981_v34 = vrot.slane %v4980_v61, 1 }
 0x4fb   : > { %v4929_v43 = vadd.f32 %v4928_v26, %v4280_v40  ;;  %v4982_v46 = vadd.f32 %v4981_v34, %v4980_v61 }
 0x4fd   : > { %v4983_v1 = vadd.f32 %v4982_v46, %v4334_v11  ;;  %v5003_v15 = vmul.f32 0.00390625, %v4929_v43  ;;  %v5656_v43 = vld [vmem:[%s8108_s20 + $0x90] sm:$0xff]  ;;  %v5039_v46 = vld [vmem:[%s5880_s29] sm:$0xff] }
 0x4ff   : > { %v5005_v58 = vmul.f32 0.00390625, %v4983_v1  ;;  %v5006_v7 = vmul.f32 %v5003_v15, %v5003_v15  ;;  %v5004_v5 = vadd.f32 %v5003_v15, %v8272_v0  ;;  %v5040_v1 = vld [vmem:[%s5880_s29 + $0x8] sm:$0xff]  ;;  %v5041_v15 = vld [vmem:[%s5880_s29 + $0x10] sm:$0xff] }
 0x501   : > { %v5007_v29 = vsub.f32 %v5005_v58, %v5006_v7 }
 0x503   : > { %v5008_v28 = vmax.f32 %v5007_v29, 0.0 }
 0x505   : > { %v5009_v54 = vadd.f32 1e-05, %v5008_v28 }
 0x507   : > { %5807 = vrsqrt.f32 %v5009_v54  ;;  %vm5016_vm4 = vweird.f32 %v5009_v54 }
 0x50d   : > { %v5808_v9 = vpop.eup %5807 }
 0x50e   : > { %v5011_v4 = vmul.f32 %v5808_v9, %v5009_v54  ;;  %vm5017_vm2 = vweird.f32 %v5808_v9  ;;  %v5657_v54 = vld [vmem:[%s8108_s20 + $0x98] sm:$0xff] }
 0x50f   : > { %vm5018_vm5 = vmor %vm5016_vm4, %vm5017_vm2 }
 0x510   : > { %v5012_v25 = vmul.f32 %v5808_v9, %v5011_v4  ;;  %v5659_v4 = vld [vmem:[%s8108_s20 + $0xa8] sm:$0xff] }
 0x512   : > { %v5013_v14 = vmul.f32 0.5, %v5012_v25  ;;  %v5042_v25 = vld [vmem:[%s5880_s29 + $0x18] sm:$0xff] }
 0x514   : > { %v5014_v21 = vsub.f32 1.5, %v5013_v14  ;;  %v5043_v14 = vld [vmem:[%s5880_s29 + $0x20] sm:$0xff] }
 0x516   : > { %v5015_v59 = vmul.f32 %v5808_v9, %v5014_v21  ;;  %v5044_v21 = vld [vmem:[%s5880_s29 + $0x28] sm:$0xff] }
 0x518   : > { %v5019_v24 = vsel %vm5018_vm5, %v5808_v9, %v5015_v59  ;;  %v5658_v9 = vld [vmem:[%s8108_s20 + $0xa0] sm:$0xff] }
 0x519   : > { %v5020_v49 = vmul.f32 %v5019_v24, %v5001_v30 }
 0x51b   : > { %v5021_v2 = vmul.f32 %v5020_v49, %v5004_v5  ;;  %v8480_v33 = vperm.slane %v5020_v49, 0  ;;  %v5045_v49 = vld [vmem:[%s5880_s29 + $0x30] sm:$0xff] }
 0x51d   : > { %v5022_v0 = vsub.f32 %v5002_v13, %v5021_v2  ;;  %v5058_v57 = vmul.f32 %v8480_v33, %v5023_v55  ;;  %v5059_v56 = vmul.f32 %v8480_v33, %v5024_v51  ;;  %v5060_v16 = vmul.f32 %v8480_v33, %v5025_v23  ;;  %v5046_v13 = vld [vmem:[%s5880_s29 + $0x38] sm:$0xff]  ;;  %v5047_v2 = vld [vmem:[%s5880_s29 + $0x40] sm:$0xff] }
 0x51e   : > { %v5061_v6 = vmul.f32 %v8480_v33, %v5026_v19  ;;  %v5062_v44 = vmul.f32 %v8480_v33, %v5027_v22  ;;  %v5063_v8 = vmul.f32 %v8480_v33, %v5028_v32  ;;  %v5064_v53 = vmul.f32 %v8480_v33, %v5029_v37  ;;  %v5048_v22 = vld [vmem:[%s5880_s29 + $0x48] sm:$0xff]  ;;  %v5049_v32 = vld [vmem:[%s5880_s29 + $0x50] sm:$0xff] }
 0x51f   : > { %v5065_v3 = vmul.f32 %v8480_v33, %v5030_v63  ;;  %v5066_v45 = vmul.f32 %v8480_v33, %v5031_v38  ;;  %v5067_v42 = vmul.f32 %v8480_v33, %v5032_v60  ;;  %v5068_v39 = vmul.f32 %v8480_v33, %v5033_v52 }
 0x520   : > { %v5069_v50 = vmul.f32 %v8480_v33, %v5034_v31  ;;  %v5070_v47 = vmul.f32 %v8480_v33, %v5035_v48  ;;  %v5071_v17 = vmul.f32 %v8480_v33, %v5036_v10  ;;  %v8514_v12 = vperm.slane %v5022_v0, 0  ;;  %v5050_v0 = vld [vmem:[%s5880_s29 + $0x58] sm:$0xff]  ;;  %v5660_v31 = vld [vmem:[%s8108_s20 + $0xb0] sm:$0xff]  ;;  %v5662_v10 = vld [vmem:[%s8108_s20 + $0xc0] sm:$0xff] }
 0x521   : > { %v5072_v18 = vmul.f32 %v8480_v33, %v5037_v27  ;;  %v5073_v62 = vmul.f32 %v8480_v33, %v5038_v35  ;;  %v8519_v36 = vmul.f32 %v5654_v41, %v8480_v33  ;;  %v8522_v61 = vmul.f32 %v5655_v20, %v8480_v33  ;;  %v5663_v27 = vld [vmem:[%s8108_s20 + $0xc8] sm:$0xff]  ;;  %v5665_v41 = vld [vmem:[%s8108_s20 + $0xd8] sm:$0xff]  ;;  %v5666_v20 = vld [vmem:[%s8108_s20 + $0xe0] sm:$0xff] }
 0x522   : > { %v5077_v40 = vadd.f32 %v8514_v12, %v5058_v57  ;;  %v5078_v26 = vadd.f32 %v8514_v12, %v5059_v56  ;;  %v5079_v34 = vadd.f32 %v8514_v12, %v5060_v16  ;;  %v5080_v11 = vadd.f32 %v8514_v12, %v5061_v6  ;;  %v5661_v6 = vld [vmem:[%s8108_s20 + $0xb8] sm:$0xff] }
 0x523   : > { %v5081_v58 = vadd.f32 %v8514_v12, %v5062_v44  ;;  %v5082_v7 = vadd.f32 %v8514_v12, %v5063_v8  ;;  %v5083_v29 = vadd.f32 %v8514_v12, %v5064_v53  ;;  %v5084_v28 = vadd.f32 %v8514_v12, %v5065_v3  ;;  %v5664_v3 = vld [vmem:[%s8108_s20 + $0xd0] sm:$0xff] }
 0x524   : > { %v5085_v30 = vadd.f32 %v8514_v12, %v5066_v45  ;;  %v5086_v59 = vadd.f32 %v8514_v12, %v5067_v42  ;;  %v5087_v24 = vadd.f32 %v8514_v12, %v5068_v39  ;;  %v5088_v5 = vadd.f32 %v8514_v12, %v5069_v50  ;;  %v5667_v50 = vld [vmem:[%s8108_s20 + $0xe8] sm:$0xff] }
 0x525   : > { %v8550_v55 = vadd.f32 %v8514_v12, %v5070_v47  ;;  %v8553_v51 = vadd.f32 %v8514_v12, %v5071_v17  ;;  %v8556_v23 = vadd.f32 %v8514_v12, %v5072_v18  ;;  %v8559_v19 = vadd.f32 %v8514_v12, %v5073_v62 }
 0x526   : > { %v5093_v37 = vadd.f32 %v5077_v40, %v5039_v46  ;;  %v5094_v63 = vadd.f32 %v5078_v26, %v5040_v1  ;;  %v5095_v38 = vadd.f32 %v5079_v34, %v5041_v15  ;;  %v5160_v57 = vmul.f32 %v5656_v43, %v8480_v33  ;;  %v5668_v40 = vld [vmem:[%s8108_s20 + $0xf0] sm:$0xff]  ;;  %v5669_v26 = vld [vmem:[%s8108_s20 + $0xf8] sm:$0xff] }
 0x527   : > { %v5096_v56 = vadd.f32 %v5080_v11, %v5042_v25  ;;  %v5161_v16 = vmul.f32 %v5657_v54, %v8480_v33  ;;  %v5162_v60 = vmul.f32 %v5658_v9, %v8480_v33  ;;  %v5163_v52 = vmul.f32 %v5659_v4, %v8480_v33  ;;  %v5052_v4 = vld [vmem:[%s5880_s29 + $0x68] sm:$0xff] }
 0x528   : > { %v5097_v44 = vadd.f32 %v5081_v58, %v5043_v14  ;;  %v5098_v8 = vadd.f32 %v5082_v7, %v5044_v21  ;;  %v5099_v53 = vadd.f32 %v5083_v29, %v5045_v49  ;;  %v5100_v48 = vadd.f32 %v5084_v28, %v5046_v13  ;;  %5109 = vst.msk [vmem:[%s8108_s20] sm:$0xff] %vm1404_vm12, %v5093_v37  ;;  %v5051_v29 = vld [vmem:[%s5880_s29 + $0x60] sm:$0xff]  ;;  %v5053_v21 = vld [vmem:[%s5880_s29 + $0x70] sm:$0xff]  ;;  %v5054_v49 = vld [vmem:[%s5880_s29 + $0x78] sm:$0xff] }
 0x529   : > { %v5101_v45 = vadd.f32 %v5085_v30, %v5047_v2  ;;  %v5102_v42 = vadd.f32 %v5086_v59, %v5048_v22  ;;  %v5103_v39 = vadd.f32 %v5087_v24, %v5049_v32  ;;  %v5104_v35 = vadd.f32 %v5088_v5, %v5050_v0  ;;  %5110 = vst.msk [vmem:[%s8108_s20 + $0x8] sm:$0xff] %vm1404_vm12, %v5094_v63  ;;  %v5670_v0 = vld [vmem:[%s5880_s29 + $0x80] sm:$0xff] }
 0x52a   : > { %5111 = vst.msk [vmem:[%s8108_s20 + $0x10] sm:$0xff] %vm1404_vm12, %v5095_v38  ;;  %v5164_v47 = vmul.f32 %v5660_v31, %v8480_v33  ;;  %v5165_v17 = vmul.f32 %v5661_v6, %v8480_v33  ;;  %v5166_v18 = vmul.f32 %v5662_v10, %v8480_v33  ;;  %v5167_v62 = vmul.f32 %v5663_v27, %v8480_v33  ;;  %v5678_v6 = vld [vmem:[%s5880_s29 + $0xc0] sm:$0xff]  ;;  %v5681_v27 = vld [vmem:[%s5880_s29 + $0xd8] sm:$0xff] }
 0x52b   : > { %5112 = vst.msk [vmem:[%s8108_s20 + $0x18] sm:$0xff] %vm1404_vm12, %v5096_v56  ;;  %v5168_v34 = vmul.f32 %v5664_v3, %v8480_v33  ;;  %v5169_v11 = vmul.f32 %v5665_v41, %v8480_v33  ;;  %v5170_v43 = vmul.f32 %v5666_v20, %v8480_v33  ;;  %v5171_v46 = vmul.f32 %v5667_v50, %v8480_v33  ;;  %v5684_v41 = vld [vmem:[%s5880_s29 + $0xf0] sm:$0xff]  ;;  %v5685_v50 = vld [vmem:[%s5880_s29 + $0xf8] sm:$0xff] }
 0x52c   : > { %5113 = vst.msk [vmem:[%s8108_s20 + $0x20] sm:$0xff] %vm1404_vm12, %v5097_v44  ;;  %v5172_v1 = vmul.f32 %v5668_v40, %v8480_v33  ;;  %v5173_v15 = vmul.f32 %v5669_v26, %v8480_v33  ;;  %v5174_v58 = vadd.f32 %v8519_v36, %v8514_v12  ;;  %v5175_v7 = vadd.f32 %v8522_v61, %v8514_v12 }
 0x52d   : > { %5114 = vst.msk [vmem:[%s8108_s20 + $0x28] sm:$0xff] %vm1404_vm12, %v5098_v8  ;;  %v5176_v28 = vadd.f32 %v5160_v57, %v8514_v12  ;;  %v5177_v54 = vadd.f32 %v5161_v16, %v8514_v12  ;;  %v5178_v9 = vadd.f32 %v5162_v60, %v8514_v12  ;;  %v5179_v33 = vadd.f32 %v5163_v52, %v8514_v12  ;;  %v5676_v16 = vld [vmem:[%s5880_s29 + $0xb0] sm:$0xff]  ;;  %v5677_v52 = vld [vmem:[%s5880_s29 + $0xb8] sm:$0xff]  ;;  %v5679_v8 = vld [vmem:[%s5880_s29 + $0xc8] sm:$0xff] }
 0x52e   : > { %5115 = vst.msk [vmem:[%s8108_s20 + $0x30] sm:$0xff] %vm1404_vm12, %v5099_v53  ;;  %v5180_v36 = vadd.f32 %v5164_v47, %v8514_v12  ;;  %v5181_v61 = vadd.f32 %v5165_v17, %v8514_v12  ;;  %v5182_v25 = vadd.f32 %v5166_v18, %v8514_v12  ;;  %v5183_v14 = vadd.f32 %v5167_v62, %v8514_v12 }
 0x52f   : > { %5116 = vst.msk [vmem:[%s8108_s20 + $0x38] sm:$0xff] %vm1404_vm12, %v5100_v48  ;;  %v5184_v30 = vadd.f32 %v5168_v34, %v8514_v12  ;;  %v5185_v59 = vadd.f32 %v5169_v11, %v8514_v12  ;;  %v5186_v24 = vadd.f32 %v5170_v43, %v8514_v12  ;;  %v5187_v5 = vadd.f32 %v5171_v46, %v8514_v12  ;;  %v5680_v48 = vld [vmem:[%s5880_s29 + $0xd0] sm:$0xff] }
 0x530   : > { %v5105_v13 = vadd.f32 %v8550_v55, %v5051_v29  ;;  %5117 = vst.msk [vmem:[%s8108_s20 + $0x40] sm:$0xff] %vm1404_vm12, %v5101_v45  ;;  %v5188_v2 = vadd.f32 %v5172_v1, %v8514_v12  ;;  %v5189_v22 = vadd.f32 %v5173_v15, %v8514_v12  ;;  %v5106_v32 = vadd.f32 %v8553_v51, %v5052_v4  ;;  %v5671_v55 = vld [vmem:[%s5880_s29 + $0x88] sm:$0xff]  ;;  %v5672_v12 = vld [vmem:[%s5880_s29 + $0x90] sm:$0xff]  ;;  %v5673_v51 = vld [vmem:[%s5880_s29 + $0x98] sm:$0xff] }
 0x531   : > { %5118 = vst.msk [vmem:[%s8108_s20 + $0x48] sm:$0xff] %vm1404_vm12, %v5102_v42  ;;  %v5107_v37 = vadd.f32 %v8556_v23, %v5053_v21  ;;  %v5108_v63 = vadd.f32 %v8559_v19, %v5054_v49  ;;  %v5190_v38 = vadd.f32 %v5670_v0, %v5174_v58  ;;  %v5674_v23 = vld [vmem:[%s5880_s29 + $0xa0] sm:$0xff]  ;;  %v5191_v57 = vadd.f32 %v5671_v55, %v5175_v7  ;;  %v5675_v19 = vld [vmem:[%s5880_s29 + $0xa8] sm:$0xff] }
 0x532   : > { %5119 = vst.msk [vmem:[%s8108_s20 + $0x50] sm:$0xff] %vm1404_vm12, %v5103_v39  ;;  %v5192_v56 = vadd.f32 %v5672_v12, %v5176_v28  ;;  %v5193_v60 = vadd.f32 %v5673_v51, %v5177_v54  ;;  %v5194_v31 = vadd.f32 %v5674_v23, %v5178_v9  ;;  %v5195_v44 = vadd.f32 %v5675_v19, %v5179_v33  ;;  %v5682_v45 = vld [vmem:[%s5880_s29 + $0xe0] sm:$0xff]  ;;  %v5683_v39 = vld [vmem:[%s5880_s29 + $0xe8] sm:$0xff] }
 0x533   : > { %5120 = vst.msk [vmem:[%s8108_s20 + $0x58] sm:$0xff] %vm1404_vm12, %v5104_v35  ;;  %v5196_v53 = vadd.f32 %v5676_v16, %v5180_v36  ;;  %v5197_v10 = vadd.f32 %v5677_v52, %v5181_v61  ;;  %v5198_v3 = vadd.f32 %v5678_v6, %v5182_v25  ;;  %v5199_v42 = vadd.f32 %v5679_v8, %v5183_v14 }
 0x534   : > { %5121 = vst.msk [vmem:[%s8108_s20 + $0x60] sm:$0xff] %vm1404_vm12, %v5105_v13  ;;  %v5200_v35 = vadd.f32 %v5680_v48, %v5184_v30  ;;  %v5201_v20 = vadd.f32 %v5681_v27, %v5185_v59  ;;  %v5202_v47 = vadd.f32 %v5682_v45, %v5186_v24  ;;  %v5203_v17 = vadd.f32 %v5683_v39, %v5187_v5 }
 0x535   : > { %5122 = vst.msk [vmem:[%s8108_s20 + $0x68] sm:$0xff] %vm1404_vm12, %v5106_v32  ;;  %v5204_v18 = vadd.f32 %v5684_v41, %v5188_v2  ;;  %v5205_v62 = vadd.f32 %v5685_v50, %v5189_v22 }
 0x536   : > { %5123 = vst.msk [vmem:[%s8108_s20 + $0x70] sm:$0xff] %vm1404_vm12, %v5107_v37 }
 0x537   : > { %5124 = vst.msk [vmem:[%s8108_s20 + $0x78] sm:$0xff] %vm1404_vm12, %v5108_v63 }
 0x538   : > { %5686 = vst.msk [vmem:[%s8108_s20 + $0x80] sm:$0xff] %vm1404_vm12, %v5190_v38 }
 0x539   : > { %5687 = vst.msk [vmem:[%s8108_s20 + $0x88] sm:$0xff] %vm1404_vm12, %v5191_v57 }
 0x53a   : > { %5688 = vst.msk [vmem:[%s8108_s20 + $0x90] sm:$0xff] %vm1404_vm12, %v5192_v56 }
 0x53b   : > { %5689 = vst.msk [vmem:[%s8108_s20 + $0x98] sm:$0xff] %vm1404_vm12, %v5193_v60 }
 0x53c   : > { %5690 = vst.msk [vmem:[%s8108_s20 + $0xa0] sm:$0xff] %vm1404_vm12, %v5194_v31 }
 0x53d   : > { %5691 = vst.msk [vmem:[%s8108_s20 + $0xa8] sm:$0xff] %vm1404_vm12, %v5195_v44 }
 0x53e   : > { %5692 = vst.msk [vmem:[%s8108_s20 + $0xb0] sm:$0xff] %vm1404_vm12, %v5196_v53 }
 0x53f   : > { %5693 = vst.msk [vmem:[%s8108_s20 + $0xb8] sm:$0xff] %vm1404_vm12, %v5197_v10 }
 0x540   : > { %5694 = vst.msk [vmem:[%s8108_s20 + $0xc0] sm:$0xff] %vm1404_vm12, %v5198_v3 }
 0x541   : > { %5695 = vst.msk [vmem:[%s8108_s20 + $0xc8] sm:$0xff] %vm1404_vm12, %v5199_v42 }
 0x542   : > { %5696 = vst.msk [vmem:[%s8108_s20 + $0xd0] sm:$0xff] %vm1404_vm12, %v5200_v35 }
 0x543   : > { %5697 = vst.msk [vmem:[%s8108_s20 + $0xd8] sm:$0xff] %vm1404_vm12, %v5201_v20 }
 0x544   : > { %5698 = vst.msk [vmem:[%s8108_s20 + $0xe0] sm:$0xff] %vm1404_vm12, %v5202_v47 }
 0x545   : > { %5699 = vst.msk [vmem:[%s8108_s20 + $0xe8] sm:$0xff] %vm1404_vm12, %v5203_v17 }
 0x546   : > { %5700 = vst.msk [vmem:[%s8108_s20 + $0xf0] sm:$0xff] %vm1404_vm12, %v5204_v18 }
 0x547   : > { %5701 = vst.msk [vmem:[%s8108_s20 + $0xf8] sm:$0xff] %vm1404_vm12, %v5205_v62 }
 0x548 PF: > { %s17_s24 = sadd.s32 1, %s5819_s24  }
 0x549   : > { %p14_p4 = scmp.ge.s32.totalorder %s17_s24, 4  }
 0x54b   :  { %16 = sbr.rel (!%p14_p4) target bundleno = 1 (0x1), region = 89 }

</bundles_post_ra>
